<compile_context>
chip_gen: v6e
topology: v6e:2x2x1
jax: 0.10.0
libtpu: 0.0.40
codegen_flags: <defaults>
</compile_context>

<pallas_src>
import jax
import jax.numpy as jnp
from jax.experimental import pallas as pl
from jax.experimental.pallas import tpu as pltpu


LANES = 128  # TPU lane width; all GEMM output widths are padded to this.


# ----------------------------------------------------------------------------
# Pallas kernel 1: fused  Y = relu(X @ W + b)   (conv-as-GEMM)
# ----------------------------------------------------------------------------
def _matmul_bias_relu_kernel(x_ref, w_ref, b_ref, o_ref):
    acc = jnp.dot(x_ref[...], w_ref[...], preferred_element_type=jnp.float32)
    o_ref[...] = jnp.maximum(acc + b_ref[...], 0.0).astype(o_ref.dtype)


def matmul_bias_relu(x, w, b2):
    """relu(x @ w + b) with x:(M,K) bf16, w:(K,N) bf16, b2:(1,N) f32 -> (M,N) f32.

    N must be a multiple of 128 (lane-dense output)."""
    M, K = x.shape
    Kw, N = w.shape
    assert K == Kw and N % LANES == 0, (K, Kw, N)

    # Prefer 2 large tiles (keeps both v7x TensorCores busy); otherwise one
    # single block — per-grid-step overhead dominates tiny GEMMs.
    if M >= 512 and M % 16 == 0:
        tm = M // 2
    else:
        tm = M
    grid = (M // tm,)

    return pl.pallas_call(
        _matmul_bias_relu_kernel,
        out_shape=jax.ShapeDtypeStruct((M, N), jnp.float32),
        grid_spec=pltpu.PrefetchScalarGridSpec(
            num_scalar_prefetch=0,
            grid=grid,
            in_specs=[
                pl.BlockSpec((tm, K), lambda i: (i, 0)),   # activations, tiled on M
                pl.BlockSpec((K, N), lambda i: (0, 0)),    # full weight resident
                pl.BlockSpec((1, N), lambda i: (0, 0)),    # bias (f32)
            ],
            out_specs=pl.BlockSpec((tm, N), lambda i: (i, 0)),
        ),
        compiler_params=pltpu.CompilerParams(
            dimension_semantics=("parallel",),
            vmem_limit_bytes=32 << 20,
        ),
    )(x, w, b2)


# ----------------------------------------------------------------------------
# Pallas kernel 2: fused FC stack
#   h     = relu(flat @ W_fc1 + b_fc1)            (kept in registers/VMEM)
#   heads = relu(h    @ W_heads + b_heads)        (actor || critic, lane-padded)
# ----------------------------------------------------------------------------
def _fc_heads_kernel(x_ref, w1_ref, b1_ref, wh_ref, bh_ref, o_ref):
    h = jnp.dot(x_ref[...], w1_ref[...], preferred_element_type=jnp.float32)
    h = jnp.maximum(h + b1_ref[...], 0.0)
    acc = jnp.dot(h.astype(wh_ref.dtype), wh_ref[...],
                  preferred_element_type=jnp.float32)
    o_ref[...] = jnp.maximum(acc + bh_ref[...], 0.0).astype(o_ref.dtype)


def fc_heads(flat, w1, b1, wh, bh):
    """flat:(M,K) bf16, w1:(K,N1) bf16, b1:(1,N1) f32, wh:(N1,Nh) bf16,
    bh:(1,Nh) f32 -> (M,Nh) f32.  Single block; everything fits in VMEM."""
    M, K = flat.shape
    N1 = w1.shape[1]
    Nh = wh.shape[1]
    assert N1 % LANES == 0 and Nh % LANES == 0
    return pl.pallas_call(
        _fc_heads_kernel,
        out_shape=jax.ShapeDtypeStruct((M, Nh), jnp.float32),
        grid_spec=pltpu.PrefetchScalarGridSpec(
            num_scalar_prefetch=0,
            grid=(1,),
            in_specs=[
                pl.BlockSpec((M, K), lambda i: (0, 0)),
                pl.BlockSpec((K, N1), lambda i: (0, 0)),   # fc1 weight (bf16, 4 MiB)
                pl.BlockSpec((1, N1), lambda i: (0, 0)),
                pl.BlockSpec((N1, Nh), lambda i: (0, 0)),  # fused actor+critic weight
                pl.BlockSpec((1, Nh), lambda i: (0, 0)),
            ],
            out_specs=pl.BlockSpec((M, Nh), lambda i: (0, 0)),
        ),
        compiler_params=pltpu.CompilerParams(
            dimension_semantics=("arbitrary",),
            vmem_limit_bytes=32 << 20,
        ),
    )(flat, w1, b1, wh, bh)


# ----------------------------------------------------------------------------
# Glue: im2col on NHWC input, built directly in final (kh, kw, c) inner order
# (concat along last axis — no 6-D transpose, XLA fuses pad+slice+concat).
# ----------------------------------------------------------------------------
def im2col_nhwc(x_nhwc, K, S, P):
    N, H, W, C = x_nhwc.shape
    xp = jnp.pad(x_nhwc, ((0, 0), (P, P), (P, P), (0, 0)))
    OH = (H - K + 2 * P) // S + 1
    OW = (W - K + 2 * P) // S + 1
    cols = []
    for ki in range(K):
        for kj in range(K):
            cols.append(xp[:, ki:ki + S * OH:S, kj:kj + S * OW:S, :])  # (N,OH,OW,C)
    col = jnp.concatenate(cols, axis=-1)          # (N, OH, OW, K*K*C), (kh,kw,c) inner
    return col.reshape(N * OH * OW, K * K * C), OH, OW


# ----------------------------------------------------------------------------
# Model config (scaled-down, see header note) and deterministic params
# ----------------------------------------------------------------------------
NUM_INPUT_CHANNEL = 4
NUM_ACTION = 6
SPATIAL = 16
CONV1 = dict(cout=16, k=8, s=4, p=26)   # analog of k=8,s=4,p=128 @ 84x84
CONV2 = dict(cout=32, k=4, s=2, p=9)    # analog of k=4,s=2,p=43  @ 84x84
FC1_IN = CONV2["cout"] * SPATIAL * SPATIAL
FC1_OUT = 256


def init_params(key):
    def uniform(key, shape, fan_in):
        bound = 1.0 / jnp.sqrt(jnp.float32(fan_in))
        return jax.random.uniform(key, shape, jnp.float32, -bound, bound)

    ks = jax.random.split(key, 10)
    c1_fan = NUM_INPUT_CHANNEL * CONV1["k"] * CONV1["k"]
    c2_fan = CONV1["cout"] * CONV2["k"] * CONV2["k"]
    return {
        "conv1_w": uniform(ks[0], (CONV1["cout"], NUM_INPUT_CHANNEL, CONV1["k"], CONV1["k"]), c1_fan),
        "conv1_b": uniform(ks[1], (CONV1["cout"],), c1_fan),
        "conv2_w": uniform(ks[2], (CONV2["cout"], CONV1["cout"], CONV2["k"], CONV2["k"]), c2_fan),
        "conv2_b": uniform(ks[3], (CONV2["cout"],), c2_fan),
        "fc1_w": uniform(ks[4], (FC1_OUT, FC1_IN), FC1_IN),
        "fc1_b": uniform(ks[5], (FC1_OUT,), FC1_IN),
        "actor_w": uniform(ks[6], (NUM_ACTION, FC1_OUT), FC1_OUT),
        "actor_b": uniform(ks[7], (NUM_ACTION,), FC1_OUT),
        "critic_w": uniform(ks[8], (1, FC1_OUT), FC1_OUT),
        "critic_b": uniform(ks[9], (1,), FC1_OUT),
    }


# ----------------------------------------------------------------------------
# One-time (outside the hot path) param repacking:
#   - conv weights to im2col (kh,kw,cin, cout) layout, Cout padded to 128 lanes
#   - fc1 rows permuted from (c,h,w) flatten order to NHWC (h,w,c) order
#   - actor+critic fused into one head weight, padded to 128 lanes
#   - all GEMM weights cast to bf16, biases kept f32
# ----------------------------------------------------------------------------
def prepare_params(params):
    bf16 = jnp.bfloat16

    def pad_w(w2d):
        k, n = w2d.shape
        return jnp.pad(w2d, ((0, 0), (0, LANES - n))).astype(bf16)

    def pad_b(b):
        return jnp.pad(b, (0, LANES - b.shape[0])).reshape(1, LANES).astype(jnp.float32)

    # Conv weights: (Cout, Cin, KH, KW) -> (KH, KW, Cin, Cout) -> (KH*KW*Cin, Cout)
    w1 = params["conv1_w"].transpose(2, 3, 1, 0).reshape(-1, CONV1["cout"])
    w2 = params["conv2_w"].transpose(2, 3, 1, 0).reshape(-1, CONV2["cout"])

    # fc1: permute input features from (C,H,W) order to NHWC (H,W,C) order.
    fc1 = params["fc1_w"].reshape(FC1_OUT, CONV2["cout"], SPATIAL, SPATIAL)
    fc1 = fc1.transpose(0, 2, 3, 1).reshape(FC1_OUT, FC1_IN).T        # (H*W*C, 256)

    # Fused actor||critic head: (A+1, 256) -> (256, A+1), padded to 128 lanes.
    wh = jnp.concatenate([params["actor_w"], params["critic_w"]], axis=0).T
    bh = jnp.concatenate([params["actor_b"], params["critic_b"]], axis=0)

    return {
        "conv1_w": pad_w(w1), "conv1_b": pad_b(params["conv1_b"]),
        "conv2_w": pad_w(w2), "conv2_b": pad_b(params["conv2_b"]),
        "fc1_w": fc1.astype(bf16),
        "fc1_b": params["fc1_b"].reshape(1, FC1_OUT).astype(jnp.float32),
        "heads_w": pad_w(wh), "heads_b": pad_b(bh),
    }


# ----------------------------------------------------------------------------
# Forward pass (Pallas hot path). x is NCHW like PyTorch; NHWC internally.
# ----------------------------------------------------------------------------
@jax.jit
def forward(kp, x):
    Nb = x.shape[0]
    bf16 = jnp.bfloat16
    x = x.transpose(0, 2, 3, 1)                                  # NCHW -> NHWC (tiny)

    # conv1 + relu (im2col GEMM, lane-padded output)
    col1, oh1, ow1 = im2col_nhwc(x, CONV1["k"], CONV1["s"], CONV1["p"])
    y1 = matmul_bias_relu(col1.astype(bf16), kp["conv1_w"], kp["conv1_b"])
    y1 = y1[:, :CONV1["cout"]].reshape(Nb, oh1, ow1, CONV1["cout"])     # NHWC

    # conv2 + relu
    col2, oh2, ow2 = im2col_nhwc(y1, CONV2["k"], CONV2["s"], CONV2["p"])
    y2 = matmul_bias_relu(col2.astype(bf16), kp["conv2_w"], kp["conv2_b"])
    y2 = y2[:, :CONV2["cout"]].reshape(Nb, oh2, ow2, CONV2["cout"])     # NHWC

    # flatten in NHWC order (fc1_w rows were permuted to match at prep time)
    flat = y2.reshape(Nb, -1).astype(bf16)                       # (Nb, H*W*C)

    # fused fc1 + actor + critic (single pallas_call, h never leaves VMEM)
    heads = fc_heads(flat, kp["fc1_w"], kp["fc1_b"], kp["heads_w"], kp["heads_b"])
    actor = heads[:, :NUM_ACTION]                                # (Nb, A)
    critic = heads[:, NUM_ACTION:NUM_ACTION + 1]                 # (Nb, 1)
    return critic, actor


# ----------------------------------------------------------------------------
# Pure-JAX reference (PyTorch-style NCHW path, same bf16 cast points, no Pallas)
# ----------------------------------------------------------------------------
def _im2col_nchw(x_nchw, K, S, P):
    N, C, H, W = x_nchw.shape
    xp = jnp.pad(x_nchw, ((0, 0), (0, 0), (P, P), (P, P)))
    OH = (H - K + 2 * P) // S + 1
    OW = (W - K + 2 * P) // S + 1
    cols = []
    for ki in range(K):
        for kj in range(K):
            cols.append(xp[:, :, ki:ki + S * OH:S, kj:kj + S * OW:S])
    col = jnp.stack(cols, axis=0).reshape(K, K, N, C, OH, OW)
    col = col.transpose(2, 4, 5, 3, 0, 1)                        # (N,OH,OW,C,KH,KW)
    return col.reshape(N * OH * OW, C * K * K), OH, OW


def forward_ref(params, x):
    bf16 = jnp.bfloat16

    def mmr(a, w, b):
        acc = jnp.dot(a.astype(bf16), w.astype(bf16),
                      preferred_element_type=jnp.float32)
        return jnp.maximum(acc + b[None, :], 0.0)

    Nb = x.shape[0]
    col1, oh1, ow1 = _im2col_nchw(x, CONV1["k"], CONV1["s"], CONV1["p"])
    y1 = mmr(col1, params["conv1_w"].reshape(CONV1["cout"], -1).T, params["conv1_b"])
    y1 = y1.reshape(Nb, oh1, ow1, CONV1["cout"]).transpose(0, 3, 1, 2)
    col2, oh2, ow2 = _im2col_nchw(y1, CONV2["k"], CONV2["s"], CONV2["p"])
    y2 = mmr(col2, params["conv2_w"].reshape(CONV2["cout"], -1).T, params["conv2_b"])
    y2 = y2.reshape(Nb, oh2, ow2, CONV2["cout"]).transpose(0, 3, 1, 2)
    flat = y2.reshape(Nb, -1)
    h = mmr(flat, params["fc1_w"].T, params["fc1_b"])
    actor = mmr(h, params["actor_w"].T, params["actor_b"])
    critic = mmr(h, params["critic_w"].T, params["critic_b"])
    return critic, actor


if __name__ == "__main__":
    key = jax.random.PRNGKey(0)
    pkey, xkey = jax.random.split(key)
    params = init_params(pkey)
    kparams = prepare_params(params)   # one-time repack (NHWC / padded / bf16)
    x = jax.random.normal(xkey, (2, NUM_INPUT_CHANNEL, SPATIAL, SPATIAL), jnp.float32)

    critic, actor = forward(kparams, x)
    jax.block_until_ready((critic, actor))

    assert critic.shape == (2, 1), critic.shape
    assert actor.shape == (2, NUM_ACTION), actor.shape

    critic_r, actor_r = forward_ref(params, x)
    assert jnp.allclose(critic, critic_r, rtol=1e-2, atol=1e-2), (critic, critic_r)
    assert jnp.allclose(actor, actor_r, rtol=1e-2, atol=1e-2), (actor, actor_r)

    print("KERNEL_OK")
</pallas_src>

<mosaic_0001>
module attributes {stable_mosaic.version = 11 : i64} {
  func.func @_matmul_bias_relu_kernel(%arg0: i32, %arg1: memref<256x256xbf16, #tpu.memory_space<vmem>>, %arg2: memref<256x128xbf16, #tpu.memory_space<vmem>>, %arg3: memref<1x128xf32, #tpu.memory_space<vmem>>, %arg4: memref<256x128xf32, #tpu.memory_space<vmem>>) attributes {dimension_semantics = [#tpu.dimension_semantics<parallel>], iteration_bounds = array<i64: 2>, scalar_prefetch = 0 : i64, scratch_operands = 0 : i64, tpu.core_type = #tpu.core_type<tc>, window_params = [{transform_indices = @transform_0, window_bounds = array<i64: 256, 256>}, {pipeline_mode = #tpu.pipeline_mode<synchronous>, transform_indices = @transform_1, window_bounds = array<i64: 256, 128>}, {pipeline_mode = #tpu.pipeline_mode<synchronous>, transform_indices = @transform_2, window_bounds = array<i64: 1, 128>}, {transform_indices = @transform_3, window_bounds = array<i64: 256, 128>}]} {
    %c0 = arith.constant 0 : index
    %c0_0 = arith.constant 0 : index
    %0 = vector.load %arg1[%c0, %c0_0] : memref<256x256xbf16, #tpu.memory_space<vmem>>, vector<256x256xbf16>
    %c0_1 = arith.constant 0 : index
    %c0_2 = arith.constant 0 : index
    %1 = vector.load %arg2[%c0_1, %c0_2] : memref<256x128xbf16, #tpu.memory_space<vmem>>, vector<256x128xbf16>
    %cst = arith.constant dense<0.000000e+00> : vector<256x128xf32>
    %2 = tpu.matmul %0, %1, %cst {dimension_numbers = #tpu.dot_dimension_numbers<[1], [0], [0], [1], [0, 0, 1, 1], [], []>} : vector<256x256xbf16>, vector<256x128xbf16>, vector<256x128xf32> -> vector<256x128xf32>
    %c0_3 = arith.constant 0 : index
    %c0_4 = arith.constant 0 : index
    %3 = vector.load %arg3[%c0_3, %c0_4] : memref<1x128xf32, #tpu.memory_space<vmem>>, vector<1x128xf32>
    %4 = vector.broadcast %3 : vector<1x128xf32> to vector<256x128xf32>
    %5 = arith.addf %2, %4 : vector<256x128xf32>
    %cst_5 = arith.constant 0.000000e+00 : f32
    %6 = vector.broadcast %cst_5 : f32 to vector<256x128xf32>
    %7 = arith.maximumf %5, %6 : vector<256x128xf32>
    %c0_6 = arith.constant 0 : index
    %c0_7 = arith.constant 0 : index
    %8 = vector.load %arg4[%c0_6, %c0_7] : memref<256x128xf32, #tpu.memory_space<vmem>>, vector<256x128xf32>
    tpu.vector_store %arg4[%c0_6, %c0_7], %7 {strides = array<i32>} : memref<256x128xf32, #tpu.memory_space<vmem>>, vector<256x128xf32>,
    return
  }
  func.func @transform_0(%arg0: i32) -> (i32, i32) {
    %c0_i32 = arith.constant 0 : i32
    %c0_i32_0 = arith.constant 0 : i32
    return %arg0, %c0_i32 : i32, i32
  }
  func.func @transform_1(%arg0: i32) -> (i32, i32) {
    %c0_i32 = arith.constant 0 : i32
    %c0_i32_0 = arith.constant 0 : i32
    %c0_i32_1 = arith.constant 0 : i32
    return %c0_i32, %c0_i32_0 : i32, i32
  }
  func.func @transform_2(%arg0: i32) -> (i32, i32) {
    %c0_i32 = arith.constant 0 : i32
    %c0_i32_0 = arith.constant 0 : i32
    %c0_i32_1 = arith.constant 0 : i32
    return %c0_i32, %c0_i32_0 : i32, i32
  }
  func.func @transform_3(%arg0: i32) -> (i32, i32) {
    %c0_i32 = arith.constant 0 : i32
    %c0_i32_0 = arith.constant 0 : i32
    return %arg0, %c0_i32 : i32, i32
  }
}

module attributes {stable_mosaic.version = 11 : i64} {
  func.func @_fc_heads_kernel(%arg0: i32, %arg1: memref<2x8192xbf16, #tpu.memory_space<vmem>>, %arg2: memref<8192x256xbf16, #tpu.memory_space<vmem>>, %arg3: memref<1x256xf32, #tpu.memory_space<vmem>>, %arg4: memref<256x128xbf16, #tpu.memory_space<vmem>>, %arg5: memref<1x128xf32, #tpu.memory_space<vmem>>, %arg6: memref<2x128xf32, #tpu.memory_space<vmem>>) attributes {dimension_semantics = [#tpu.dimension_semantics<arbitrary>], iteration_bounds = array<i64: 1>, scalar_prefetch = 0 : i64, scratch_operands = 0 : i64, tpu.core_type = #tpu.core_type<tc>, window_params = [{pipeline_mode = #tpu.pipeline_mode<synchronous>, transform_indices = @transform_0, window_bounds = array<i64: 2, 8192>}, {pipeline_mode = #tpu.pipeline_mode<synchronous>, transform_indices = @transform_1, window_bounds = array<i64: 8192, 256>}, {pipeline_mode = #tpu.pipeline_mode<synchronous>, transform_indices = @transform_2, window_bounds = array<i64: 1, 256>}, {pipeline_mode = #tpu.pipeline_mode<synchronous>, transform_indices = @transform_3, window_bounds = array<i64: 256, 128>}, {pipeline_mode = #tpu.pipeline_mode<synchronous>, transform_indices = @transform_4, window_bounds = array<i64: 1, 128>}, {pipeline_mode = #tpu.pipeline_mode<synchronous>, transform_indices = @transform_5, window_bounds = array<i64: 2, 128>}]} {
    %c0 = arith.constant 0 : index
    %c0_0 = arith.constant 0 : index
    %0 = vector.load %arg1[%c0, %c0_0] : memref<2x8192xbf16, #tpu.memory_space<vmem>>, vector<2x8192xbf16>
    %c0_1 = arith.constant 0 : index
    %c0_2 = arith.constant 0 : index
    %1 = vector.load %arg2[%c0_1, %c0_2] : memref<8192x256xbf16, #tpu.memory_space<vmem>>, vector<8192x256xbf16>
    %cst = arith.constant dense<0.000000e+00> : vector<2x256xf32>
    %2 = tpu.matmul %0, %1, %cst {dimension_numbers = #tpu.dot_dimension_numbers<[1], [0], [0], [1], [0, 0, 1, 1], [], []>} : vector<2x8192xbf16>, vector<8192x256xbf16>, vector<2x256xf32> -> vector<2x256xf32>
    %c0_3 = arith.constant 0 : index
    %c0_4 = arith.constant 0 : index
    %3 = vector.load %arg3[%c0_3, %c0_4] : memref<1x256xf32, #tpu.memory_space<vmem>>, vector<1x256xf32>
    %4 = vector.broadcast %3 : vector<1x256xf32> to vector<2x256xf32>
    %5 = arith.addf %2, %4 : vector<2x256xf32>
    %cst_5 = arith.constant 0.000000e+00 : f32
    %6 = vector.broadcast %cst_5 : f32 to vector<2x256xf32>
    %7 = arith.maximumf %5, %6 : vector<2x256xf32>
    %8 = arith.truncf %7 : vector<2x256xf32> to vector<2x256xbf16>
    %c0_6 = arith.constant 0 : index
    %c0_7 = arith.constant 0 : index
    %9 = vector.load %arg4[%c0_6, %c0_7] : memref<256x128xbf16, #tpu.memory_space<vmem>>, vector<256x128xbf16>
    %cst_8 = arith.constant dense<0.000000e+00> : vector<2x128xf32>
    %10 = tpu.matmul %8, %9, %cst_8 {dimension_numbers = #tpu.dot_dimension_numbers<[1], [0], [0], [1], [0, 0, 1, 1], [], []>} : vector<2x256xbf16>, vector<256x128xbf16>, vector<2x128xf32> -> vector<2x128xf32>
    %c0_9 = arith.constant 0 : index
    %c0_10 = arith.constant 0 : index
    %11 = vector.load %arg5[%c0_9, %c0_10] : memref<1x128xf32, #tpu.memory_space<vmem>>, vector<1x128xf32>
    %12 = vector.broadcast %11 : vector<1x128xf32> to vector<2x128xf32>
    %13 = arith.addf %10, %12 : vector<2x128xf32>
    %cst_11 = arith.constant 0.000000e+00 : f32
    %14 = vector.broadcast %cst_11 : f32 to vector<2x128xf32>
    %15 = arith.maximumf %13, %14 : vector<2x128xf32>
    %c0_12 = arith.constant 0 : index
    %c0_13 = arith.constant 0 : index
    %16 = vector.load %arg6[%c0_12, %c0_13] : memref<2x128xf32, #tpu.memory_space<vmem>>, vector<2x128xf32>
    tpu.vector_store %arg6[%c0_12, %c0_13], %15 {strides = array<i32>} : memref<2x128xf32, #tpu.memory_space<vmem>>, vector<2x128xf32>,
    return
  }
  func.func @transform_0(%arg0: i32) -> (i32, i32) {
    %c0_i32 = arith.constant 0 : i32
    %c0_i32_0 = arith.constant 0 : i32
    %c0_i32_1 = arith.constant 0 : i32
    return %c0_i32, %c0_i32_0 : i32, i32
  }
  func.func @transform_1(%arg0: i32) -> (i32, i32) {
    %c0_i32 = arith.constant 0 : i32
    %c0_i32_0 = arith.constant 0 : i32
    %c0_i32_1 = arith.constant 0 : i32
    return %c0_i32, %c0_i32_0 : i32, i32
  }
  func.func @transform_2(%arg0: i32) -> (i32, i32) {
    %c0_i32 = arith.constant 0 : i32
    %c0_i32_0 = arith.constant 0 : i32
    %c0_i32_1 = arith.constant 0 : i32
    return %c0_i32, %c0_i32_0 : i32, i32
  }
  func.func @transform_3(%arg0: i32) -> (i32, i32) {
    %c0_i32 = arith.constant 0 : i32
    %c0_i32_0 = arith.constant 0 : i32
    %c0_i32_1 = arith.constant 0 : i32
    return %c0_i32, %c0_i32_0 : i32, i32
  }
  func.func @transform_4(%arg0: i32) -> (i32, i32) {
    %c0_i32 = arith.constant 0 : i32
    %c0_i32_0 = arith.constant 0 : i32
    %c0_i32_1 = arith.constant 0 : i32
    return %c0_i32, %c0_i32_0 : i32, i32
  }
  func.func @transform_5(%arg0: i32) -> (i32, i32) {
    %c0_i32 = arith.constant 0 : i32
    %c0_i32_0 = arith.constant 0 : i32
    %c0_i32_1 = arith.constant 0 : i32
    return %c0_i32, %c0_i32_0 : i32, i32
  }
}

</mosaic_0001>

<bundles_post_ra>
// kernel: forward.3
= control target key start
LH: loop header
LB: loop body
LE: loop exit
PB: predicated region body
PF: predicated region fallthrough
CT: control target
= control target key end

     0   :  { %s1076_s12 = smov 0   ;;  %s1253_s0 = inlined_call_operand.vmem [shape: bf16[512,256], index: 0, kind: input, shape index: {}]   ;;  %s1254_s1 = inlined_call_operand.vmem [shape: bf16[256,128], index: 1, kind: input, shape index: {}]   ;;  %s1255_s2 = inlined_call_operand.vmem [shape: f32[1,128], index: 2, kind: input, shape index: {}]   ;;  %s1256_s3 = inlined_call_operand.vmem [shape: f32[512,128], index: 3, kind: output, shape index: {}]  }
   0x1 LB: > { %s786_s13 = sadd.s32 4294967295, %s1054_s12   ;;  %p790_p0 = scmp.ge.s32.totalorder %s1054_s12, 1  ;;  %s1054_s12 = sphi %s1076_s12, %s13_s12  }
   0x2   : > { %p139_p1 = scmp.lt.s32.totalorder %s1054_s12, 3 }
   0x4   : > { %p140_p2 = pnand %p790_p0, %p139_p1 }
   0x5   : > { %s791_s16 = sshll.u32 (!%p140_p2), %s786_s13, 5 }
   0x6   : > { %143 = sbr.rel (%p140_p2) target bundleno = 306 (0x132), region = 32  ;;  %p165_p3 = scmp.lt.s32.totalorder (!%p140_p2), %s791_s16, 63 }
   0xb   : > { %v984_v0 = vld [vmem:[%s1254_s1 + $0x78] sm:$0xff]   ;;  %v986_v2 = vld [vmem:[%s1254_s1 + $0x70] sm:$0xff]   ;;  %v988_v4 = vld [vmem:[%s1254_s1 + $0x68] sm:$0xff]   ;;  %s1258_s16 = smov (!%p165_p3, %s791_s16), 63 }
   0xc   : > { %v985_v1 = vld [vmem:[%s1254_s1 + $0x38] sm:$0xff]   ;;  %848 = vmatprep.subr.bf16.mxu0 %v984_v0  ;;  %960 = vmatprep.subr.bf16.mxu1 %v984_v0  ;;  %v987_v3 = vld [vmem:[%s1254_s1 + $0x30] sm:$0xff]   ;;  %v989_v5 = vld [vmem:[%s1254_s1 + $0x28] sm:$0xff]   ;;  %s847_s4 = sshll.u32 %s1258_s16, 3 }
   0xd   : > { %849 = vmatpush3.bf16.msra.mxu0 %v985_v1  ;;  %968 = vmatpush3.bf16.msra.mxu1 %v985_v1  ;;  %v990_v6 = vld [vmem:[%s1254_s1 + $0x60] sm:$0xff]   ;;  %v992_v8 = vld [vmem:[%s1254_s1 + $0x58] sm:$0xff]   ;;  %s1119_s9 = scalar_lea.vmem %s1253_s0, %s847_s4  ;;  %v994_v10 = vld [vmem:[%s1254_s1 + $0x50] sm:$0xff]   ;;  %s1186_s30 = scalar_lea.vmem %s1256_s3, %s847_s4 }
   0xe   : > { %850 = vmatprep.subr.bf16.mxu0 %v986_v2  ;;  %961 = vmatprep.subr.bf16.mxu1 %v986_v2  ;;  %v991_v7 = vld [vmem:[%s1254_s1 + $0x20] sm:$0xff]   ;;  %v993_v9 = vld [vmem:[%s1254_s1 + $0x18] sm:$0xff]   ;;  %v995_v13 = vld [vmem:[%s1254_s1 + $0x10] sm:$0xff]  }
   0xf   : > { %v1002_v11 = vld [vmem:[%s1119_s9 + $0x4] ss:$8 sps:$4 sm:$0xff]   ;;  %v1000_v18 = vld [vmem:[%s1119_s9] ss:$8 sps:$4 sm:$0xff]   ;;  %v1006_v20 = vld [vmem:[%s1119_s9 + $0x14] ss:$8 sps:$4 sm:$0xff]  }
  0x10   : > { %v1005_v12 = vld [vmem:[%s1119_s9 + $0x84] ss:$8 sps:$4 sm:$0xff]   ;;  %537 = vmatprep.mubr.bf16.mxu0 %v1002_v11  ;;  %v1003_v19 = vld [vmem:[%s1119_s9 + $0x80] ss:$8 sps:$4 sm:$0xff]   ;;  %v1008_v21 = vld [vmem:[%s1119_s9 + $0x94] ss:$8 sps:$4 sm:$0xff]  }
  0x11   : > { %851 = vmatpush3.bf16.msra.mxu0 %v987_v3  ;;  %969 = vmatpush3.bf16.msra.mxu1 %v987_v3  ;;  %v996_v14 = vld [vmem:[%s1254_s1 + $0x48] sm:$0xff]   ;;  %v998_v16 = vld [vmem:[%s1254_s1 + $0x40] sm:$0xff]   ;;  %v1010_v22 = vld [vmem:[%s1119_s9 + $0x10] ss:$8 sps:$4 sm:$0xff]  }
  0x12   : > { %852 = vmatprep.subr.bf16.mxu0 %v988_v4  ;;  %962 = vmatprep.subr.bf16.mxu1 %v988_v4  ;;  %v997_v15 = vld [vmem:[%s1254_s1 + $0x8] sm:$0xff]   ;;  %v999_v17 = vld [vmem:[%s1254_s1] sm:$0xff]   ;;  %v1011_v23 = vld [vmem:[%s1119_s9 + $0x90] ss:$8 sps:$4 sm:$0xff]  }
  0x13   : > { %601 = vmatprep.mubr.bf16.mxu1 %v1005_v12  ;;  %v1012_v24 = vld [vmem:[%s1119_s9 + $0x24] ss:$8 sps:$4 sm:$0xff]   ;;  %v1016_v26 = vld [vmem:[%s1119_s9 + $0x20] ss:$8 sps:$4 sm:$0xff]   ;;  %v1018_v28 = vld [vmem:[%s1119_s9 + $0x34] ss:$8 sps:$4 sm:$0xff]  }
  0x14   : > { %v1014_v25 = vld [vmem:[%s1119_s9 + $0xa4] ss:$8 sps:$4 sm:$0xff]   ;;  %v1017_v27 = vld [vmem:[%s1119_s9 + $0xa0] ss:$8 sps:$4 sm:$0xff]   ;;  %v1020_v29 = vld [vmem:[%s1119_s9 + $0xb4] ss:$8 sps:$4 sm:$0xff]  }
  0x15   : > { %853 = vmatpush3.bf16.msra.mxu0 %v989_v5  ;;  %970 = vmatpush3.bf16.msra.mxu1 %v989_v5  ;;  %v1022_v30 = vld [vmem:[%s1119_s9 + $0x30] ss:$8 sps:$4 sm:$0xff]   ;;  %v1024_v32 = vld [vmem:[%s1119_s9 + $0x44] ss:$8 sps:$4 sm:$0xff]   ;;  %v1028_v34 = vld [vmem:[%s1119_s9 + $0x40] ss:$8 sps:$4 sm:$0xff]  }
  0x16   : > { %854 = vmatprep.subr.bf16.mxu0 %v990_v6  ;;  %963 = vmatprep.subr.bf16.mxu1 %v990_v6  ;;  %v1023_v31 = vld [vmem:[%s1119_s9 + $0xb0] ss:$8 sps:$4 sm:$0xff]   ;;  %v1026_v33 = vld [vmem:[%s1119_s9 + $0xc4] ss:$8 sps:$4 sm:$0xff]   ;;  %v1029_v35 = vld [vmem:[%s1119_s9 + $0xc0] ss:$8 sps:$4 sm:$0xff]  }
  0x17   : > { %v1030_v36 = vld [vmem:[%s1119_s9 + $0x54] ss:$8 sps:$4 sm:$0xff]   ;;  %v1034_v38 = vld [vmem:[%s1119_s9 + $0x50] ss:$8 sps:$4 sm:$0xff]   ;;  %v1036_v40 = vld [vmem:[%s1119_s9 + $0x64] ss:$8 sps:$4 sm:$0xff]  }
  0x18   : > { %v1032_v37 = vld [vmem:[%s1119_s9 + $0xd4] ss:$8 sps:$4 sm:$0xff]   ;;  %v1035_v39 = vld [vmem:[%s1119_s9 + $0xd0] ss:$8 sps:$4 sm:$0xff]   ;;  %v1038_v41 = vld [vmem:[%s1119_s9 + $0xe4] ss:$8 sps:$4 sm:$0xff]  }
  0x19   : > { %855 = vmatpush3.bf16.msra.mxu0 %v991_v7  ;;  %971 = vmatpush3.bf16.msra.mxu1 %v991_v7  ;;  %v1040_v42 = vld [vmem:[%s1119_s9 + $0x60] ss:$8 sps:$4 sm:$0xff]   ;;  %v1042_v44 = vld [vmem:[%s1119_s9 + $0x74] ss:$8 sps:$4 sm:$0xff]   ;;  %v1046_v46 = vld [vmem:[%s1119_s9 + $0x70] ss:$8 sps:$4 sm:$0xff]  }
  0x1a   : > { %856 = vmatprep.subr.bf16.mxu0 %v992_v8  ;;  %964 = vmatprep.subr.bf16.mxu1 %v992_v8  ;;  %v1041_v43 = vld [vmem:[%s1119_s9 + $0xe0] ss:$8 sps:$4 sm:$0xff]   ;;  %v1044_v45 = vld [vmem:[%s1119_s9 + $0xf4] ss:$8 sps:$4 sm:$0xff]   ;;  %v1047_v47 = vld [vmem:[%s1119_s9 + $0xf0] ss:$8 sps:$4 sm:$0xff]  }
  0x1b   : > { %v1177_v50 = vld [vmem:[%s1255_s2] ss:$0 sm:$0xff] }
  0x1d   : > { %857 = vmatpush3.bf16.msra.mxu0 %v993_v9  ;;  %972 = vmatpush3.bf16.msra.mxu1 %v993_v9 }
  0x1e   : > { %858 = vmatprep.subr.bf16.mxu0 %v994_v10  ;;  %965 = vmatprep.subr.bf16.mxu1 %v994_v10 }
  0x21   : > { %859 = vmatpush3.bf16.msra.mxu0 %v995_v13  ;;  %973 = vmatpush3.bf16.msra.mxu1 %v995_v13 }
  0x22   : > { %860 = vmatprep.subr.bf16.mxu0 %v996_v14  ;;  %966 = vmatprep.subr.bf16.mxu1 %v996_v14 }
  0x25   : > { %861 = vmatpush3.bf16.msra.mxu0 %v997_v15  ;;  %974 = vmatpush3.bf16.msra.mxu1 %v997_v15 }
  0x26   : > { %862 = vmatprep.subr.bf16.mxu0 %v998_v16  ;;  %967 = vmatprep.subr.bf16.mxu1 %v998_v16 }
  0x29   : > { %863 = vmatpush3.bf16.msra.mxu0 %v999_v17  ;;  %975 = vmatpush3.bf16.msra.mxu1 %v999_v17 }
  0x2c   : > { %538 = vmatmul.mubr.bf16.vlgmr.msra.gmra.mxu0 %v1000_v18  ;;  %602 = vmatmul.mubr.bf16.vlgmr.msra.gmra.mxu1 %v1003_v19 }
  0x2d   : > { %545 = vmatprep.mubr.bf16.mxu0 %v1006_v20  ;;  %609 = vmatprep.mubr.bf16.mxu1 %v1008_v21 }
  0x34   : > { %546 = vmatmul.mubr.bf16.gmra.mxu0 %v1010_v22  ;;  %610 = vmatmul.mubr.bf16.gmra.mxu1 %v1011_v23 }
  0x35   : > { %553 = vmatprep.mubr.bf16.mxu0 %v1012_v24  ;;  %617 = vmatprep.mubr.bf16.mxu1 %v1014_v25 }
  0x3c   : > { %554 = vmatmul.mubr.bf16.gmra.mxu0 %v1016_v26  ;;  %618 = vmatmul.mubr.bf16.gmra.mxu1 %v1017_v27 }
  0x3d   : > { %561 = vmatprep.mubr.bf16.mxu0 %v1018_v28  ;;  %625 = vmatprep.mubr.bf16.mxu1 %v1020_v29 }
  0x44   : > { %562 = vmatmul.mubr.bf16.gmra.mxu0 %v1022_v30  ;;  %626 = vmatmul.mubr.bf16.gmra.mxu1 %v1023_v31 }
  0x45   : > { %569 = vmatprep.mubr.bf16.mxu0 %v1024_v32  ;;  %633 = vmatprep.mubr.bf16.mxu1 %v1026_v33 }
  0x4c   : > { %570 = vmatmul.mubr.bf16.gmra.mxu0 %v1028_v34  ;;  %634 = vmatmul.mubr.bf16.gmra.mxu1 %v1029_v35 }
  0x4d   : > { %577 = vmatprep.mubr.bf16.mxu0 %v1030_v36  ;;  %641 = vmatprep.mubr.bf16.mxu1 %v1032_v37 }
  0x54   : > { %578 = vmatmul.mubr.bf16.gmra.mxu0 %v1034_v38  ;;  %642 = vmatmul.mubr.bf16.gmra.mxu1 %v1035_v39 }
  0x55   : > { %585 = vmatprep.mubr.bf16.mxu0 %v1036_v40  ;;  %649 = vmatprep.mubr.bf16.mxu1 %v1038_v41 }
  0x5c   : > { %586 = vmatmul.mubr.bf16.gmra.mxu0 %v1040_v42  ;;  %650 = vmatmul.mubr.bf16.gmra.mxu1 %v1041_v43 }
  0x5d   : > { %593 = vmatprep.mubr.bf16.mxu0 %v1042_v44  ;;  %657 = vmatprep.mubr.bf16.mxu1 %v1044_v45 }
  0x64   : > { %594 = vmatmul.mubr.bf16.gmra.mxu0 %v1046_v46  ;;  %658 = vmatmul.mubr.bf16.gmra.mxu1 %v1047_v47 }
  0xec   : > { %v864_v48 = vpop.f32.mrf.mxu0  ;;  %v912_v49 = vpop.f32.mrf.mxu1 }
  0xee   : > { %v865_v51 = vpop.f32.mrf.mxu0  ;;  %v913_v52 = vpop.f32.mrf.mxu1 }
  0xef   : > { %v866_v53 = vadd.f32 %v865_v51, %v864_v48  ;;  %v914_v54 = vadd.f32 %v913_v52, %v912_v49 }
  0xf0   : > { %v867_v55 = vpop.f32.mrf.mxu0  ;;  %v915_v56 = vpop.f32.mrf.mxu1 }
  0xf1   : > { %v540_v57 = vadd.f32 %v866_v53, %v1177_v50  ;;  %v604_v58 = vadd.f32 %v914_v54, %v1177_v50 }
  0xf2   : > { %v868_v59 = vpop.f32.mrf.mxu0  ;;  %v916_v60 = vpop.f32.mrf.mxu1 }
  0xf3   : > { %v666_v61 = vmax.f32 %v540_v57, 0.0  ;;  %v682_v62 = vmax.f32 %v604_v58, 0.0  ;;  %v869_v63 = vadd.f32 %v868_v59, %v867_v55  ;;  %v917_v0 = vadd.f32 %v916_v60, %v915_v56 }
  0xf4   : > { %v870_v1 = vpop.f32.mrf.mxu0  ;;  %v918_v2 = vpop.f32.mrf.mxu1 }
  0xf5   : > { %698 = vst [vmem:[%s1186_s30] sm:$0xff] %v666_v61  ;;  %714 = vst [vmem:[%s1186_s30 + $0x80] sm:$0xff] %v682_v62  ;;  %v543_v3 = vadd.f32 %v869_v63, %v1177_v50  ;;  %v607_v4 = vadd.f32 %v917_v0, %v1177_v50 }
  0xf6   : > { %v871_v5 = vpop.f32.mrf.mxu0  ;;  %v919_v6 = vpop.f32.mrf.mxu1 }
  0xf7   : > { %v667_v7 = vmax.f32 %v543_v3, 0.0  ;;  %v683_v8 = vmax.f32 %v607_v4, 0.0  ;;  %v872_v9 = vadd.f32 %v871_v5, %v870_v1  ;;  %v920_v10 = vadd.f32 %v919_v6, %v918_v2 }
  0xf8   : > { %v873_v11 = vpop.f32.mrf.mxu0  ;;  %v921_v12 = vpop.f32.mrf.mxu1 }
  0xf9   : > { %699 = vst [vmem:[%s1186_s30 + $0x8] sm:$0xff] %v667_v7  ;;  %715 = vst [vmem:[%s1186_s30 + $0x88] sm:$0xff] %v683_v8  ;;  %v548_v13 = vadd.f32 %v872_v9, %v1177_v50  ;;  %v612_v14 = vadd.f32 %v920_v10, %v1177_v50 }
  0xfa   : > { %v874_v15 = vpop.f32.mrf.mxu0  ;;  %v922_v16 = vpop.f32.mrf.mxu1 }
  0xfb   : > { %v668_v17 = vmax.f32 %v548_v13, 0.0  ;;  %v684_v18 = vmax.f32 %v612_v14, 0.0  ;;  %v875_v19 = vadd.f32 %v874_v15, %v873_v11  ;;  %v923_v20 = vadd.f32 %v922_v16, %v921_v12 }
  0xfc   : > { %v876_v21 = vpop.f32.mrf.mxu0  ;;  %v924_v22 = vpop.f32.mrf.mxu1 }
  0xfd   : > { %700 = vst [vmem:[%s1186_s30 + $0x10] sm:$0xff] %v668_v17  ;;  %716 = vst [vmem:[%s1186_s30 + $0x90] sm:$0xff] %v684_v18  ;;  %v551_v23 = vadd.f32 %v875_v19, %v1177_v50  ;;  %v615_v24 = vadd.f32 %v923_v20, %v1177_v50 }
  0xfe   : > { %v877_v25 = vpop.f32.mrf.mxu0  ;;  %v925_v26 = vpop.f32.mrf.mxu1 }
  0xff   : > { %v669_v27 = vmax.f32 %v551_v23, 0.0  ;;  %v685_v28 = vmax.f32 %v615_v24, 0.0  ;;  %v878_v29 = vadd.f32 %v877_v25, %v876_v21  ;;  %v926_v30 = vadd.f32 %v925_v26, %v924_v22 }
 0x100   : > { %v879_v31 = vpop.f32.mrf.mxu0  ;;  %v927_v32 = vpop.f32.mrf.mxu1 }
 0x101   : > { %701 = vst [vmem:[%s1186_s30 + $0x18] sm:$0xff] %v669_v27  ;;  %717 = vst [vmem:[%s1186_s30 + $0x98] sm:$0xff] %v685_v28  ;;  %v556_v33 = vadd.f32 %v878_v29, %v1177_v50  ;;  %v620_v34 = vadd.f32 %v926_v30, %v1177_v50 }
 0x102   : > { %v880_v35 = vpop.f32.mrf.mxu0  ;;  %v928_v36 = vpop.f32.mrf.mxu1 }
 0x103   : > { %v670_v37 = vmax.f32 %v556_v33, 0.0  ;;  %v686_v38 = vmax.f32 %v620_v34, 0.0  ;;  %v881_v39 = vadd.f32 %v880_v35, %v879_v31  ;;  %v929_v40 = vadd.f32 %v928_v36, %v927_v32 }
 0x104   : > { %v882_v41 = vpop.f32.mrf.mxu0  ;;  %v930_v42 = vpop.f32.mrf.mxu1 }
 0x105   : > { %702 = vst [vmem:[%s1186_s30 + $0x20] sm:$0xff] %v670_v37  ;;  %718 = vst [vmem:[%s1186_s30 + $0xa0] sm:$0xff] %v686_v38  ;;  %v559_v43 = vadd.f32 %v881_v39, %v1177_v50  ;;  %v623_v44 = vadd.f32 %v929_v40, %v1177_v50 }
 0x106   : > { %v883_v45 = vpop.f32.mrf.mxu0  ;;  %v931_v46 = vpop.f32.mrf.mxu1 }
 0x107   : > { %v671_v47 = vmax.f32 %v559_v43, 0.0  ;;  %v687_v48 = vmax.f32 %v623_v44, 0.0  ;;  %v884_v49 = vadd.f32 %v883_v45, %v882_v41  ;;  %v932_v51 = vadd.f32 %v931_v46, %v930_v42 }
 0x108   : > { %v885_v52 = vpop.f32.mrf.mxu0  ;;  %v933_v53 = vpop.f32.mrf.mxu1 }
 0x109   : > { %703 = vst [vmem:[%s1186_s30 + $0x28] sm:$0xff] %v671_v47  ;;  %719 = vst [vmem:[%s1186_s30 + $0xa8] sm:$0xff] %v687_v48  ;;  %v564_v54 = vadd.f32 %v884_v49, %v1177_v50  ;;  %v628_v55 = vadd.f32 %v932_v51, %v1177_v50 }
 0x10a   : > { %v886_v56 = vpop.f32.mrf.mxu0  ;;  %v934_v57 = vpop.f32.mrf.mxu1 }
 0x10b   : > { %v672_v58 = vmax.f32 %v564_v54, 0.0  ;;  %v688_v59 = vmax.f32 %v628_v55, 0.0  ;;  %v887_v60 = vadd.f32 %v886_v56, %v885_v52  ;;  %v935_v61 = vadd.f32 %v934_v57, %v933_v53 }
 0x10c   : > { %v888_v62 = vpop.f32.mrf.mxu0  ;;  %v936_v63 = vpop.f32.mrf.mxu1 }
 0x10d   : > { %704 = vst [vmem:[%s1186_s30 + $0x30] sm:$0xff] %v672_v58  ;;  %720 = vst [vmem:[%s1186_s30 + $0xb0] sm:$0xff] %v688_v59  ;;  %v567_v0 = vadd.f32 %v887_v60, %v1177_v50  ;;  %v631_v1 = vadd.f32 %v935_v61, %v1177_v50 }
 0x10e   : > { %v889_v2 = vpop.f32.mrf.mxu0  ;;  %v937_v3 = vpop.f32.mrf.mxu1 }
 0x10f   : > { %v673_v4 = vmax.f32 %v567_v0, 0.0  ;;  %v689_v5 = vmax.f32 %v631_v1, 0.0  ;;  %v890_v6 = vadd.f32 %v889_v2, %v888_v62  ;;  %v938_v7 = vadd.f32 %v937_v3, %v936_v63 }
 0x110   : > { %v891_v8 = vpop.f32.mrf.mxu0  ;;  %v939_v9 = vpop.f32.mrf.mxu1 }
 0x111   : > { %705 = vst [vmem:[%s1186_s30 + $0x38] sm:$0xff] %v673_v4  ;;  %721 = vst [vmem:[%s1186_s30 + $0xb8] sm:$0xff] %v689_v5  ;;  %v572_v10 = vadd.f32 %v890_v6, %v1177_v50  ;;  %v636_v11 = vadd.f32 %v938_v7, %v1177_v50 }
 0x112   : > { %v892_v12 = vpop.f32.mrf.mxu0  ;;  %v940_v13 = vpop.f32.mrf.mxu1 }
 0x113   : > { %v674_v14 = vmax.f32 %v572_v10, 0.0  ;;  %v690_v15 = vmax.f32 %v636_v11, 0.0  ;;  %v893_v16 = vadd.f32 %v892_v12, %v891_v8  ;;  %v941_v17 = vadd.f32 %v940_v13, %v939_v9 }
 0x114   : > { %v894_v18 = vpop.f32.mrf.mxu0  ;;  %v942_v19 = vpop.f32.mrf.mxu1 }
 0x115   : > { %706 = vst [vmem:[%s1186_s30 + $0x40] sm:$0xff] %v674_v14  ;;  %722 = vst [vmem:[%s1186_s30 + $0xc0] sm:$0xff] %v690_v15  ;;  %v575_v20 = vadd.f32 %v893_v16, %v1177_v50  ;;  %v639_v21 = vadd.f32 %v941_v17, %v1177_v50 }
 0x116   : > { %v895_v22 = vpop.f32.mrf.mxu0  ;;  %v943_v23 = vpop.f32.mrf.mxu1 }
 0x117   : > { %v675_v24 = vmax.f32 %v575_v20, 0.0  ;;  %v691_v25 = vmax.f32 %v639_v21, 0.0  ;;  %v896_v26 = vadd.f32 %v895_v22, %v894_v18  ;;  %v944_v27 = vadd.f32 %v943_v23, %v942_v19 }
 0x118   : > { %v897_v28 = vpop.f32.mrf.mxu0  ;;  %v945_v29 = vpop.f32.mrf.mxu1 }
 0x119   : > { %707 = vst [vmem:[%s1186_s30 + $0x48] sm:$0xff] %v675_v24  ;;  %723 = vst [vmem:[%s1186_s30 + $0xc8] sm:$0xff] %v691_v25  ;;  %v580_v30 = vadd.f32 %v896_v26, %v1177_v50  ;;  %v644_v31 = vadd.f32 %v944_v27, %v1177_v50 }
 0x11a   : > { %v898_v32 = vpop.f32.mrf.mxu0  ;;  %v946_v33 = vpop.f32.mrf.mxu1 }
 0x11b   : > { %v676_v34 = vmax.f32 %v580_v30, 0.0  ;;  %v692_v35 = vmax.f32 %v644_v31, 0.0  ;;  %v899_v36 = vadd.f32 %v898_v32, %v897_v28  ;;  %v947_v37 = vadd.f32 %v946_v33, %v945_v29 }
 0x11c   : > { %v900_v38 = vpop.f32.mrf.mxu0  ;;  %v948_v39 = vpop.f32.mrf.mxu1 }
 0x11d   : > { %708 = vst [vmem:[%s1186_s30 + $0x50] sm:$0xff] %v676_v34  ;;  %724 = vst [vmem:[%s1186_s30 + $0xd0] sm:$0xff] %v692_v35  ;;  %v583_v40 = vadd.f32 %v899_v36, %v1177_v50  ;;  %v647_v41 = vadd.f32 %v947_v37, %v1177_v50 }
 0x11e   : > { %v901_v42 = vpop.f32.mrf.mxu0  ;;  %v949_v43 = vpop.f32.mrf.mxu1 }
 0x11f   : > { %v677_v44 = vmax.f32 %v583_v40, 0.0  ;;  %v693_v45 = vmax.f32 %v647_v41, 0.0  ;;  %v902_v46 = vadd.f32 %v901_v42, %v900_v38  ;;  %v950_v47 = vadd.f32 %v949_v43, %v948_v39 }
 0x120   : > { %v903_v48 = vpop.f32.mrf.mxu0  ;;  %v951_v49 = vpop.f32.mrf.mxu1 }
 0x121   : > { %709 = vst [vmem:[%s1186_s30 + $0x58] sm:$0xff] %v677_v44  ;;  %725 = vst [vmem:[%s1186_s30 + $0xd8] sm:$0xff] %v693_v45  ;;  %v588_v51 = vadd.f32 %v902_v46, %v1177_v50  ;;  %v652_v52 = vadd.f32 %v950_v47, %v1177_v50 }
 0x122   : > { %v904_v53 = vpop.f32.mrf.mxu0  ;;  %v952_v54 = vpop.f32.mrf.mxu1 }
 0x123   : > { %v678_v55 = vmax.f32 %v588_v51, 0.0  ;;  %v694_v56 = vmax.f32 %v652_v52, 0.0  ;;  %v905_v57 = vadd.f32 %v904_v53, %v903_v48  ;;  %v953_v58 = vadd.f32 %v952_v54, %v951_v49 }
 0x124   : > { %v906_v59 = vpop.f32.mrf.mxu0  ;;  %v954_v60 = vpop.f32.mrf.mxu1 }
 0x125   : > { %710 = vst [vmem:[%s1186_s30 + $0x60] sm:$0xff] %v678_v55  ;;  %726 = vst [vmem:[%s1186_s30 + $0xe0] sm:$0xff] %v694_v56  ;;  %v591_v61 = vadd.f32 %v905_v57, %v1177_v50  ;;  %v655_v62 = vadd.f32 %v953_v58, %v1177_v50 }
 0x126   : > { %v907_v63 = vpop.f32.mrf.mxu0  ;;  %v955_v0 = vpop.f32.mrf.mxu1 }
 0x127   : > { %v679_v1 = vmax.f32 %v591_v61, 0.0  ;;  %v695_v2 = vmax.f32 %v655_v62, 0.0  ;;  %v908_v3 = vadd.f32 %v907_v63, %v906_v59  ;;  %v956_v4 = vadd.f32 %v955_v0, %v954_v60 }
 0x128   : > { %v909_v5 = vpop.f32.mrf.mxu0  ;;  %v957_v6 = vpop.f32.mrf.mxu1 }
 0x129   : > { %711 = vst [vmem:[%s1186_s30 + $0x68] sm:$0xff] %v679_v1  ;;  %727 = vst [vmem:[%s1186_s30 + $0xe8] sm:$0xff] %v695_v2  ;;  %v596_v7 = vadd.f32 %v908_v3, %v1177_v50  ;;  %v660_v8 = vadd.f32 %v956_v4, %v1177_v50 }
 0x12a   : > { %v910_v9 = vpop.f32.mrf.mxu0  ;;  %v958_v10 = vpop.f32.mrf.mxu1 }
 0x12b   : > { %v680_v11 = vmax.f32 %v596_v7, 0.0  ;;  %v696_v12 = vmax.f32 %v660_v8, 0.0  ;;  %v911_v13 = vadd.f32 %v910_v9, %v909_v5  ;;  %v959_v14 = vadd.f32 %v958_v10, %v957_v6 }
 0x12d   : > { %712 = vst [vmem:[%s1186_s30 + $0x70] sm:$0xff] %v680_v11  ;;  %728 = vst [vmem:[%s1186_s30 + $0xf0] sm:$0xff] %v696_v12  ;;  %v599_v15 = vadd.f32 %v911_v13, %v1177_v50  ;;  %v663_v16 = vadd.f32 %v959_v14, %v1177_v50 }
 0x12f   : > { %v681_v17 = vmax.f32 %v599_v15, 0.0  ;;  %v697_v18 = vmax.f32 %v663_v16, 0.0 }
 0x131   : > { %713 = vst [vmem:[%s1186_s30 + $0x78] sm:$0xff] %v681_v17  ;;  %729 = vst [vmem:[%s1186_s30 + $0xf8] sm:$0xff] %v697_v18 }
 0x132 PF: > { %s13_s12 = sadd.s32 1, %s1054_s12  }
 0x133   : > { %p10_p4 = scmp.ge.s32.totalorder %s13_s12, 4  }
 0x135   :  { %12 = sbr.rel (!%p10_p4) target bundleno = 1 (0x1), region = 62 }

// kernel: forward.5
= control target key start
LH: loop header
LB: loop body
LE: loop exit
PB: predicated region body
PF: predicated region fallthrough
CT: control target
= control target key end

     0   :  { %v1055_v36 = vlaneseq  ;;  %v10770_v37 = vmov 1966171168   ;;  %s14191_s1 = inlined_call_operand.vmem [shape: bf16[8192,256], index: 1, kind: input, shape index: {}]   ;;  %s14192_s0 = inlined_call_operand.vmem [shape: bf16[2,8192], index: 0, kind: input, shape index: {}]   ;;  %s14193_s2 = inlined_call_operand.vmem [shape: f32[1,256], index: 2, kind: input, shape index: {}]   ;;  %s14194_s3 = inlined_call_operand.vmem [shape: bf16[256,128], index: 3, kind: input, shape index: {}]   ;;  %s14195_s4 = inlined_call_operand.vmem [shape: f32[1,128], index: 4, kind: input, shape index: {}]   ;;  %s14196_s5 = inlined_call_operand.vmem [shape: f32[2,128], index: 5, kind: output, shape index: {}]  }
   0x1   :  { %v9210_v0 = vld [vmem:[%s14191_s1 + $0x74] ss:$8 sps:$4 sm:$0xff]   ;;  %v9214_v2 = vld [vmem:[%s14191_s1 + $0x70] ss:$8 sps:$4 sm:$0xff]   ;;  %v9216_v4 = vld [vmem:[%s14191_s1 + $0x64] ss:$8 sps:$4 sm:$0xff]   ;;  %v1075_v38 = vunpack.c.l.s4 %v10770_v37 }
   0x2   :  { %v9212_v1 = vld [vmem:[%s14191_s1 + $0x174] ss:$8 sps:$4 sm:$0xff]   ;;  %6649 = vmatprep.subr.bf16.mxu0 %v9210_v0  ;;  %v9215_v3 = vld [vmem:[%s14191_s1 + $0x170] ss:$8 sps:$4 sm:$0xff]   ;;  %v9218_v5 = vld [vmem:[%s14191_s1 + $0x164] ss:$8 sps:$4 sm:$0xff]  }
   0x3   :  { %6690 = vmatprep.subr.bf16.mxu1 %v9212_v1  ;;  %6650 = vmatpush1.bf16.msra.mxu0 %v9214_v2  ;;  %v9220_v6 = vld [vmem:[%s14191_s1 + $0x60] ss:$8 sps:$4 sm:$0xff]   ;;  %v9222_v8 = vld [vmem:[%s14191_s1 + $0x54] ss:$8 sps:$4 sm:$0xff]   ;;  %v9226_v10 = vld [vmem:[%s14191_s1 + $0x50] ss:$8 sps:$4 sm:$0xff]   ;;  %v1076_v43 = vunpack.c.0.s8 %v1075_v38 }
   0x4   :  { %6691 = vmatpush1.bf16.msra.mxu1 %v9215_v3  ;;  %6651 = vmatprep.subr.bf16.mxu0 %v9216_v4  ;;  %v9221_v7 = vld [vmem:[%s14191_s1 + $0x160] ss:$8 sps:$4 sm:$0xff]   ;;  %v9224_v9 = vld [vmem:[%s14191_s1 + $0x154] ss:$8 sps:$4 sm:$0xff]   ;;  %v9227_v11 = vld [vmem:[%s14191_s1 + $0x150] ss:$8 sps:$4 sm:$0xff]  }
   0x5   :  { %6692 = vmatprep.subr.bf16.mxu1 %v9218_v5  ;;  %v9228_v12 = vld [vmem:[%s14191_s1 + $0x44] ss:$8 sps:$4 sm:$0xff]   ;;  %v9232_v14 = vld [vmem:[%s14191_s1 + $0x40] ss:$8 sps:$4 sm:$0xff]   ;;  %v9234_v16 = vld [vmem:[%s14191_s1 + $0x34] ss:$8 sps:$4 sm:$0xff]  }
   0x6   :  { %v9230_v13 = vld [vmem:[%s14191_s1 + $0x144] ss:$8 sps:$4 sm:$0xff]   ;;  %v9233_v15 = vld [vmem:[%s14191_s1 + $0x140] ss:$8 sps:$4 sm:$0xff]   ;;  %v9236_v17 = vld [vmem:[%s14191_s1 + $0x134] ss:$8 sps:$4 sm:$0xff]  }
   0x7   :  { %6652 = vmatpush1.bf16.msra.mxu0 %v9220_v6  ;;  %v9238_v18 = vld [vmem:[%s14191_s1 + $0x30] ss:$8 sps:$4 sm:$0xff]   ;;  %v9240_v20 = vld [vmem:[%s14191_s1 + $0x24] ss:$8 sps:$4 sm:$0xff]   ;;  %v9244_v22 = vld [vmem:[%s14191_s1 + $0x20] ss:$8 sps:$4 sm:$0xff]  }
   0x8   :  { %6693 = vmatpush1.bf16.msra.mxu1 %v9221_v7  ;;  %6653 = vmatprep.subr.bf16.mxu0 %v9222_v8  ;;  %v9239_v19 = vld [vmem:[%s14191_s1 + $0x130] ss:$8 sps:$4 sm:$0xff]   ;;  %v9242_v21 = vld [vmem:[%s14191_s1 + $0x124] ss:$8 sps:$4 sm:$0xff]   ;;  %v9245_v23 = vld [vmem:[%s14191_s1 + $0x120] ss:$8 sps:$4 sm:$0xff]  }
   0x9   :  { %6694 = vmatprep.subr.bf16.mxu1 %v9224_v9  ;;  %v9246_v24 = vld [vmem:[%s14191_s1 + $0x14] ss:$8 sps:$4 sm:$0xff]   ;;  %v9250_v26 = vld [vmem:[%s14191_s1 + $0x10] ss:$8 sps:$4 sm:$0xff]   ;;  %v9252_v28 = vld [vmem:[%s14191_s1 + $0x4] ss:$8 sps:$4 sm:$0xff]  }
   0xa   :  { %v9248_v25 = vld [vmem:[%s14191_s1 + $0x114] ss:$8 sps:$4 sm:$0xff]   ;;  %v9251_v27 = vld [vmem:[%s14191_s1 + $0x110] ss:$8 sps:$4 sm:$0xff]   ;;  %v9254_v29 = vld [vmem:[%s14191_s1 + $0x104] ss:$8 sps:$4 sm:$0xff]  }
   0xb   :  { %6654 = vmatpush1.bf16.msra.mxu0 %v9226_v10  ;;  %v9256_v30 = vld [vmem:[%s14191_s1] ss:$8 sps:$4 sm:$0xff]   ;;  %v9258_v32 = vld [vmem:[%s14191_s1 + $0xf4] ss:$8 sps:$4 sm:$0xff]   ;;  %v9262_v34 = vld [vmem:[%s14191_s1 + $0xf0] ss:$8 sps:$4 sm:$0xff]  }
   0xc   :  { %6695 = vmatpush1.bf16.msra.mxu1 %v9227_v11  ;;  %6655 = vmatprep.subr.bf16.mxu0 %v9228_v12  ;;  %v9257_v31 = vld [vmem:[%s14191_s1 + $0x100] ss:$8 sps:$4 sm:$0xff]   ;;  %v9260_v33 = vld [vmem:[%s14191_s1 + $0x1f4] ss:$8 sps:$4 sm:$0xff]   ;;  %v9263_v35 = vld [vmem:[%s14191_s1 + $0x1f0] ss:$8 sps:$4 sm:$0xff]  }
   0xd   :  { %6696 = vmatprep.subr.bf16.mxu1 %v9230_v13  ;;  %v9264_v39 = vld [vmem:[%s14191_s1 + $0xe4] ss:$8 sps:$4 sm:$0xff]   ;;  %v9268_v41 = vld [vmem:[%s14191_s1 + $0xe0] ss:$8 sps:$4 sm:$0xff]   ;;  %v10918_v42 = vshrl.u32 %v1055_v36, 7 }
   0xe   :  { %v9266_v40 = vld [vmem:[%s14191_s1 + $0x1e4] ss:$8 sps:$4 sm:$0xff]   ;;  %v9269_v44 = vld [vmem:[%s14191_s1 + $0x1e0] ss:$8 sps:$4 sm:$0xff]   ;;  %v9270_v45 = vld [vmem:[%s14191_s1 + $0xd4] ss:$8 sps:$4 sm:$0xff]  }
   0xf   :  { %6656 = vmatpush1.bf16.msra.mxu0 %v9232_v14  ;;  %v9272_v46 = vld [vmem:[%s14191_s1 + $0x1d4] ss:$8 sps:$4 sm:$0xff]   ;;  %v9274_v47 = vld [vmem:[%s14191_s1 + $0xd0] ss:$8 sps:$4 sm:$0xff]   ;;  %v10936_v49 = vsub.s32 %v1076_v43, %v10918_v42  ;;  %v9276_v50 = vld [vmem:[%s14191_s1 + $0xc4] ss:$8 sps:$4 sm:$0xff]  }
  0x10   :  { %6697 = vmatpush1.bf16.msra.mxu1 %v9233_v15  ;;  %6657 = vmatprep.subr.bf16.mxu0 %v9234_v16  ;;  %v9275_v48 = vld [vmem:[%s14191_s1 + $0x1d0] ss:$8 sps:$4 sm:$0xff]   ;;  %v9278_v51 = vld [vmem:[%s14191_s1 + $0x1c4] ss:$8 sps:$4 sm:$0xff]   ;;  %v9280_v53 = vld [vmem:[%s14191_s1 + $0xc0] ss:$8 sps:$4 sm:$0xff]  }
  0x11   :  { %6698 = vmatprep.subr.bf16.mxu1 %v9236_v17  ;;  %v21_v52 = vld [vmem:[%s14192_s0] sm:$0xff]  ;;  %v9282_v56 = vld [vmem:[%s14191_s1 + $0xb4] ss:$8 sps:$4 sm:$0xff]   ;;  %v9286_v59 = vld [vmem:[%s14191_s1 + $0xb0] ss:$8 sps:$4 sm:$0xff]  }
  0x12   :  { %v1080_v54 = vrot.slane %v21_v52, %v10936_v49  ;;  %v9281_v55 = vld [vmem:[%s14191_s1 + $0x1c0] ss:$8 sps:$4 sm:$0xff]   ;;  %v9284_v57 = vld [vmem:[%s14191_s1 + $0x1b4] ss:$8 sps:$4 sm:$0xff]   ;;  %v9287_v61 = vld [vmem:[%s14191_s1 + $0x1b0] ss:$8 sps:$4 sm:$0xff]   ;;  %v1073_v1 = vcombine.high %v21_v52, %v21_v52 }
  0x13   :  { %6658 = vmatpush1.bf16.msra.mxu0 %v9238_v18  ;;  %v9288_v62 = vld [vmem:[%s14191_s1 + $0xa4] ss:$8 sps:$4 sm:$0xff]   ;;  %v9292_v2 = vld [vmem:[%s14191_s1 + $0xa0] ss:$8 sps:$4 sm:$0xff]   ;;  %v9294_v4 = vld [vmem:[%s14191_s1 + $0x94] ss:$8 sps:$4 sm:$0xff]  }
  0x14   :  { %6699 = vmatpush1.bf16.msra.mxu1 %v9239_v19  ;;  %6659 = vmatprep.subr.bf16.mxu0 %v9240_v20  ;;  %v1088_v58 = vcombine.high %v1080_v54, %v1080_v54  ;;  %v9290_v63 = vld [vmem:[%s14191_s1 + $0x1a4] ss:$8 sps:$4 sm:$0xff]   ;;  %v9293_v3 = vld [vmem:[%s14191_s1 + $0x1a0] ss:$8 sps:$4 sm:$0xff]   ;;  %v9296_v5 = vld [vmem:[%s14191_s1 + $0x194] ss:$8 sps:$4 sm:$0xff]   ;;  %v10986_v6 = vrot.slane %v1073_v1, %v10936_v49  ;;  %v1096_v13 = vrot.slane %v1080_v54, %v10936_v49 }
  0x15   :  { %6700 = vmatprep.subr.bf16.mxu1 %v9242_v21  ;;  %v9298_v7 = vld [vmem:[%s14191_s1 + $0x90] ss:$8 sps:$4 sm:$0xff]   ;;  %v9300_v9 = vld [vmem:[%s14191_s1 + $0x84] ss:$8 sps:$4 sm:$0xff]   ;;  %v9304_v12 = vld [vmem:[%s14191_s1 + $0x80] ss:$8 sps:$4 sm:$0xff]  }
  0x16   :  { %v1110_v60 = vrot.slane %v1088_v58, %v10936_v49  ;;  %v9299_v8 = vld [vmem:[%s14191_s1 + $0x190] ss:$8 sps:$4 sm:$0xff]   ;;  %v9302_v10 = vld [vmem:[%s14191_s1 + $0x184] ss:$8 sps:$4 sm:$0xff]   ;;  %v1089_v11 = vcombine.high %v10986_v6, %v10986_v6  ;;  %v9305_v14 = vld [vmem:[%s14191_s1 + $0x180] ss:$8 sps:$4 sm:$0xff]   ;;  %v1118_v18 = vcombine.high %v1096_v13, %v1096_v13 }
  0x17   :  { %6660 = vmatpush1.bf16.msra.mxu0 %v9244_v22  ;;  %v9309_v15 = vld [vmem:[%s14191_s1 + $0x274] ss:$8 sps:$4 sm:$0xff]   ;;  %v9307_v19 = vld [vmem:[%s14191_s1 + $0x270] ss:$8 sps:$4 sm:$0xff]   ;;  %v9315_v21 = vld [vmem:[%s14191_s1 + $0x264] ss:$8 sps:$4 sm:$0xff]  }
  0x18   :  { %6701 = vmatpush1.bf16.msra.mxu1 %v9245_v23  ;;  %6661 = vmatprep.subr.bf16.mxu0 %v9246_v24  ;;  %v1120_v0 = vcombine.high %v1110_v60, %v1110_v60  ;;  %v9312_v16 = vld [vmem:[%s14191_s1 + $0x374] ss:$8 sps:$4 sm:$0xff]   ;;  %v1117_v17 = vrot.slane %v1089_v11, %v10936_v49  ;;  %v9310_v20 = vld [vmem:[%s14191_s1 + $0x370] ss:$8 sps:$4 sm:$0xff]   ;;  %v9318_v22 = vld [vmem:[%s14191_s1 + $0x364] ss:$8 sps:$4 sm:$0xff]  }
  0x19   :  { %6702 = vmatprep.subr.bf16.mxu1 %v9248_v25  ;;  %6681 = vmatprep.mubr.bf16.mxu0 %v1110_v60  ;;  %v9313_v24 = vld [vmem:[%s14191_s1 + $0x260] ss:$8 sps:$4 sm:$0xff]   ;;  %v9331_v36 = vld [vmem:[%s14191_s1 + $0x230] ss:$8 sps:$4 sm:$0xff]   ;;  %v9339_v38 = vld [vmem:[%s14191_s1 + $0x224] ss:$8 sps:$4 sm:$0xff]  }
  0x1a   :  { %6722 = vmatprep.mubr.bf16.mxu1 %v1120_v0  ;;  %v1121_v23 = vcombine.high %v1117_v17, %v1117_v17  ;;  %v9316_v25 = vld [vmem:[%s14191_s1 + $0x360] ss:$8 sps:$4 sm:$0xff]   ;;  %v9334_v37 = vld [vmem:[%s14191_s1 + $0x330] ss:$8 sps:$4 sm:$0xff]   ;;  %v9345_v43 = vld [vmem:[%s14191_s1 + $0x214] ss:$8 sps:$4 sm:$0xff]  }
  0x1b   :  { %6662 = vmatpush1.bf16.msra.mxu0 %v9250_v26  ;;  %v9321_v26 = vld [vmem:[%s14191_s1 + $0x254] ss:$8 sps:$4 sm:$0xff]   ;;  %v9355_v54 = vld [vmem:[%s14191_s1 + $0x2f0] ss:$8 sps:$4 sm:$0xff]   ;;  %v9361_v58 = vld [vmem:[%s14191_s1 + $0x2e0] ss:$8 sps:$4 sm:$0xff]  }
  0x1c   :  { %6703 = vmatpush1.bf16.msra.mxu1 %v9251_v27  ;;  %6663 = vmatprep.subr.bf16.mxu0 %v9252_v28  ;;  %v9324_v27 = vld [vmem:[%s14191_s1 + $0x354] ss:$8 sps:$4 sm:$0xff]   ;;  %v9319_v28 = vld [vmem:[%s14191_s1 + $0x250] ss:$8 sps:$4 sm:$0xff]   ;;  %v9375_v0 = vld [vmem:[%s14191_s1 + $0x2c4] ss:$8 sps:$4 sm:$0xff]  }
  0x1d   :  { %6704 = vmatprep.subr.bf16.mxu1 %v9254_v29  ;;  %v9322_v29 = vld [vmem:[%s14191_s1 + $0x350] ss:$8 sps:$4 sm:$0xff]   ;;  %v9357_v52 = vld [vmem:[%s14191_s1 + $0x2f4] ss:$8 sps:$4 sm:$0xff]   ;;  %v9378_v1 = vld [vmem:[%s14191_s1 + $0x3c4] ss:$8 sps:$4 sm:$0xff]  }
  0x1e   :  { %v9369_v60 = vld [vmem:[%s14191_s1 + $0x2d4] ss:$8 sps:$4 sm:$0xff]   ;;  %v9385_v11 = vld [vmem:[%s14191_s1 + $0x2a0] ss:$8 sps:$4 sm:$0xff]  }
  0x1f   :  { %6664 = vmatpush1.bf16.msra.mxu0 %v9256_v30  ;;  %v9327_v30 = vld [vmem:[%s14191_s1 + $0x244] ss:$8 sps:$4 sm:$0xff]  }
  0x20   :  { %6705 = vmatpush1.bf16.msra.mxu1 %v9257_v31  ;;  %6665 = vmatprep.subr.bf16.mxu0 %v9258_v32  ;;  %v9330_v31 = vld [vmem:[%s14191_s1 + $0x344] ss:$8 sps:$4 sm:$0xff]   ;;  %v9325_v32 = vld [vmem:[%s14191_s1 + $0x240] ss:$8 sps:$4 sm:$0xff]  }
  0x21   :  { %6706 = vmatprep.subr.bf16.mxu1 %v9260_v33  ;;  %v9328_v33 = vld [vmem:[%s14191_s1 + $0x340] ss:$8 sps:$4 sm:$0xff]  }
  0x23   :  { %6666 = vmatpush2.bf16.msra.mxu0 %v9262_v34  ;;  %v9333_v34 = vld [vmem:[%s14191_s1 + $0x234] ss:$8 sps:$4 sm:$0xff]  }
  0x24   :  { %6707 = vmatpush2.bf16.msra.mxu1 %v9263_v35  ;;  %6667 = vmatprep.subr.bf16.mxu0 %v9264_v39  ;;  %v9336_v35 = vld [vmem:[%s14191_s1 + $0x334] ss:$8 sps:$4 sm:$0xff]   ;;  %v9342_v39 = vld [vmem:[%s14191_s1 + $0x324] ss:$8 sps:$4 sm:$0xff]  }
  0x25   :  { %6708 = vmatprep.subr.bf16.mxu1 %v9266_v40  ;;  %v9337_v40 = vld [vmem:[%s14191_s1 + $0x220] ss:$8 sps:$4 sm:$0xff]  }
  0x27   :  { %6668 = vmatpush2.bf16.msra.mxu0 %v9268_v41  ;;  %v9340_v41 = vld [vmem:[%s14191_s1 + $0x320] ss:$8 sps:$4 sm:$0xff]  }
  0x28   :  { %6709 = vmatpush2.bf16.msra.mxu1 %v9269_v44  ;;  %6669 = vmatprep.subr.bf16.mxu0 %v9270_v45  ;;  %v9348_v44 = vld [vmem:[%s14191_s1 + $0x314] ss:$8 sps:$4 sm:$0xff]   ;;  %v9343_v45 = vld [vmem:[%s14191_s1 + $0x210] ss:$8 sps:$4 sm:$0xff]  }
  0x29   :  { %6710 = vmatprep.subr.bf16.mxu1 %v9272_v46  ;;  %v9346_v46 = vld [vmem:[%s14191_s1 + $0x310] ss:$8 sps:$4 sm:$0xff]  }
  0x2b   :  { %6670 = vmatpush2.bf16.msra.mxu0 %v9274_v47  ;;  %v9351_v47 = vld [vmem:[%s14191_s1 + $0x204] ss:$8 sps:$4 sm:$0xff]  }
  0x2c   :  { %6711 = vmatpush2.bf16.msra.mxu1 %v9275_v48  ;;  %6671 = vmatprep.subr.bf16.mxu0 %v9276_v50  ;;  %v9354_v48 = vld [vmem:[%s14191_s1 + $0x304] ss:$8 sps:$4 sm:$0xff]   ;;  %v9349_v50 = vld [vmem:[%s14191_s1 + $0x200] ss:$8 sps:$4 sm:$0xff]  }
  0x2d   :  { %6712 = vmatprep.subr.bf16.mxu1 %v9278_v51  ;;  %v9352_v51 = vld [vmem:[%s14191_s1 + $0x300] ss:$8 sps:$4 sm:$0xff]  }
  0x2f   :  { %6672 = vmatpush2.bf16.msra.mxu0 %v9280_v53  ;;  %v9360_v53 = vld [vmem:[%s14191_s1 + $0x3f4] ss:$8 sps:$4 sm:$0xff]  }
  0x30   :  { %6713 = vmatpush2.bf16.msra.mxu1 %v9281_v55  ;;  %6673 = vmatprep.subr.bf16.mxu0 %v9282_v56  ;;  %v9358_v55 = vld [vmem:[%s14191_s1 + $0x3f0] ss:$8 sps:$4 sm:$0xff]   ;;  %v9363_v56 = vld [vmem:[%s14191_s1 + $0x2e4] ss:$8 sps:$4 sm:$0xff]  }
  0x31   :  { %6714 = vmatprep.subr.bf16.mxu1 %v9284_v57  ;;  %v9366_v57 = vld [vmem:[%s14191_s1 + $0x3e4] ss:$8 sps:$4 sm:$0xff]  }
  0x33   :  { %6674 = vmatpush2.bf16.msra.mxu0 %v9286_v59  ;;  %v9364_v59 = vld [vmem:[%s14191_s1 + $0x3e0] ss:$8 sps:$4 sm:$0xff]  }
  0x34   :  { %6715 = vmatpush2.bf16.msra.mxu1 %v9287_v61  ;;  %6675 = vmatprep.subr.bf16.mxu0 %v9288_v62  ;;  %v9372_v61 = vld [vmem:[%s14191_s1 + $0x3d4] ss:$8 sps:$4 sm:$0xff]   ;;  %v9367_v62 = vld [vmem:[%s14191_s1 + $0x2d0] ss:$8 sps:$4 sm:$0xff]  }
  0x35   :  { %6716 = vmatprep.subr.bf16.mxu1 %v9290_v63  ;;  %v9370_v63 = vld [vmem:[%s14191_s1 + $0x3d0] ss:$8 sps:$4 sm:$0xff]  }
  0x37   :  { %6676 = vmatpush2.bf16.msra.mxu0 %v9292_v2  ;;  %v9373_v2 = vld [vmem:[%s14191_s1 + $0x2c0] ss:$8 sps:$4 sm:$0xff]  }
  0x38   :  { %6717 = vmatpush2.bf16.msra.mxu1 %v9293_v3  ;;  %6677 = vmatprep.subr.bf16.mxu0 %v9294_v4  ;;  %v9376_v3 = vld [vmem:[%s14191_s1 + $0x3c0] ss:$8 sps:$4 sm:$0xff]   ;;  %v9381_v4 = vld [vmem:[%s14191_s1 + $0x2b4] ss:$8 sps:$4 sm:$0xff]  }
  0x39   :  { %6718 = vmatprep.subr.bf16.mxu1 %v9296_v5  ;;  %v9384_v5 = vld [vmem:[%s14191_s1 + $0x3b4] ss:$8 sps:$4 sm:$0xff]  }
  0x3b   :  { %6678 = vmatpush2.bf16.msra.mxu0 %v9298_v7  ;;  %v9379_v7 = vld [vmem:[%s14191_s1 + $0x2b0] ss:$8 sps:$4 sm:$0xff]  }
  0x3c   :  { %6719 = vmatpush2.bf16.msra.mxu1 %v9299_v8  ;;  %6679 = vmatprep.subr.bf16.mxu0 %v9300_v9  ;;  %v9382_v8 = vld [vmem:[%s14191_s1 + $0x3b0] ss:$8 sps:$4 sm:$0xff]   ;;  %v9387_v9 = vld [vmem:[%s14191_s1 + $0x2a4] ss:$8 sps:$4 sm:$0xff]  }
  0x3d   :  { %6720 = vmatprep.subr.bf16.mxu1 %v9302_v10  ;;  %v9390_v10 = vld [vmem:[%s14191_s1 + $0x3a4] ss:$8 sps:$4 sm:$0xff]  }
  0x3f   :  { %6680 = vmatpush2.bf16.msra.mxu0 %v9304_v12  ;;  %v9388_v12 = vld [vmem:[%s14191_s1 + $0x3a0] ss:$8 sps:$4 sm:$0xff]  }
  0x40   :  { %6721 = vmatpush2.bf16.msra.mxu1 %v9305_v14  ;;  %6731 = vmatprep.subr.bf16.mxu0 %v9309_v15  ;;  %v9396_v14 = vld [vmem:[%s14191_s1 + $0x394] ss:$8 sps:$4 sm:$0xff]   ;;  %v9391_v15 = vld [vmem:[%s14191_s1 + $0x290] ss:$8 sps:$4 sm:$0xff]  }
  0x41   :  { %6772 = vmatprep.subr.bf16.mxu1 %v9312_v16  ;;  %v9394_v16 = vld [vmem:[%s14191_s1 + $0x390] ss:$8 sps:$4 sm:$0xff]  }
  0x42   :  { %6682 = vmatmul.mubr.bf16.vlgmr.msra.gmra.mxu0 %v1096_v13  ;;  %v9393_v13 = vld [vmem:[%s14191_s1 + $0x294] ss:$8 sps:$4 sm:$0xff]  }
  0x43   :  { %6723 = vmatmul.mubr.bf16.vlgmr.msra.gmra.mxu1 %v1118_v18  ;;  %6732 = vmatpush1.bf16.msra.mxu0 %v9307_v19  ;;  %v9402_v18 = vld [vmem:[%s14191_s1 + $0x384] ss:$8 sps:$4 sm:$0xff]   ;;  %v9397_v19 = vld [vmem:[%s14191_s1 + $0x280] ss:$8 sps:$4 sm:$0xff]  }
  0x44   :  { %6773 = vmatpush1.bf16.msra.mxu1 %v9310_v20  ;;  %6733 = vmatprep.subr.bf16.mxu0 %v9315_v21  ;;  %v1103_v20 = vrot.slane %v10986_v6, %v10936_v49  ;;  %v9400_v21 = vld [vmem:[%s14191_s1 + $0x380] ss:$8 sps:$4 sm:$0xff]   ;;  %v9403_v6 = vld [vmem:[%s14191_s1 + $0x470] ss:$8 sps:$4 sm:$0xff]  }
  0x45   :  { %6774 = vmatprep.subr.bf16.mxu1 %v9318_v22  ;;  %6763 = vmatprep.mubr.bf16.mxu0 %v1117_v17  ;;  %v9399_v17 = vld [vmem:[%s14191_s1 + $0x284] ss:$8 sps:$4 sm:$0xff]   ;;  %v9405_v22 = vld [vmem:[%s14191_s1 + $0x474] ss:$8 sps:$4 sm:$0xff]  }
  0x46   :  { %6804 = vmatprep.mubr.bf16.mxu1 %v1121_v23  ;;  %v9408_v23 = vld [vmem:[%s14191_s1 + $0x574] ss:$8 sps:$4 sm:$0xff]  }
  0x47   :  { %6734 = vmatpush1.bf16.msra.mxu0 %v9313_v24  ;;  %v1119_v24 = vcombine.high %v1103_v20, %v1103_v20 }
  0x48   :  { %6775 = vmatpush1.bf16.msra.mxu1 %v9316_v25  ;;  %6735 = vmatprep.subr.bf16.mxu0 %v9321_v26  ;;  %v9406_v25 = vld [vmem:[%s14191_s1 + $0x570] ss:$8 sps:$4 sm:$0xff]   ;;  %v11219_v26 = vld [vmem:[%s14192_s0 + $0x8] sm:$0xff] }
  0x49   :  { %6776 = vmatprep.subr.bf16.mxu1 %v9324_v27  ;;  %v9411_v27 = vld [vmem:[%s14191_s1 + $0x464] ss:$8 sps:$4 sm:$0xff]  }
  0x4b   :  { %6736 = vmatpush1.bf16.msra.mxu0 %v9319_v28  ;;  %v9414_v28 = vld [vmem:[%s14191_s1 + $0x564] ss:$8 sps:$4 sm:$0xff]  }
  0x4c   :  { %6777 = vmatpush1.bf16.msra.mxu1 %v9322_v29  ;;  %6737 = vmatprep.subr.bf16.mxu0 %v9327_v30  ;;  %v11229_v29 = vrot.slane %v11219_v26, %v10936_v49 }
  0x4d   :  { %6778 = vmatprep.subr.bf16.mxu1 %v9330_v31  ;;  %v9409_v31 = vld [vmem:[%s14191_s1 + $0x460] ss:$8 sps:$4 sm:$0xff]  }
  0x4e   :  { %v1137_v30 = vcombine.high %v11229_v29, %v11229_v29 }
  0x4f   :  { %6738 = vmatpush1.bf16.msra.mxu0 %v9325_v32  ;;  %v9412_v32 = vld [vmem:[%s14191_s1 + $0x560] ss:$8 sps:$4 sm:$0xff]  }
  0x50   :  { %6779 = vmatpush1.bf16.msra.mxu1 %v9328_v33  ;;  %6739 = vmatprep.subr.bf16.mxu0 %v9333_v34  ;;  %v9417_v33 = vld [vmem:[%s14191_s1 + $0x454] ss:$8 sps:$4 sm:$0xff]  }
  0x51   :  { %6780 = vmatprep.subr.bf16.mxu1 %v9336_v35  ;;  %v9420_v34 = vld [vmem:[%s14191_s1 + $0x554] ss:$8 sps:$4 sm:$0xff]   ;;  %v1159_v35 = vrot.slane %v1137_v30, %v10936_v49 }
  0x53   :  { %6740 = vmatpush1.bf16.msra.mxu0 %v9331_v36  ;;  %v1169_v36 = vcombine.high %v1159_v35, %v1159_v35 }
  0x54   :  { %6781 = vmatpush1.bf16.msra.mxu1 %v9334_v37  ;;  %6741 = vmatprep.subr.bf16.mxu0 %v9339_v38  ;;  %v9415_v37 = vld [vmem:[%s14191_s1 + $0x450] ss:$8 sps:$4 sm:$0xff]  }
  0x55   :  { %6782 = vmatprep.subr.bf16.mxu1 %v9342_v39  ;;  %v9418_v38 = vld [vmem:[%s14191_s1 + $0x550] ss:$8 sps:$4 sm:$0xff]   ;;  %v9423_v39 = vld [vmem:[%s14191_s1 + $0x444] ss:$8 sps:$4 sm:$0xff]  }
  0x57   :  { %6742 = vmatpush1.bf16.msra.mxu0 %v9337_v40  ;;  %v9426_v40 = vld [vmem:[%s14191_s1 + $0x544] ss:$8 sps:$4 sm:$0xff]  }
  0x58   :  { %6783 = vmatpush1.bf16.msra.mxu1 %v9340_v41  ;;  %6743 = vmatprep.subr.bf16.mxu0 %v9345_v43  ;;  %v9421_v41 = vld [vmem:[%s14191_s1 + $0x440] ss:$8 sps:$4 sm:$0xff]  }
  0x59   :  { %6784 = vmatprep.subr.bf16.mxu1 %v9348_v44  ;;  %v9424_v43 = vld [vmem:[%s14191_s1 + $0x540] ss:$8 sps:$4 sm:$0xff]   ;;  %v9429_v44 = vld [vmem:[%s14191_s1 + $0x434] ss:$8 sps:$4 sm:$0xff]  }
  0x5b   :  { %6744 = vmatpush1.bf16.msra.mxu0 %v9343_v45  ;;  %v9432_v45 = vld [vmem:[%s14191_s1 + $0x534] ss:$8 sps:$4 sm:$0xff]  }
  0x5c   :  { %6785 = vmatpush1.bf16.msra.mxu1 %v9346_v46  ;;  %6745 = vmatprep.subr.bf16.mxu0 %v9351_v47  ;;  %v9427_v46 = vld [vmem:[%s14191_s1 + $0x430] ss:$8 sps:$4 sm:$0xff]  }
  0x5d   :  { %6786 = vmatprep.subr.bf16.mxu1 %v9354_v48  ;;  %v9430_v47 = vld [vmem:[%s14191_s1 + $0x530] ss:$8 sps:$4 sm:$0xff]   ;;  %v9435_v48 = vld [vmem:[%s14191_s1 + $0x424] ss:$8 sps:$4 sm:$0xff]  }
  0x5f   :  { %6746 = vmatpush1.bf16.msra.mxu0 %v9349_v50  ;;  %v9438_v50 = vld [vmem:[%s14191_s1 + $0x524] ss:$8 sps:$4 sm:$0xff]  }
  0x60   :  { %6787 = vmatpush1.bf16.msra.mxu1 %v9352_v51  ;;  %6747 = vmatprep.subr.bf16.mxu0 %v9357_v52  ;;  %v9433_v51 = vld [vmem:[%s14191_s1 + $0x420] ss:$8 sps:$4 sm:$0xff]  }
  0x61   :  { %6788 = vmatprep.subr.bf16.mxu1 %v9360_v53  ;;  %v9436_v52 = vld [vmem:[%s14191_s1 + $0x520] ss:$8 sps:$4 sm:$0xff]   ;;  %v9441_v53 = vld [vmem:[%s14191_s1 + $0x414] ss:$8 sps:$4 sm:$0xff]  }
  0x63   :  { %6748 = vmatpush2.bf16.msra.mxu0 %v9355_v54  ;;  %v9444_v54 = vld [vmem:[%s14191_s1 + $0x514] ss:$8 sps:$4 sm:$0xff]  }
  0x64   :  { %6789 = vmatpush2.bf16.msra.mxu1 %v9358_v55  ;;  %6749 = vmatprep.subr.bf16.mxu0 %v9363_v56  ;;  %v9439_v55 = vld [vmem:[%s14191_s1 + $0x410] ss:$8 sps:$4 sm:$0xff]  }
  0x65   :  { %6790 = vmatprep.subr.bf16.mxu1 %v9366_v57  ;;  %v9442_v56 = vld [vmem:[%s14191_s1 + $0x510] ss:$8 sps:$4 sm:$0xff]   ;;  %v9447_v57 = vld [vmem:[%s14191_s1 + $0x404] ss:$8 sps:$4 sm:$0xff]  }
  0x67   :  { %6750 = vmatpush2.bf16.msra.mxu0 %v9361_v58  ;;  %v9450_v58 = vld [vmem:[%s14191_s1 + $0x504] ss:$8 sps:$4 sm:$0xff]  }
  0x68   :  { %6791 = vmatpush2.bf16.msra.mxu1 %v9364_v59  ;;  %6751 = vmatprep.subr.bf16.mxu0 %v9369_v60  ;;  %v9445_v59 = vld [vmem:[%s14191_s1 + $0x400] ss:$8 sps:$4 sm:$0xff]  }
  0x69   :  { %6792 = vmatprep.subr.bf16.mxu1 %v9372_v61  ;;  %v9448_v60 = vld [vmem:[%s14191_s1 + $0x500] ss:$8 sps:$4 sm:$0xff]   ;;  %v9453_v61 = vld [vmem:[%s14191_s1 + $0x4f4] ss:$8 sps:$4 sm:$0xff]  }
  0x6b   :  { %6752 = vmatpush2.bf16.msra.mxu0 %v9367_v62  ;;  %v9456_v62 = vld [vmem:[%s14191_s1 + $0x5f4] ss:$8 sps:$4 sm:$0xff]  }
  0x6c   :  { %6793 = vmatpush2.bf16.msra.mxu1 %v9370_v63  ;;  %6753 = vmatprep.subr.bf16.mxu0 %v9375_v0  ;;  %v9451_v63 = vld [vmem:[%s14191_s1 + $0x4f0] ss:$8 sps:$4 sm:$0xff]  }
  0x6d   :  { %6794 = vmatprep.subr.bf16.mxu1 %v9378_v1  ;;  %v9454_v0 = vld [vmem:[%s14191_s1 + $0x5f0] ss:$8 sps:$4 sm:$0xff]   ;;  %v9459_v1 = vld [vmem:[%s14191_s1 + $0x4e4] ss:$8 sps:$4 sm:$0xff]  }
  0x6f   :  { %6754 = vmatpush2.bf16.msra.mxu0 %v9373_v2  ;;  %v9462_v2 = vld [vmem:[%s14191_s1 + $0x5e4] ss:$8 sps:$4 sm:$0xff]  }
  0x70   :  { %6795 = vmatpush2.bf16.msra.mxu1 %v9376_v3  ;;  %6755 = vmatprep.subr.bf16.mxu0 %v9381_v4  ;;  %v9457_v3 = vld [vmem:[%s14191_s1 + $0x4e0] ss:$8 sps:$4 sm:$0xff]  }
  0x71   :  { %6796 = vmatprep.subr.bf16.mxu1 %v9384_v5  ;;  %v9460_v4 = vld [vmem:[%s14191_s1 + $0x5e0] ss:$8 sps:$4 sm:$0xff]   ;;  %v9465_v5 = vld [vmem:[%s14191_s1 + $0x4d4] ss:$8 sps:$4 sm:$0xff]  }
  0x73   :  { %6756 = vmatpush2.bf16.msra.mxu0 %v9379_v7  ;;  %v9468_v7 = vld [vmem:[%s14191_s1 + $0x5d4] ss:$8 sps:$4 sm:$0xff]  }
  0x74   :  { %6797 = vmatpush2.bf16.msra.mxu1 %v9382_v8  ;;  %6757 = vmatprep.subr.bf16.mxu0 %v9387_v9  ;;  %v9463_v8 = vld [vmem:[%s14191_s1 + $0x4d0] ss:$8 sps:$4 sm:$0xff]  }
  0x75   :  { %6798 = vmatprep.subr.bf16.mxu1 %v9390_v10  ;;  %v9466_v9 = vld [vmem:[%s14191_s1 + $0x5d0] ss:$8 sps:$4 sm:$0xff]   ;;  %v9471_v10 = vld [vmem:[%s14191_s1 + $0x4c4] ss:$8 sps:$4 sm:$0xff]  }
  0x77   :  { %6758 = vmatpush2.bf16.msra.mxu0 %v9385_v11  ;;  %v9474_v11 = vld [vmem:[%s14191_s1 + $0x5c4] ss:$8 sps:$4 sm:$0xff]  }
  0x78   :  { %6799 = vmatpush2.bf16.msra.mxu1 %v9388_v12  ;;  %6759 = vmatprep.subr.bf16.mxu0 %v9393_v13  ;;  %v9469_v12 = vld [vmem:[%s14191_s1 + $0x4c0] ss:$8 sps:$4 sm:$0xff]  }
  0x79   :  { %6800 = vmatprep.subr.bf16.mxu1 %v9396_v14  ;;  %v9472_v13 = vld [vmem:[%s14191_s1 + $0x5c0] ss:$8 sps:$4 sm:$0xff]   ;;  %v9477_v14 = vld [vmem:[%s14191_s1 + $0x4b4] ss:$8 sps:$4 sm:$0xff]  }
  0x7b   :  { %6760 = vmatpush2.bf16.msra.mxu0 %v9391_v15  ;;  %v9480_v15 = vld [vmem:[%s14191_s1 + $0x5b4] ss:$8 sps:$4 sm:$0xff]  }
  0x7c   :  { %6801 = vmatpush2.bf16.msra.mxu1 %v9394_v16  ;;  %6761 = vmatprep.subr.bf16.mxu0 %v9399_v17  ;;  %v9475_v16 = vld [vmem:[%s14191_s1 + $0x4b0] ss:$8 sps:$4 sm:$0xff]  }
  0x7d   :  { %6802 = vmatprep.subr.bf16.mxu1 %v9402_v18  ;;  %v9478_v17 = vld [vmem:[%s14191_s1 + $0x5b0] ss:$8 sps:$4 sm:$0xff]   ;;  %v9483_v18 = vld [vmem:[%s14191_s1 + $0x4a4] ss:$8 sps:$4 sm:$0xff]  }
  0x7f   :  { %6762 = vmatpush2.bf16.msra.mxu0 %v9397_v19  ;;  %v9486_v19 = vld [vmem:[%s14191_s1 + $0x5a4] ss:$8 sps:$4 sm:$0xff]  }
  0x80   :  { %6803 = vmatpush2.bf16.msra.mxu1 %v9400_v21  ;;  %6813 = vmatprep.subr.bf16.mxu0 %v9405_v22  ;;  %v9481_v21 = vld [vmem:[%s14191_s1 + $0x4a0] ss:$8 sps:$4 sm:$0xff]  }
  0x81   :  { %6854 = vmatprep.subr.bf16.mxu1 %v9408_v23  ;;  %v9484_v22 = vld [vmem:[%s14191_s1 + $0x5a0] ss:$8 sps:$4 sm:$0xff]   ;;  %v9489_v23 = vld [vmem:[%s14191_s1 + $0x494] ss:$8 sps:$4 sm:$0xff]  }
  0x82   :  { %6764 = vmatmul.mubr.bf16.vlgmr.msra.gmra.mxu0 %v1103_v20  ;;  %v1122_v20 = vcombine.high %v11219_v26, %v11219_v26  ;;  %v9490_v26 = vld [vmem:[%s14191_s1 + $0x590] ss:$8 sps:$4 sm:$0xff]  }
  0x83   :  { %6805 = vmatmul.mubr.bf16.vlgmr.msra.gmra.mxu1 %v1119_v24  ;;  %6814 = vmatpush1.bf16.msra.mxu0 %v9403_v6  ;;  %v9492_v24 = vld [vmem:[%s14191_s1 + $0x594] ss:$8 sps:$4 sm:$0xff]  }
  0x84   :  { %6855 = vmatpush1.bf16.msra.mxu1 %v9406_v25  ;;  %6815 = vmatprep.subr.bf16.mxu0 %v9411_v27  ;;  %v11393_v6 = vrot.slane %v1122_v20, %v10936_v49  ;;  %v9487_v25 = vld [vmem:[%s14191_s1 + $0x490] ss:$8 sps:$4 sm:$0xff]   ;;  %v9495_v27 = vld [vmem:[%s14191_s1 + $0x484] ss:$8 sps:$4 sm:$0xff]  }
  0x85   :  { %6856 = vmatprep.subr.bf16.mxu1 %v9414_v28  ;;  %6845 = vmatprep.mubr.bf16.mxu0 %v1159_v35  ;;  %v9498_v28 = vld [vmem:[%s14191_s1 + $0x584] ss:$8 sps:$4 sm:$0xff]   ;;  %v9504_v35 = vld [vmem:[%s14191_s1 + $0x774] ss:$8 sps:$4 sm:$0xff]  }
  0x86   :  { %6886 = vmatprep.mubr.bf16.mxu1 %v1169_v36  ;;  %v1138_v30 = vcombine.high %v11393_v6, %v11393_v6  ;;  %v9570_v20 = vld [vmem:[%s14191_s1 + $0x7c4] ss:$8 sps:$4 sm:$0xff]  }
  0x87   :  { %6816 = vmatpush1.bf16.msra.mxu0 %v9409_v31  ;;  %v9493_v31 = vld [vmem:[%s14191_s1 + $0x480] ss:$8 sps:$4 sm:$0xff]  }
  0x88   :  { %6857 = vmatpush1.bf16.msra.mxu1 %v9412_v32  ;;  %6817 = vmatprep.subr.bf16.mxu0 %v9417_v33  ;;  %v1145_v32 = vrot.slane %v11229_v29, %v10936_v49  ;;  %v9496_v33 = vld [vmem:[%s14191_s1 + $0x580] ss:$8 sps:$4 sm:$0xff]   ;;  %v1166_v36 = vrot.slane %v1138_v30, %v10936_v49  ;;  %v9499_v29 = vld [vmem:[%s14191_s1 + $0x670] ss:$8 sps:$4 sm:$0xff]  }
  0x89   :  { %6858 = vmatprep.subr.bf16.mxu1 %v9420_v34  ;;  %v9501_v34 = vld [vmem:[%s14191_s1 + $0x674] ss:$8 sps:$4 sm:$0xff]   ;;  %v9577_v30 = vld [vmem:[%s14191_s1 + $0x6a0] ss:$8 sps:$4 sm:$0xff]  }
  0x8b   :  { %6818 = vmatpush1.bf16.msra.mxu0 %v9415_v37  ;;  %v1167_v37 = vcombine.high %v1145_v32, %v1145_v32 }
  0x8c   :  { %6859 = vmatpush1.bf16.msra.mxu1 %v9418_v38  ;;  %6819 = vmatprep.subr.bf16.mxu0 %v9423_v39  ;;  %v9502_v38 = vld [vmem:[%s14191_s1 + $0x770] ss:$8 sps:$4 sm:$0xff]   ;;  %v9507_v39 = vld [vmem:[%s14191_s1 + $0x664] ss:$8 sps:$4 sm:$0xff]  }
  0x8d   :  { %6860 = vmatprep.subr.bf16.mxu1 %v9426_v40  ;;  %v9510_v40 = vld [vmem:[%s14191_s1 + $0x764] ss:$8 sps:$4 sm:$0xff]  }
  0x8f   :  { %6820 = vmatpush1.bf16.msra.mxu0 %v9421_v41  ;;  %v1170_v41 = vcombine.high %v1166_v36, %v1166_v36 }
  0x90   :  { %6861 = vmatpush1.bf16.msra.mxu1 %v9424_v43  ;;  %6821 = vmatprep.subr.bf16.mxu0 %v9429_v44  ;;  %v9505_v43 = vld [vmem:[%s14191_s1 + $0x660] ss:$8 sps:$4 sm:$0xff]  }
  0x91   :  { %6862 = vmatprep.subr.bf16.mxu1 %v9432_v45  ;;  %v9508_v44 = vld [vmem:[%s14191_s1 + $0x760] ss:$8 sps:$4 sm:$0xff]   ;;  %v9513_v45 = vld [vmem:[%s14191_s1 + $0x654] ss:$8 sps:$4 sm:$0xff]  }
  0x93   :  { %6822 = vmatpush1.bf16.msra.mxu0 %v9427_v46  ;;  %v9516_v46 = vld [vmem:[%s14191_s1 + $0x754] ss:$8 sps:$4 sm:$0xff]  }
  0x94   :  { %6863 = vmatpush1.bf16.msra.mxu1 %v9430_v47  ;;  %6823 = vmatprep.subr.bf16.mxu0 %v9435_v48  ;;  %v9511_v47 = vld [vmem:[%s14191_s1 + $0x650] ss:$8 sps:$4 sm:$0xff]  }
  0x95   :  { %6864 = vmatprep.subr.bf16.mxu1 %v9438_v50  ;;  %v9514_v48 = vld [vmem:[%s14191_s1 + $0x750] ss:$8 sps:$4 sm:$0xff]   ;;  %v9519_v50 = vld [vmem:[%s14191_s1 + $0x644] ss:$8 sps:$4 sm:$0xff]  }
  0x97   :  { %6824 = vmatpush1.bf16.msra.mxu0 %v9433_v51  ;;  %v9522_v51 = vld [vmem:[%s14191_s1 + $0x744] ss:$8 sps:$4 sm:$0xff]  }
  0x98   :  { %6865 = vmatpush1.bf16.msra.mxu1 %v9436_v52  ;;  %6825 = vmatprep.subr.bf16.mxu0 %v9441_v53  ;;  %v9517_v52 = vld [vmem:[%s14191_s1 + $0x640] ss:$8 sps:$4 sm:$0xff]  }
  0x99   :  { %6866 = vmatprep.subr.bf16.mxu1 %v9444_v54  ;;  %v9520_v53 = vld [vmem:[%s14191_s1 + $0x740] ss:$8 sps:$4 sm:$0xff]   ;;  %v9525_v54 = vld [vmem:[%s14191_s1 + $0x634] ss:$8 sps:$4 sm:$0xff]  }
  0x9b   :  { %6826 = vmatpush1.bf16.msra.mxu0 %v9439_v55  ;;  %v9528_v55 = vld [vmem:[%s14191_s1 + $0x734] ss:$8 sps:$4 sm:$0xff]  }
  0x9c   :  { %6867 = vmatpush1.bf16.msra.mxu1 %v9442_v56  ;;  %6827 = vmatprep.subr.bf16.mxu0 %v9447_v57  ;;  %v9523_v56 = vld [vmem:[%s14191_s1 + $0x630] ss:$8 sps:$4 sm:$0xff]  }
  0x9d   :  { %6868 = vmatprep.subr.bf16.mxu1 %v9450_v58  ;;  %v9526_v57 = vld [vmem:[%s14191_s1 + $0x730] ss:$8 sps:$4 sm:$0xff]   ;;  %v9531_v58 = vld [vmem:[%s14191_s1 + $0x624] ss:$8 sps:$4 sm:$0xff]  }
  0x9f   :  { %6828 = vmatpush1.bf16.msra.mxu0 %v9445_v59  ;;  %v9534_v59 = vld [vmem:[%s14191_s1 + $0x724] ss:$8 sps:$4 sm:$0xff]  }
  0xa0   :  { %6869 = vmatpush1.bf16.msra.mxu1 %v9448_v60  ;;  %6829 = vmatprep.subr.bf16.mxu0 %v9453_v61  ;;  %v9529_v60 = vld [vmem:[%s14191_s1 + $0x620] ss:$8 sps:$4 sm:$0xff]  }
  0xa1   :  { %6870 = vmatprep.subr.bf16.mxu1 %v9456_v62  ;;  %v9532_v61 = vld [vmem:[%s14191_s1 + $0x720] ss:$8 sps:$4 sm:$0xff]   ;;  %v9537_v62 = vld [vmem:[%s14191_s1 + $0x614] ss:$8 sps:$4 sm:$0xff]  }
  0xa3   :  { %6830 = vmatpush2.bf16.msra.mxu0 %v9451_v63  ;;  %v9540_v63 = vld [vmem:[%s14191_s1 + $0x714] ss:$8 sps:$4 sm:$0xff]  }
  0xa4   :  { %6871 = vmatpush2.bf16.msra.mxu1 %v9454_v0  ;;  %6831 = vmatprep.subr.bf16.mxu0 %v9459_v1  ;;  %v9535_v0 = vld [vmem:[%s14191_s1 + $0x610] ss:$8 sps:$4 sm:$0xff]  }
  0xa5   :  { %6872 = vmatprep.subr.bf16.mxu1 %v9462_v2  ;;  %v9538_v1 = vld [vmem:[%s14191_s1 + $0x710] ss:$8 sps:$4 sm:$0xff]   ;;  %v9543_v2 = vld [vmem:[%s14191_s1 + $0x604] ss:$8 sps:$4 sm:$0xff]  }
  0xa7   :  { %6832 = vmatpush2.bf16.msra.mxu0 %v9457_v3  ;;  %v9546_v3 = vld [vmem:[%s14191_s1 + $0x704] ss:$8 sps:$4 sm:$0xff]  }
  0xa8   :  { %6873 = vmatpush2.bf16.msra.mxu1 %v9460_v4  ;;  %6833 = vmatprep.subr.bf16.mxu0 %v9465_v5  ;;  %v9541_v4 = vld [vmem:[%s14191_s1 + $0x600] ss:$8 sps:$4 sm:$0xff]  }
  0xa9   :  { %6874 = vmatprep.subr.bf16.mxu1 %v9468_v7  ;;  %v9544_v5 = vld [vmem:[%s14191_s1 + $0x700] ss:$8 sps:$4 sm:$0xff]   ;;  %v9549_v7 = vld [vmem:[%s14191_s1 + $0x6f4] ss:$8 sps:$4 sm:$0xff]  }
  0xab   :  { %6834 = vmatpush2.bf16.msra.mxu0 %v9463_v8  ;;  %v9552_v8 = vld [vmem:[%s14191_s1 + $0x7f4] ss:$8 sps:$4 sm:$0xff]  }
  0xac   :  { %6875 = vmatpush2.bf16.msra.mxu1 %v9466_v9  ;;  %6835 = vmatprep.subr.bf16.mxu0 %v9471_v10  ;;  %v9547_v9 = vld [vmem:[%s14191_s1 + $0x6f0] ss:$8 sps:$4 sm:$0xff]  }
  0xad   :  { %6876 = vmatprep.subr.bf16.mxu1 %v9474_v11  ;;  %v9550_v10 = vld [vmem:[%s14191_s1 + $0x7f0] ss:$8 sps:$4 sm:$0xff]   ;;  %v9555_v11 = vld [vmem:[%s14191_s1 + $0x6e4] ss:$8 sps:$4 sm:$0xff]  }
  0xaf   :  { %6836 = vmatpush2.bf16.msra.mxu0 %v9469_v12  ;;  %v9558_v12 = vld [vmem:[%s14191_s1 + $0x7e4] ss:$8 sps:$4 sm:$0xff]  }
  0xb0   :  { %6877 = vmatpush2.bf16.msra.mxu1 %v9472_v13  ;;  %6837 = vmatprep.subr.bf16.mxu0 %v9477_v14  ;;  %v9553_v13 = vld [vmem:[%s14191_s1 + $0x6e0] ss:$8 sps:$4 sm:$0xff]  }
  0xb1   :  { %6878 = vmatprep.subr.bf16.mxu1 %v9480_v15  ;;  %v9556_v14 = vld [vmem:[%s14191_s1 + $0x7e0] ss:$8 sps:$4 sm:$0xff]   ;;  %v9561_v15 = vld [vmem:[%s14191_s1 + $0x6d4] ss:$8 sps:$4 sm:$0xff]  }
  0xb3   :  { %6838 = vmatpush2.bf16.msra.mxu0 %v9475_v16  ;;  %v9564_v16 = vld [vmem:[%s14191_s1 + $0x7d4] ss:$8 sps:$4 sm:$0xff]  }
  0xb4   :  { %6879 = vmatpush2.bf16.msra.mxu1 %v9478_v17  ;;  %6839 = vmatprep.subr.bf16.mxu0 %v9483_v18  ;;  %v9559_v17 = vld [vmem:[%s14191_s1 + $0x6d0] ss:$8 sps:$4 sm:$0xff]  }
  0xb5   :  { %6880 = vmatprep.subr.bf16.mxu1 %v9486_v19  ;;  %v9562_v18 = vld [vmem:[%s14191_s1 + $0x7d0] ss:$8 sps:$4 sm:$0xff]   ;;  %v9567_v19 = vld [vmem:[%s14191_s1 + $0x6c4] ss:$8 sps:$4 sm:$0xff]  }
  0xb7   :  { %6840 = vmatpush2.bf16.msra.mxu0 %v9481_v21  ;;  %v9565_v21 = vld [vmem:[%s14191_s1 + $0x6c0] ss:$8 sps:$4 sm:$0xff]  }
  0xb8   :  { %6881 = vmatpush2.bf16.msra.mxu1 %v9484_v22  ;;  %6841 = vmatprep.subr.bf16.mxu0 %v9489_v23  ;;  %v9568_v22 = vld [vmem:[%s14191_s1 + $0x7c0] ss:$8 sps:$4 sm:$0xff]   ;;  %v9573_v23 = vld [vmem:[%s14191_s1 + $0x6b4] ss:$8 sps:$4 sm:$0xff]  }
  0xb9   :  { %6882 = vmatprep.subr.bf16.mxu1 %v9492_v24  ;;  %v9576_v24 = vld [vmem:[%s14191_s1 + $0x7b4] ss:$8 sps:$4 sm:$0xff]  }
  0xbb   :  { %6842 = vmatpush2.bf16.msra.mxu0 %v9487_v25  ;;  %v9571_v25 = vld [vmem:[%s14191_s1 + $0x6b0] ss:$8 sps:$4 sm:$0xff]  }
  0xbc   :  { %6883 = vmatpush2.bf16.msra.mxu1 %v9490_v26  ;;  %6843 = vmatprep.subr.bf16.mxu0 %v9495_v27  ;;  %v9574_v26 = vld [vmem:[%s14191_s1 + $0x7b0] ss:$8 sps:$4 sm:$0xff]   ;;  %v9579_v27 = vld [vmem:[%s14191_s1 + $0x6a4] ss:$8 sps:$4 sm:$0xff]  }
  0xbd   :  { %6884 = vmatprep.subr.bf16.mxu1 %v9498_v28  ;;  %v9582_v28 = vld [vmem:[%s14191_s1 + $0x7a4] ss:$8 sps:$4 sm:$0xff]  }
  0xbf   :  { %6844 = vmatpush2.bf16.msra.mxu0 %v9493_v31  ;;  %v9580_v31 = vld [vmem:[%s14191_s1 + $0x7a0] ss:$8 sps:$4 sm:$0xff]  }
  0xc0   :  { %6885 = vmatpush2.bf16.msra.mxu1 %v9496_v33  ;;  %6895 = vmatprep.subr.bf16.mxu0 %v9501_v34  ;;  %v9585_v33 = vld [vmem:[%s14191_s1 + $0x694] ss:$8 sps:$4 sm:$0xff]  }
  0xc1   :  { %6936 = vmatprep.subr.bf16.mxu1 %v9504_v35  ;;  %v9588_v34 = vld [vmem:[%s14191_s1 + $0x794] ss:$8 sps:$4 sm:$0xff]  }
  0xc2   :  { %6846 = vmatmul.mubr.bf16.vlgmr.msra.gmra.mxu0 %v1145_v32  ;;  %v11589_v32 = vld [vmem:[%s14192_s0 + $0x10] sm:$0xff] }
  0xc3   :  { %6887 = vmatmul.mubr.bf16.vlgmr.msra.gmra.mxu1 %v1167_v37  ;;  %6896 = vmatpush1.bf16.msra.mxu0 %v9499_v29  ;;  %v11599_v35 = vrot.slane %v11589_v32, %v10936_v49  ;;  %v9586_v37 = vld [vmem:[%s14191_s1 + $0x790] ss:$8 sps:$4 sm:$0xff]   ;;  %v9591_v29 = vld [vmem:[%s14191_s1 + $0x684] ss:$8 sps:$4 sm:$0xff]  }
  0xc4   :  { %6937 = vmatpush1.bf16.msra.mxu1 %v9502_v38  ;;  %6897 = vmatprep.subr.bf16.mxu0 %v9507_v39  ;;  %v9594_v38 = vld [vmem:[%s14191_s1 + $0x784] ss:$8 sps:$4 sm:$0xff]   ;;  %v9589_v39 = vld [vmem:[%s14191_s1 + $0x680] ss:$8 sps:$4 sm:$0xff]  }
  0xc5   :  { %6938 = vmatprep.subr.bf16.mxu1 %v9510_v40  ;;  %6927 = vmatprep.mubr.bf16.mxu0 %v1166_v36  ;;  %v9583_v36 = vld [vmem:[%s14191_s1 + $0x690] ss:$8 sps:$4 sm:$0xff]   ;;  %v1186_v40 = vcombine.high %v11599_v35, %v11599_v35 }
  0xc6   :  { %6968 = vmatprep.mubr.bf16.mxu1 %v1170_v41  ;;  %v9592_v41 = vld [vmem:[%s14191_s1 + $0x780] ss:$8 sps:$4 sm:$0xff]  }
  0xc7   :  { %6898 = vmatpush1.bf16.msra.mxu0 %v9505_v43  ;;  %v1053_v43 = vld [vmem:[%s14193_s2] sm:$0x3] }
  0xc8   :  { %6939 = vmatpush1.bf16.msra.mxu1 %v9508_v44  ;;  %6899 = vmatprep.subr.bf16.mxu0 %v9513_v45  ;;  %v1152_v44 = vrot.slane %v11393_v6, %v10936_v49  ;;  %v1057_v45 = vsub.s32 0, %v10918_v42  ;;  %v9596_v6 = vld [vmem:[%s14191_s1 + $0x870] ss:$8 sps:$4 sm:$0xff]  }
  0xc9   :  { %6940 = vmatprep.subr.bf16.mxu1 %v9516_v46  ;;  %v9598_v46 = vld [vmem:[%s14191_s1 + $0x874] ss:$8 sps:$4 sm:$0xff]  }
  0xcb   :  { %6900 = vmatpush1.bf16.msra.mxu0 %v9511_v47  ;;  %v9601_v47 = vld [vmem:[%s14191_s1 + $0x974] ss:$8 sps:$4 sm:$0xff]  }
  0xcc   :  { %6941 = vmatpush1.bf16.msra.mxu1 %v9514_v48  ;;  %6901 = vmatprep.subr.bf16.mxu0 %v9519_v50  ;;  %v1061_v48 = vsub.s32 1, %v10918_v42  ;;  %v1208_v50 = vrot.slane %v1186_v40, %v10936_v49  ;;  %v9607_v42 = vld [vmem:[%s14191_s1 + $0x964] ss:$8 sps:$4 sm:$0xff]   ;;  %v9650_v40 = vld [vmem:[%s14191_s1 + $0x8e0] ss:$8 sps:$4 sm:$0xff]  }
  0xcd   :  { %6942 = vmatprep.subr.bf16.mxu1 %v9522_v51  ;;  %v1168_v51 = vcombine.high %v1152_v44, %v1152_v44 }
  0xcf   :  { %6902 = vmatpush1.bf16.msra.mxu0 %v9517_v52  ;;  %v9599_v52 = vld [vmem:[%s14191_s1 + $0x970] ss:$8 sps:$4 sm:$0xff]  }
  0xd0   :  { %6943 = vmatpush1.bf16.msra.mxu1 %v9520_v53  ;;  %6903 = vmatprep.subr.bf16.mxu0 %v9525_v54  ;;  %v1058_v53 = vrot.slane %v1053_v43, %v1057_v45  ;;  %v9604_v54 = vld [vmem:[%s14191_s1 + $0x864] ss:$8 sps:$4 sm:$0xff]   ;;  %v9656_v45 = vld [vmem:[%s14191_s1 + $0x8d0] ss:$8 sps:$4 sm:$0xff]  }
  0xd1   :  { %6944 = vmatprep.subr.bf16.mxu1 %v9528_v55  ;;  %v1062_v55 = vrot.slane %v1053_v43, %v1061_v48  ;;  %v9658_v43 = vld [vmem:[%s14191_s1 + $0x8d4] ss:$8 sps:$4 sm:$0xff]   ;;  %v9667_v48 = vld [vmem:[%s14191_s1 + $0x9c4] ss:$8 sps:$4 sm:$0xff]  }
  0xd3   :  { %6904 = vmatpush1.bf16.msra.mxu0 %v9523_v56  ;;  %v1218_v56 = vcombine.high %v1208_v50, %v1208_v50 }
  0xd4   :  { %6945 = vmatpush1.bf16.msra.mxu1 %v9526_v57  ;;  %6905 = vmatprep.subr.bf16.mxu0 %v9531_v58 }
  0xd5   :  { %6946 = vmatprep.subr.bf16.mxu1 %v9534_v59  ;;  %v9602_v59 = vld [vmem:[%s14191_s1 + $0x860] ss:$8 sps:$4 sm:$0xff]  }
  0xd7   :  { %6906 = vmatpush1.bf16.msra.mxu0 %v9529_v60  ;;  %v9605_v60 = vld [vmem:[%s14191_s1 + $0x960] ss:$8 sps:$4 sm:$0xff]  }
  0xd8   :  { %6947 = vmatpush1.bf16.msra.mxu1 %v9532_v61  ;;  %6907 = vmatprep.subr.bf16.mxu0 %v9537_v62 }
  0xd9   :  { %6948 = vmatprep.subr.bf16.mxu1 %v9540_v63 }
  0xdb   :  { %6908 = vmatpush1.bf16.msra.mxu0 %v9535_v0  ;;  %v9610_v0 = vld [vmem:[%s14191_s1 + $0x854] ss:$8 sps:$4 sm:$0xff]  }
  0xdc   :  { %6949 = vmatpush1.bf16.msra.mxu1 %v9538_v1  ;;  %6909 = vmatprep.subr.bf16.mxu0 %v9543_v2  ;;  %v9613_v1 = vld [vmem:[%s14191_s1 + $0x954] ss:$8 sps:$4 sm:$0xff]  }
  0xdd   :  { %6950 = vmatprep.subr.bf16.mxu1 %v9546_v3 }
  0xdf   :  { %6910 = vmatpush1.bf16.msra.mxu0 %v9541_v4  ;;  %v9608_v4 = vld [vmem:[%s14191_s1 + $0x850] ss:$8 sps:$4 sm:$0xff]  }
  0xe0   :  { %6951 = vmatpush1.bf16.msra.mxu1 %v9544_v5  ;;  %6911 = vmatprep.subr.bf16.mxu0 %v9549_v7  ;;  %v9611_v5 = vld [vmem:[%s14191_s1 + $0x950] ss:$8 sps:$4 sm:$0xff]  }
  0xe1   :  { %6952 = vmatprep.subr.bf16.mxu1 %v9552_v8 }
  0xe3   :  { %6912 = vmatpush2.bf16.msra.mxu0 %v9547_v9 }
  0xe4   :  { %6953 = vmatpush2.bf16.msra.mxu1 %v9550_v10  ;;  %6913 = vmatprep.subr.bf16.mxu0 %v9555_v11 }
  0xe5   :  { %6954 = vmatprep.subr.bf16.mxu1 %v9558_v12  ;;  %v9616_v12 = vld [vmem:[%s14191_s1 + $0x844] ss:$8 sps:$4 sm:$0xff]  }
  0xe7   :  { %6914 = vmatpush2.bf16.msra.mxu0 %v9553_v13  ;;  %v9619_v13 = vld [vmem:[%s14191_s1 + $0x944] ss:$8 sps:$4 sm:$0xff]  }
  0xe8   :  { %6955 = vmatpush2.bf16.msra.mxu1 %v9556_v14  ;;  %6915 = vmatprep.subr.bf16.mxu0 %v9561_v15  ;;  %v9614_v14 = vld [vmem:[%s14191_s1 + $0x840] ss:$8 sps:$4 sm:$0xff]  }
  0xe9   :  { %6956 = vmatprep.subr.bf16.mxu1 %v9564_v16  ;;  %v9617_v15 = vld [vmem:[%s14191_s1 + $0x940] ss:$8 sps:$4 sm:$0xff]   ;;  %v9622_v16 = vld [vmem:[%s14191_s1 + $0x834] ss:$8 sps:$4 sm:$0xff]  }
  0xeb   :  { %6916 = vmatpush2.bf16.msra.mxu0 %v9559_v17  ;;  %v9625_v17 = vld [vmem:[%s14191_s1 + $0x934] ss:$8 sps:$4 sm:$0xff]  }
  0xec   :  { %6957 = vmatpush2.bf16.msra.mxu1 %v9562_v18  ;;  %6917 = vmatprep.subr.bf16.mxu0 %v9567_v19  ;;  %v9620_v18 = vld [vmem:[%s14191_s1 + $0x830] ss:$8 sps:$4 sm:$0xff]  }
  0xed   :  { %6958 = vmatprep.subr.bf16.mxu1 %v9570_v20  ;;  %v9623_v19 = vld [vmem:[%s14191_s1 + $0x930] ss:$8 sps:$4 sm:$0xff]   ;;  %v9628_v20 = vld [vmem:[%s14191_s1 + $0x824] ss:$8 sps:$4 sm:$0xff]  }
  0xef   :  { %6918 = vmatpush2.bf16.msra.mxu0 %v9565_v21  ;;  %v9631_v21 = vld [vmem:[%s14191_s1 + $0x924] ss:$8 sps:$4 sm:$0xff]  }
  0xf0   :  { %6959 = vmatpush2.bf16.msra.mxu1 %v9568_v22  ;;  %6919 = vmatprep.subr.bf16.mxu0 %v9573_v23  ;;  %v9626_v22 = vld [vmem:[%s14191_s1 + $0x820] ss:$8 sps:$4 sm:$0xff]  }
  0xf1   :  { %6960 = vmatprep.subr.bf16.mxu1 %v9576_v24  ;;  %v9629_v23 = vld [vmem:[%s14191_s1 + $0x920] ss:$8 sps:$4 sm:$0xff]   ;;  %v9634_v24 = vld [vmem:[%s14191_s1 + $0x814] ss:$8 sps:$4 sm:$0xff]  }
  0xf3   :  { %6920 = vmatpush2.bf16.msra.mxu0 %v9571_v25  ;;  %v9637_v25 = vld [vmem:[%s14191_s1 + $0x914] ss:$8 sps:$4 sm:$0xff]  }
  0xf4   :  { %6961 = vmatpush2.bf16.msra.mxu1 %v9574_v26  ;;  %6921 = vmatprep.subr.bf16.mxu0 %v9579_v27  ;;  %v9632_v26 = vld [vmem:[%s14191_s1 + $0x810] ss:$8 sps:$4 sm:$0xff]  }
  0xf5   :  { %6962 = vmatprep.subr.bf16.mxu1 %v9582_v28  ;;  %v9635_v27 = vld [vmem:[%s14191_s1 + $0x910] ss:$8 sps:$4 sm:$0xff]   ;;  %v9640_v28 = vld [vmem:[%s14191_s1 + $0x804] ss:$8 sps:$4 sm:$0xff]  }
  0xf7   :  { %6922 = vmatpush2.bf16.msra.mxu0 %v9577_v30  ;;  %v9643_v30 = vld [vmem:[%s14191_s1 + $0x904] ss:$8 sps:$4 sm:$0xff]  }
  0xf8   :  { %6963 = vmatpush2.bf16.msra.mxu1 %v9580_v31  ;;  %6923 = vmatprep.subr.bf16.mxu0 %v9585_v33  ;;  %v9638_v31 = vld [vmem:[%s14191_s1 + $0x800] ss:$8 sps:$4 sm:$0xff]  }
  0xf9   :  { %6964 = vmatprep.subr.bf16.mxu1 %v9588_v34  ;;  %v9641_v33 = vld [vmem:[%s14191_s1 + $0x900] ss:$8 sps:$4 sm:$0xff]   ;;  %v9646_v34 = vld [vmem:[%s14191_s1 + $0x8f4] ss:$8 sps:$4 sm:$0xff]  }
  0xfb   :  { %6924 = vmatpush2.bf16.msra.mxu0 %v9583_v36  ;;  %v9649_v36 = vld [vmem:[%s14191_s1 + $0x9f4] ss:$8 sps:$4 sm:$0xff]  }
  0xfc   :  { %6965 = vmatpush2.bf16.msra.mxu1 %v9586_v37  ;;  %6925 = vmatprep.subr.bf16.mxu0 %v9591_v29  ;;  %v9644_v37 = vld [vmem:[%s14191_s1 + $0x8f0] ss:$8 sps:$4 sm:$0xff]  }
  0xfd   :  { %6966 = vmatprep.subr.bf16.mxu1 %v9594_v38  ;;  %v9647_v29 = vld [vmem:[%s14191_s1 + $0x9f0] ss:$8 sps:$4 sm:$0xff]   ;;  %v9652_v38 = vld [vmem:[%s14191_s1 + $0x8e4] ss:$8 sps:$4 sm:$0xff]  }
  0xff   :  { %6926 = vmatpush2.bf16.msra.mxu0 %v9589_v39  ;;  %v9655_v39 = vld [vmem:[%s14191_s1 + $0x9e4] ss:$8 sps:$4 sm:$0xff]  }
 0x100   :  { %6967 = vmatpush2.bf16.msra.mxu1 %v9592_v41  ;;  %6977 = vmatprep.subr.bf16.mxu0 %v9598_v46  ;;  %v9653_v41 = vld [vmem:[%s14191_s1 + $0x9e0] ss:$8 sps:$4 sm:$0xff]   ;;  %v9659_v46 = vld [vmem:[%s14191_s1 + $0x9d0] ss:$8 sps:$4 sm:$0xff]  }
 0x101   :  { %7018 = vmatprep.subr.bf16.mxu1 %v9601_v47  ;;  %v9664_v47 = vld [vmem:[%s14191_s1 + $0x8c4] ss:$8 sps:$4 sm:$0xff]  }
 0x102   :  { %v6683_v57 = vpop.f32.mrf.mxu0  ;;  %6928 = vmatmul.mubr.bf16.vlgmr.msra.gmra.mxu0 %v1152_v44  ;;  %v9661_v44 = vld [vmem:[%s14191_s1 + $0x9d4] ss:$8 sps:$4 sm:$0xff]  }
 0x103   :  { %v6724_v58 = vpop.f32.mrf.mxu1  ;;  %6969 = vmatmul.mubr.bf16.vlgmr.msra.gmra.mxu1 %v1168_v51  ;;  %v6684_v61 = vadd.f32 %v6683_v57, %v1058_v53  ;;  %6978 = vmatpush1.bf16.msra.mxu0 %v9596_v6  ;;  %v9665_v51 = vld [vmem:[%s14191_s1 + $0x9c0] ss:$8 sps:$4 sm:$0xff]   ;;  %v9670_v6 = vld [vmem:[%s14191_s1 + $0x8b4] ss:$8 sps:$4 sm:$0xff]   ;;  %v9668_v53 = vld [vmem:[%s14191_s1 + $0x8b0] ss:$8 sps:$4 sm:$0xff]  }
 0x104   :  { %7019 = vmatpush1.bf16.msra.mxu1 %v9599_v52  ;;  %v6685_v62 = vpop.f32.mrf.mxu0  ;;  %6979 = vmatprep.subr.bf16.mxu0 %v9604_v54  ;;  %v9673_v52 = vld [vmem:[%s14191_s1 + $0x9b4] ss:$8 sps:$4 sm:$0xff]   ;;  %v9671_v54 = vld [vmem:[%s14191_s1 + $0x9b0] ss:$8 sps:$4 sm:$0xff]   ;;  %v9674_v57 = vld [vmem:[%s14191_s1 + $0x8a0] ss:$8 sps:$4 sm:$0xff]  }
 0x105   :  { %v6726_v63 = vpop.f32.mrf.mxu1  ;;  %7020 = vmatprep.subr.bf16.mxu1 %v9607_v42  ;;  %v11659_v2 = vadd.f32 %v6724_v58, %v6684_v61  ;;  %v6686_v3 = vadd.f32 %v6685_v62, %v1062_v55  ;;  %7009 = vmatprep.mubr.bf16.mxu0 %v1208_v50  ;;  %v9662_v50 = vld [vmem:[%s14191_s1 + $0x8c0] ss:$8 sps:$4 sm:$0xff]   ;;  %v9676_v42 = vld [vmem:[%s14191_s1 + $0x8a4] ss:$8 sps:$4 sm:$0xff]   ;;  %v9680_v61 = vld [vmem:[%s14191_s1 + $0x890] ss:$8 sps:$4 sm:$0xff]  }
 0x106   :  { %7050 = vmatprep.mubr.bf16.mxu1 %v1218_v56  ;;  %v6687_v7 = vpop.f32.mrf.mxu0  ;;  %v9679_v55 = vld [vmem:[%s14191_s1 + $0x9a4] ss:$8 sps:$4 sm:$0xff]   ;;  %v1171_v56 = vcombine.high %v11589_v32, %v11589_v32  ;;  %v9677_v58 = vld [vmem:[%s14191_s1 + $0x9a0] ss:$8 sps:$4 sm:$0xff]   ;;  %v9685_v32 = vld [vmem:[%s14191_s1 + $0x994] ss:$8 sps:$4 sm:$0xff]  }
 0x107   :  { %v6728_v8 = vpop.f32.mrf.mxu1  ;;  %v11667_v9 = vadd.f32 %v6726_v63, %v6686_v3  ;;  %6980 = vmatpush1.bf16.msra.mxu0 %v9602_v59  ;;  %v9682_v59 = vld [vmem:[%s14191_s1 + $0x894] ss:$8 sps:$4 sm:$0xff]   ;;  %v9683_v62 = vld [vmem:[%s14191_s1 + $0x990] ss:$8 sps:$4 sm:$0xff]   ;;  %v9688_v63 = vld [vmem:[%s14191_s1 + $0x884] ss:$8 sps:$4 sm:$0xff]   ;;  %v1194_v3 = vrot.slane %v11599_v35, %v10936_v49 }
 0x108   :  { %7021 = vmatpush1.bf16.msra.mxu1 %v9605_v60  ;;  %v6688_v10 = vpop.f32.mrf.mxu0  ;;  %6981 = vmatprep.subr.bf16.mxu0 %v9610_v0  ;;  %v11810_v60 = vrot.slane %v1171_v56, %v10936_v49  ;;  %v9691_v0 = vld [vmem:[%s14191_s1 + $0x984] ss:$8 sps:$4 sm:$0xff]   ;;  %v9694_v7 = vld [vmem:[%s14191_s1 + $0xa74] ss:$8 sps:$4 sm:$0xff]   ;;  %v9692_v8 = vld [vmem:[%s14191_s1 + $0xa70] ss:$8 sps:$4 sm:$0xff]  }
 0x109   :  { %v6729_v11 = vpop.f32.mrf.mxu1  ;;  %7022 = vmatprep.subr.bf16.mxu1 %v9613_v1  ;;  %v9697_v35 = vld [vmem:[%s14191_s1 + $0xb74] ss:$8 sps:$4 sm:$0xff]   ;;  %v9695_v10 = vld [vmem:[%s14191_s1 + $0xb70] ss:$8 sps:$4 sm:$0xff]  }
 0x10a   :  { %v1187_v1 = vcombine.high %v11810_v60, %v11810_v60  ;;  %v9740_v56 = vld [vmem:[%s14191_s1 + $0xaf0] ss:$8 sps:$4 sm:$0xff]  }
 0x10b   :  { %6982 = vmatpush1.bf16.msra.mxu0 %v9608_v4  ;;  %v9686_v4 = vld [vmem:[%s14191_s1 + $0x880] ss:$8 sps:$4 sm:$0xff]  }
 0x10c   :  { %7023 = vmatpush1.bf16.msra.mxu1 %v9611_v5  ;;  %6983 = vmatprep.subr.bf16.mxu0 %v9616_v12  ;;  %v9689_v5 = vld [vmem:[%s14191_s1 + $0x980] ss:$8 sps:$4 sm:$0xff]   ;;  %v1215_v11 = vrot.slane %v1187_v1, %v10936_v49  ;;  %v1216_v12 = vcombine.high %v1194_v3, %v1194_v3  ;;  %v9755_v1 = vld [vmem:[%s14191_s1 + $0xbd0] ss:$8 sps:$4 sm:$0xff]  }
 0x10d   :  { %7024 = vmatprep.subr.bf16.mxu1 %v9619_v13  ;;  %v9700_v13 = vld [vmem:[%s14191_s1 + $0xa64] ss:$8 sps:$4 sm:$0xff]  }
 0x10f   :  { %6984 = vmatpush1.bf16.msra.mxu0 %v9614_v14  ;;  %v9703_v14 = vld [vmem:[%s14191_s1 + $0xb64] ss:$8 sps:$4 sm:$0xff]  }
 0x110   :  { %7025 = vmatpush1.bf16.msra.mxu1 %v9617_v15  ;;  %6985 = vmatprep.subr.bf16.mxu0 %v9622_v16  ;;  %v9698_v15 = vld [vmem:[%s14191_s1 + $0xa60] ss:$8 sps:$4 sm:$0xff]  }
 0x111   :  { %7026 = vmatprep.subr.bf16.mxu1 %v9625_v17  ;;  %v9701_v16 = vld [vmem:[%s14191_s1 + $0xb60] ss:$8 sps:$4 sm:$0xff]   ;;  %v1219_v17 = vcombine.high %v1215_v11, %v1215_v11 }
 0x113   :  { %6986 = vmatpush1.bf16.msra.mxu0 %v9620_v18 }
 0x114   :  { %7027 = vmatpush1.bf16.msra.mxu1 %v9623_v19  ;;  %6987 = vmatprep.subr.bf16.mxu0 %v9628_v20 }
 0x115   :  { %7028 = vmatprep.subr.bf16.mxu1 %v9631_v21 }
 0x117   :  { %6988 = vmatpush1.bf16.msra.mxu0 %v9626_v22 }
 0x118   :  { %7029 = vmatpush1.bf16.msra.mxu1 %v9629_v23  ;;  %6989 = vmatprep.subr.bf16.mxu0 %v9634_v24  ;;  %v9706_v23 = vld [vmem:[%s14191_s1 + $0xa54] ss:$8 sps:$4 sm:$0xff]  }
 0x119   :  { %7030 = vmatprep.subr.bf16.mxu1 %v9637_v25  ;;  %v9709_v24 = vld [vmem:[%s14191_s1 + $0xb54] ss:$8 sps:$4 sm:$0xff]  }
 0x11b   :  { %6990 = vmatpush1.bf16.msra.mxu0 %v9632_v26 }
 0x11c   :  { %7031 = vmatpush1.bf16.msra.mxu1 %v9635_v27  ;;  %6991 = vmatprep.subr.bf16.mxu0 %v9640_v28  ;;  %v9707_v27 = vld [vmem:[%s14191_s1 + $0xb50] ss:$8 sps:$4 sm:$0xff]  }
 0x11d   :  { %7032 = vmatprep.subr.bf16.mxu1 %v9643_v30 }
 0x11f   :  { %6992 = vmatpush1.bf16.msra.mxu0 %v9638_v31 }
 0x120   :  { %7033 = vmatpush1.bf16.msra.mxu1 %v9641_v33  ;;  %6993 = vmatprep.subr.bf16.mxu0 %v9646_v34 }
 0x121   :  { %7034 = vmatprep.subr.bf16.mxu1 %v9649_v36  ;;  %v9715_v36 = vld [vmem:[%s14191_s1 + $0xb44] ss:$8 sps:$4 sm:$0xff]  }
 0x123   :  { %6994 = vmatpush2.bf16.msra.mxu0 %v9644_v37  ;;  %v9710_v37 = vld [vmem:[%s14191_s1 + $0xa40] ss:$8 sps:$4 sm:$0xff]  }
 0x124   :  { %7035 = vmatpush2.bf16.msra.mxu1 %v9647_v29  ;;  %6995 = vmatprep.subr.bf16.mxu0 %v9652_v38  ;;  %v9713_v29 = vld [vmem:[%s14191_s1 + $0xb40] ss:$8 sps:$4 sm:$0xff]   ;;  %v9718_v38 = vld [vmem:[%s14191_s1 + $0xa34] ss:$8 sps:$4 sm:$0xff]  }
 0x125   :  { %7036 = vmatprep.subr.bf16.mxu1 %v9655_v39  ;;  %v9721_v39 = vld [vmem:[%s14191_s1 + $0xb34] ss:$8 sps:$4 sm:$0xff]  }
 0x127   :  { %6996 = vmatpush2.bf16.msra.mxu0 %v9650_v40  ;;  %v9716_v40 = vld [vmem:[%s14191_s1 + $0xa30] ss:$8 sps:$4 sm:$0xff]  }
 0x128   :  { %7037 = vmatpush2.bf16.msra.mxu1 %v9653_v41  ;;  %6997 = vmatprep.subr.bf16.mxu0 %v9658_v43  ;;  %v9719_v41 = vld [vmem:[%s14191_s1 + $0xb30] ss:$8 sps:$4 sm:$0xff]   ;;  %v9724_v43 = vld [vmem:[%s14191_s1 + $0xa24] ss:$8 sps:$4 sm:$0xff]  }
 0x129   :  { %7038 = vmatprep.subr.bf16.mxu1 %v9661_v44  ;;  %v9727_v44 = vld [vmem:[%s14191_s1 + $0xb24] ss:$8 sps:$4 sm:$0xff]  }
 0x12b   :  { %6998 = vmatpush2.bf16.msra.mxu0 %v9656_v45  ;;  %v9722_v45 = vld [vmem:[%s14191_s1 + $0xa20] ss:$8 sps:$4 sm:$0xff]  }
 0x12c   :  { %7039 = vmatpush2.bf16.msra.mxu1 %v9659_v46  ;;  %6999 = vmatprep.subr.bf16.mxu0 %v9664_v47  ;;  %v9725_v46 = vld [vmem:[%s14191_s1 + $0xb20] ss:$8 sps:$4 sm:$0xff]   ;;  %v9730_v47 = vld [vmem:[%s14191_s1 + $0xa14] ss:$8 sps:$4 sm:$0xff]  }
 0x12d   :  { %7040 = vmatprep.subr.bf16.mxu1 %v9667_v48  ;;  %v9733_v48 = vld [vmem:[%s14191_s1 + $0xb14] ss:$8 sps:$4 sm:$0xff]  }
 0x12f   :  { %7000 = vmatpush2.bf16.msra.mxu0 %v9662_v50  ;;  %v9728_v50 = vld [vmem:[%s14191_s1 + $0xa10] ss:$8 sps:$4 sm:$0xff]  }
 0x130   :  { %7041 = vmatpush2.bf16.msra.mxu1 %v9665_v51  ;;  %7001 = vmatprep.subr.bf16.mxu0 %v9670_v6  ;;  %v9731_v51 = vld [vmem:[%s14191_s1 + $0xb10] ss:$8 sps:$4 sm:$0xff]   ;;  %v9736_v6 = vld [vmem:[%s14191_s1 + $0xa04] ss:$8 sps:$4 sm:$0xff]  }
 0x131   :  { %7042 = vmatprep.subr.bf16.mxu1 %v9673_v52  ;;  %v9739_v52 = vld [vmem:[%s14191_s1 + $0xb04] ss:$8 sps:$4 sm:$0xff]  }
 0x133   :  { %7002 = vmatpush2.bf16.msra.mxu0 %v9668_v53  ;;  %v9734_v53 = vld [vmem:[%s14191_s1 + $0xa00] ss:$8 sps:$4 sm:$0xff]  }
 0x134   :  { %7043 = vmatpush2.bf16.msra.mxu1 %v9671_v54  ;;  %7003 = vmatprep.subr.bf16.mxu0 %v9676_v42  ;;  %v9737_v54 = vld [vmem:[%s14191_s1 + $0xb00] ss:$8 sps:$4 sm:$0xff]   ;;  %v9742_v42 = vld [vmem:[%s14191_s1 + $0xaf4] ss:$8 sps:$4 sm:$0xff]  }
 0x135   :  { %7044 = vmatprep.subr.bf16.mxu1 %v9679_v55  ;;  %v9745_v55 = vld [vmem:[%s14191_s1 + $0xbf4] ss:$8 sps:$4 sm:$0xff]  }
 0x137   :  { %7004 = vmatpush2.bf16.msra.mxu0 %v9674_v57  ;;  %v9743_v57 = vld [vmem:[%s14191_s1 + $0xbf0] ss:$8 sps:$4 sm:$0xff]  }
 0x138   :  { %7045 = vmatpush2.bf16.msra.mxu1 %v9677_v58  ;;  %7005 = vmatprep.subr.bf16.mxu0 %v9682_v59  ;;  %v9748_v58 = vld [vmem:[%s14191_s1 + $0xae4] ss:$8 sps:$4 sm:$0xff]  }
 0x139   :  { %7046 = vmatprep.subr.bf16.mxu1 %v9685_v32  ;;  %v9751_v59 = vld [vmem:[%s14191_s1 + $0xbe4] ss:$8 sps:$4 sm:$0xff]   ;;  %v9746_v32 = vld [vmem:[%s14191_s1 + $0xae0] ss:$8 sps:$4 sm:$0xff]  }
 0x13b   :  { %7006 = vmatpush2.bf16.msra.mxu0 %v9680_v61  ;;  %v9749_v61 = vld [vmem:[%s14191_s1 + $0xbe0] ss:$8 sps:$4 sm:$0xff]  }
 0x13c   :  { %7047 = vmatpush2.bf16.msra.mxu1 %v9683_v62  ;;  %7007 = vmatprep.subr.bf16.mxu0 %v9688_v63  ;;  %v9754_v62 = vld [vmem:[%s14191_s1 + $0xad4] ss:$8 sps:$4 sm:$0xff]  }
 0x13d   :  { %7048 = vmatprep.subr.bf16.mxu1 %v9691_v0  ;;  %v9757_v63 = vld [vmem:[%s14191_s1 + $0xbd4] ss:$8 sps:$4 sm:$0xff]   ;;  %v9752_v0 = vld [vmem:[%s14191_s1 + $0xad0] ss:$8 sps:$4 sm:$0xff]  }
 0x13f   :  { %7008 = vmatpush2.bf16.msra.mxu0 %v9686_v4  ;;  %v9763_v4 = vld [vmem:[%s14191_s1 + $0xbc4] ss:$8 sps:$4 sm:$0xff]  }
 0x140   :  { %7049 = vmatpush2.bf16.msra.mxu1 %v9689_v5  ;;  %7059 = vmatprep.subr.bf16.mxu0 %v9694_v7  ;;  %v9758_v5 = vld [vmem:[%s14191_s1 + $0xac0] ss:$8 sps:$4 sm:$0xff]  }
 0x141   :  { %7100 = vmatprep.subr.bf16.mxu1 %v9697_v35  ;;  %v9761_v7 = vld [vmem:[%s14191_s1 + $0xbc0] ss:$8 sps:$4 sm:$0xff]   ;;  %v9766_v35 = vld [vmem:[%s14191_s1 + $0xab4] ss:$8 sps:$4 sm:$0xff]  }
 0x142   :  { %v6765_v18 = vpop.f32.mrf.mxu0  ;;  %7010 = vmatmul.mubr.bf16.vlgmr.msra.gmra.mxu0 %v1194_v3  ;;  %v9760_v3 = vld [vmem:[%s14191_s1 + $0xac4] ss:$8 sps:$4 sm:$0xff]  }
 0x143   :  { %v6806_v19 = vpop.f32.mrf.mxu1  ;;  %7051 = vmatmul.mubr.bf16.vlgmr.msra.gmra.mxu1 %v1216_v12  ;;  %v6766_v20 = vadd.f32 %v6765_v18, %v11659_v2  ;;  %7060 = vmatpush1.bf16.msra.mxu0 %v9692_v8  ;;  %v9704_v2 = vld [vmem:[%s14191_s1 + $0xa50] ss:$8 sps:$4 sm:$0xff]   ;;  %v9769_v8 = vld [vmem:[%s14191_s1 + $0xbb4] ss:$8 sps:$4 sm:$0xff]   ;;  %v9772_v12 = vld [vmem:[%s14191_s1 + $0xaa4] ss:$8 sps:$4 sm:$0xff]  }
 0x144   :  { %7101 = vmatpush1.bf16.msra.mxu1 %v9695_v10  ;;  %v6767_v21 = vpop.f32.mrf.mxu0  ;;  %7061 = vmatprep.subr.bf16.mxu0 %v9700_v13  ;;  %v9764_v10 = vld [vmem:[%s14191_s1 + $0xab0] ss:$8 sps:$4 sm:$0xff]   ;;  %v9775_v13 = vld [vmem:[%s14191_s1 + $0xba4] ss:$8 sps:$4 sm:$0xff]   ;;  %v9781_v18 = vld [vmem:[%s14191_s1 + $0xb94] ss:$8 sps:$4 sm:$0xff]  }
 0x145   :  { %v6808_v22 = vpop.f32.mrf.mxu1  ;;  %7102 = vmatprep.subr.bf16.mxu1 %v9703_v14  ;;  %v11866_v25 = vadd.f32 %v6806_v19, %v6766_v20  ;;  %v6768_v26 = vadd.f32 %v6767_v21, %v11667_v9  ;;  %7091 = vmatprep.mubr.bf16.mxu0 %v1215_v11  ;;  %v9712_v9 = vld [vmem:[%s14191_s1 + $0xa44] ss:$8 sps:$4 sm:$0xff]   ;;  %v9767_v11 = vld [vmem:[%s14191_s1 + $0xbb0] ss:$8 sps:$4 sm:$0xff]  }
 0x146   :  { %7132 = vmatprep.mubr.bf16.mxu1 %v1219_v17  ;;  %v6769_v28 = vpop.f32.mrf.mxu0  ;;  %v12006_v14 = vld [vmem:[%s14192_s0 + $0x18] sm:$0xff] }
 0x147   :  { %v6810_v30 = vpop.f32.mrf.mxu1  ;;  %v11875_v31 = vadd.f32 %v6808_v22, %v6768_v26  ;;  %7062 = vmatpush1.bf16.msra.mxu0 %v9698_v15  ;;  %v9770_v15 = vld [vmem:[%s14191_s1 + $0xaa0] ss:$8 sps:$4 sm:$0xff]   ;;  %v9778_v17 = vld [vmem:[%s14191_s1 + $0xa94] ss:$8 sps:$4 sm:$0xff]   ;;  %v12022_v19 = vrot.slane %v12006_v14, %v10936_v49  ;;  %v9776_v20 = vld [vmem:[%s14191_s1 + $0xa90] ss:$8 sps:$4 sm:$0xff]   ;;  %v1201_v26 = vrot.slane %v11810_v60, %v10936_v49 }
 0x148   :  { %7103 = vmatpush1.bf16.msra.mxu1 %v9701_v16  ;;  %v6770_v33 = vpop.f32.mrf.mxu0  ;;  %7063 = vmatprep.subr.bf16.mxu0 %v9706_v23  ;;  %v9773_v16 = vld [vmem:[%s14191_s1 + $0xba0] ss:$8 sps:$4 sm:$0xff]   ;;  %v9779_v21 = vld [vmem:[%s14191_s1 + $0xb90] ss:$8 sps:$4 sm:$0xff]   ;;  %v9784_v22 = vld [vmem:[%s14191_s1 + $0xa84] ss:$8 sps:$4 sm:$0xff]  }
 0x149   :  { %v6811_v34 = vpop.f32.mrf.mxu1  ;;  %7104 = vmatprep.subr.bf16.mxu1 %v9709_v24  ;;  %v9787_v23 = vld [vmem:[%s14191_s1 + $0xb84] ss:$8 sps:$4 sm:$0xff]   ;;  %v1235_v24 = vcombine.high %v12022_v19, %v12022_v19  ;;  %v9791_v28 = vld [vmem:[%s14191_s1 + $0xc74] ss:$8 sps:$4 sm:$0xff]   ;;  %v9789_v30 = vld [vmem:[%s14191_s1 + $0xc70] ss:$8 sps:$4 sm:$0xff]  }
 0x14a   :  { %v9794_v60 = vld [vmem:[%s14191_s1 + $0xd74] ss:$8 sps:$4 sm:$0xff]   ;;  %v9792_v33 = vld [vmem:[%s14191_s1 + $0xd70] ss:$8 sps:$4 sm:$0xff]  }
 0x14b   :  { %7064 = vmatpush1.bf16.msra.mxu0 %v9704_v2  ;;  %v9782_v2 = vld [vmem:[%s14191_s1 + $0xa80] ss:$8 sps:$4 sm:$0xff]   ;;  %v1257_v34 = vrot.slane %v1235_v24, %v10936_v49  ;;  %v9849_v24 = vld [vmem:[%s14191_s1 + $0xcd0] ss:$8 sps:$4 sm:$0xff]  }
 0x14c   :  { %7105 = vmatpush1.bf16.msra.mxu1 %v9707_v27  ;;  %7065 = vmatprep.subr.bf16.mxu0 %v9712_v9  ;;  %v9785_v27 = vld [vmem:[%s14191_s1 + $0xb80] ss:$8 sps:$4 sm:$0xff]   ;;  %v1217_v9 = vcombine.high %v1201_v26, %v1201_v26 }
 0x14d   :  { %7106 = vmatprep.subr.bf16.mxu1 %v9715_v36  ;;  %v9797_v36 = vld [vmem:[%s14191_s1 + $0xc64] ss:$8 sps:$4 sm:$0xff]  }
 0x14f   :  { %7066 = vmatpush1.bf16.msra.mxu0 %v9710_v37  ;;  %v9800_v37 = vld [vmem:[%s14191_s1 + $0xd64] ss:$8 sps:$4 sm:$0xff]  }
 0x150   :  { %7107 = vmatpush1.bf16.msra.mxu1 %v9713_v29  ;;  %7067 = vmatprep.subr.bf16.mxu0 %v9718_v38  ;;  %v9795_v29 = vld [vmem:[%s14191_s1 + $0xc60] ss:$8 sps:$4 sm:$0xff]  }
 0x151   :  { %7108 = vmatprep.subr.bf16.mxu1 %v9721_v39  ;;  %v9798_v38 = vld [vmem:[%s14191_s1 + $0xd60] ss:$8 sps:$4 sm:$0xff]   ;;  %v1267_v39 = vcombine.high %v1257_v34, %v1257_v34 }
 0x153   :  { %7068 = vmatpush1.bf16.msra.mxu0 %v9716_v40 }
 0x154   :  { %7109 = vmatpush1.bf16.msra.mxu1 %v9719_v41  ;;  %7069 = vmatprep.subr.bf16.mxu0 %v9724_v43 }
 0x155   :  { %7110 = vmatprep.subr.bf16.mxu1 %v9727_v44 }
 0x157   :  { %7070 = vmatpush1.bf16.msra.mxu0 %v9722_v45 }
 0x158   :  { %7111 = vmatpush1.bf16.msra.mxu1 %v9725_v46  ;;  %7071 = vmatprep.subr.bf16.mxu0 %v9730_v47  ;;  %v9803_v46 = vld [vmem:[%s14191_s1 + $0xc54] ss:$8 sps:$4 sm:$0xff]  }
 0x159   :  { %7112 = vmatprep.subr.bf16.mxu1 %v9733_v48  ;;  %v9806_v47 = vld [vmem:[%s14191_s1 + $0xd54] ss:$8 sps:$4 sm:$0xff]  }
 0x15b   :  { %7072 = vmatpush1.bf16.msra.mxu0 %v9728_v50 }
 0x15c   :  { %7113 = vmatpush1.bf16.msra.mxu1 %v9731_v51  ;;  %7073 = vmatprep.subr.bf16.mxu0 %v9736_v6  ;;  %v9804_v51 = vld [vmem:[%s14191_s1 + $0xd50] ss:$8 sps:$4 sm:$0xff]  }
 0x15d   :  { %7114 = vmatprep.subr.bf16.mxu1 %v9739_v52 }
 0x15f   :  { %7074 = vmatpush1.bf16.msra.mxu0 %v9734_v53 }
 0x160   :  { %7115 = vmatpush1.bf16.msra.mxu1 %v9737_v54  ;;  %7075 = vmatprep.subr.bf16.mxu0 %v9742_v42 }
 0x161   :  { %7116 = vmatprep.subr.bf16.mxu1 %v9745_v55  ;;  %v9812_v55 = vld [vmem:[%s14191_s1 + $0xd44] ss:$8 sps:$4 sm:$0xff]  }
 0x163   :  { %7076 = vmatpush2.bf16.msra.mxu0 %v9740_v56  ;;  %v9807_v56 = vld [vmem:[%s14191_s1 + $0xc40] ss:$8 sps:$4 sm:$0xff]  }
 0x164   :  { %7117 = vmatpush2.bf16.msra.mxu1 %v9743_v57  ;;  %7077 = vmatprep.subr.bf16.mxu0 %v9748_v58  ;;  %v9810_v57 = vld [vmem:[%s14191_s1 + $0xd40] ss:$8 sps:$4 sm:$0xff]   ;;  %v9815_v58 = vld [vmem:[%s14191_s1 + $0xc34] ss:$8 sps:$4 sm:$0xff]  }
 0x165   :  { %7118 = vmatprep.subr.bf16.mxu1 %v9751_v59  ;;  %v9818_v59 = vld [vmem:[%s14191_s1 + $0xd34] ss:$8 sps:$4 sm:$0xff]  }
 0x167   :  { %7078 = vmatpush2.bf16.msra.mxu0 %v9746_v32  ;;  %v9813_v32 = vld [vmem:[%s14191_s1 + $0xc30] ss:$8 sps:$4 sm:$0xff]  }
 0x168   :  { %7119 = vmatpush2.bf16.msra.mxu1 %v9749_v61  ;;  %7079 = vmatprep.subr.bf16.mxu0 %v9754_v62  ;;  %v9816_v61 = vld [vmem:[%s14191_s1 + $0xd30] ss:$8 sps:$4 sm:$0xff]   ;;  %v9821_v62 = vld [vmem:[%s14191_s1 + $0xc24] ss:$8 sps:$4 sm:$0xff]  }
 0x169   :  { %7120 = vmatprep.subr.bf16.mxu1 %v9757_v63  ;;  %v9824_v63 = vld [vmem:[%s14191_s1 + $0xd24] ss:$8 sps:$4 sm:$0xff]  }
 0x16b   :  { %7080 = vmatpush2.bf16.msra.mxu0 %v9752_v0  ;;  %v9819_v0 = vld [vmem:[%s14191_s1 + $0xc20] ss:$8 sps:$4 sm:$0xff]  }
 0x16c   :  { %7121 = vmatpush2.bf16.msra.mxu1 %v9755_v1  ;;  %7081 = vmatprep.subr.bf16.mxu0 %v9760_v3  ;;  %v9822_v1 = vld [vmem:[%s14191_s1 + $0xd20] ss:$8 sps:$4 sm:$0xff]   ;;  %v9827_v3 = vld [vmem:[%s14191_s1 + $0xc14] ss:$8 sps:$4 sm:$0xff]  }
 0x16d   :  { %7122 = vmatprep.subr.bf16.mxu1 %v9763_v4  ;;  %v9830_v4 = vld [vmem:[%s14191_s1 + $0xd14] ss:$8 sps:$4 sm:$0xff]  }
 0x16f   :  { %7082 = vmatpush2.bf16.msra.mxu0 %v9758_v5  ;;  %v9825_v5 = vld [vmem:[%s14191_s1 + $0xc10] ss:$8 sps:$4 sm:$0xff]  }
 0x170   :  { %7123 = vmatpush2.bf16.msra.mxu1 %v9761_v7  ;;  %7083 = vmatprep.subr.bf16.mxu0 %v9766_v35  ;;  %v9828_v7 = vld [vmem:[%s14191_s1 + $0xd10] ss:$8 sps:$4 sm:$0xff]   ;;  %v9833_v35 = vld [vmem:[%s14191_s1 + $0xc04] ss:$8 sps:$4 sm:$0xff]  }
 0x171   :  { %7124 = vmatprep.subr.bf16.mxu1 %v9769_v8  ;;  %v9836_v8 = vld [vmem:[%s14191_s1 + $0xd04] ss:$8 sps:$4 sm:$0xff]  }
 0x173   :  { %7084 = vmatpush2.bf16.msra.mxu0 %v9764_v10  ;;  %v9831_v10 = vld [vmem:[%s14191_s1 + $0xc00] ss:$8 sps:$4 sm:$0xff]  }
 0x174   :  { %7125 = vmatpush2.bf16.msra.mxu1 %v9767_v11  ;;  %7085 = vmatprep.subr.bf16.mxu0 %v9772_v12  ;;  %v9834_v11 = vld [vmem:[%s14191_s1 + $0xd00] ss:$8 sps:$4 sm:$0xff]   ;;  %v9839_v12 = vld [vmem:[%s14191_s1 + $0xcf4] ss:$8 sps:$4 sm:$0xff]  }
 0x175   :  { %7126 = vmatprep.subr.bf16.mxu1 %v9775_v13  ;;  %v9842_v13 = vld [vmem:[%s14191_s1 + $0xdf4] ss:$8 sps:$4 sm:$0xff]  }
 0x177   :  { %7086 = vmatpush2.bf16.msra.mxu0 %v9770_v15  ;;  %v9837_v15 = vld [vmem:[%s14191_s1 + $0xcf0] ss:$8 sps:$4 sm:$0xff]  }
 0x178   :  { %7127 = vmatpush2.bf16.msra.mxu1 %v9773_v16  ;;  %7087 = vmatprep.subr.bf16.mxu0 %v9778_v17  ;;  %v9840_v16 = vld [vmem:[%s14191_s1 + $0xdf0] ss:$8 sps:$4 sm:$0xff]   ;;  %v9845_v17 = vld [vmem:[%s14191_s1 + $0xce4] ss:$8 sps:$4 sm:$0xff]  }
 0x179   :  { %7128 = vmatprep.subr.bf16.mxu1 %v9781_v18  ;;  %v9848_v18 = vld [vmem:[%s14191_s1 + $0xde4] ss:$8 sps:$4 sm:$0xff]  }
 0x17b   :  { %7088 = vmatpush2.bf16.msra.mxu0 %v9776_v20  ;;  %v9843_v20 = vld [vmem:[%s14191_s1 + $0xce0] ss:$8 sps:$4 sm:$0xff]  }
 0x17c   :  { %7129 = vmatpush2.bf16.msra.mxu1 %v9779_v21  ;;  %7089 = vmatprep.subr.bf16.mxu0 %v9784_v22  ;;  %v9846_v21 = vld [vmem:[%s14191_s1 + $0xde0] ss:$8 sps:$4 sm:$0xff]   ;;  %v9851_v22 = vld [vmem:[%s14191_s1 + $0xcd4] ss:$8 sps:$4 sm:$0xff]  }
 0x17d   :  { %7130 = vmatprep.subr.bf16.mxu1 %v9787_v23  ;;  %v9854_v23 = vld [vmem:[%s14191_s1 + $0xdd4] ss:$8 sps:$4 sm:$0xff]  }
 0x17f   :  { %7090 = vmatpush2.bf16.msra.mxu0 %v9782_v2  ;;  %v9857_v2 = vld [vmem:[%s14191_s1 + $0xcc4] ss:$8 sps:$4 sm:$0xff]  }
 0x180   :  { %7131 = vmatpush2.bf16.msra.mxu1 %v9785_v27  ;;  %7141 = vmatprep.subr.bf16.mxu0 %v9791_v28  ;;  %v9860_v27 = vld [vmem:[%s14191_s1 + $0xdc4] ss:$8 sps:$4 sm:$0xff]   ;;  %v9855_v28 = vld [vmem:[%s14191_s1 + $0xcc0] ss:$8 sps:$4 sm:$0xff]  }
 0x181   :  { %7182 = vmatprep.subr.bf16.mxu1 %v9794_v60  ;;  %v9858_v60 = vld [vmem:[%s14191_s1 + $0xdc0] ss:$8 sps:$4 sm:$0xff]  }
 0x182   :  { %v6847_v40 = vpop.f32.mrf.mxu0  ;;  %7092 = vmatmul.mubr.bf16.vlgmr.msra.gmra.mxu0 %v1201_v26  ;;  %v9852_v26 = vld [vmem:[%s14191_s1 + $0xdd0] ss:$8 sps:$4 sm:$0xff]  }
 0x183   :  { %v6888_v41 = vpop.f32.mrf.mxu1  ;;  %7133 = vmatmul.mubr.bf16.vlgmr.msra.gmra.mxu1 %v1217_v9  ;;  %v6848_v43 = vadd.f32 %v6847_v40, %v11866_v25  ;;  %7142 = vmatpush1.bf16.msra.mxu0 %v9789_v30  ;;  %v9801_v25 = vld [vmem:[%s14191_s1 + $0xc50] ss:$8 sps:$4 sm:$0xff]   ;;  %v9863_v30 = vld [vmem:[%s14191_s1 + $0xcb4] ss:$8 sps:$4 sm:$0xff]  }
 0x184   :  { %7183 = vmatpush1.bf16.msra.mxu1 %v9792_v33  ;;  %v6849_v44 = vpop.f32.mrf.mxu0  ;;  %7143 = vmatprep.subr.bf16.mxu0 %v9797_v36  ;;  %v9866_v33 = vld [vmem:[%s14191_s1 + $0xdb4] ss:$8 sps:$4 sm:$0xff]   ;;  %v9864_v9 = vld [vmem:[%s14191_s1 + $0xdb0] ss:$8 sps:$4 sm:$0xff]   ;;  %v9869_v36 = vld [vmem:[%s14191_s1 + $0xca4] ss:$8 sps:$4 sm:$0xff]  }
 0x185   :  { %v6890_v45 = vpop.f32.mrf.mxu1  ;;  %7184 = vmatprep.subr.bf16.mxu1 %v9800_v37  ;;  %v12078_v48 = vadd.f32 %v6888_v41, %v6848_v43  ;;  %v6850_v50 = vadd.f32 %v6849_v44, %v11875_v31  ;;  %7173 = vmatprep.mubr.bf16.mxu0 %v1257_v34  ;;  %v9809_v31 = vld [vmem:[%s14191_s1 + $0xc44] ss:$8 sps:$4 sm:$0xff]   ;;  %v9861_v34 = vld [vmem:[%s14191_s1 + $0xcb0] ss:$8 sps:$4 sm:$0xff]   ;;  %v9875_v40 = vld [vmem:[%s14191_s1 + $0xc94] ss:$8 sps:$4 sm:$0xff]  }
 0x186   :  { %7214 = vmatprep.mubr.bf16.mxu1 %v1267_v39  ;;  %v6851_v6 = vpop.f32.mrf.mxu0  ;;  %v9872_v37 = vld [vmem:[%s14191_s1 + $0xda4] ss:$8 sps:$4 sm:$0xff]   ;;  %v9870_v39 = vld [vmem:[%s14191_s1 + $0xda0] ss:$8 sps:$4 sm:$0xff]   ;;  %v9873_v43 = vld [vmem:[%s14191_s1 + $0xc90] ss:$8 sps:$4 sm:$0xff]  }
 0x187   :  { %v6892_v52 = vpop.f32.mrf.mxu1  ;;  %v12087_v53 = vadd.f32 %v6890_v45, %v6850_v50  ;;  %7144 = vmatpush1.bf16.msra.mxu0 %v9795_v29  ;;  %v1220_v29 = vcombine.high %v12006_v14, %v12006_v14  ;;  %v9878_v14 = vld [vmem:[%s14191_s1 + $0xd94] ss:$8 sps:$4 sm:$0xff]   ;;  %v9876_v44 = vld [vmem:[%s14191_s1 + $0xd90] ss:$8 sps:$4 sm:$0xff]   ;;  %v9881_v45 = vld [vmem:[%s14191_s1 + $0xc84] ss:$8 sps:$4 sm:$0xff]   ;;  %v1243_v50 = vrot.slane %v12022_v19, %v10936_v49 }
 0x188   :  { %7185 = vmatpush1.bf16.msra.mxu1 %v9798_v38  ;;  %v6852_v54 = vpop.f32.mrf.mxu0  ;;  %7145 = vmatprep.subr.bf16.mxu0 %v9803_v46  ;;  %v9867_v38 = vld [vmem:[%s14191_s1 + $0xca0] ss:$8 sps:$4 sm:$0xff]   ;;  %v9884_v46 = vld [vmem:[%s14191_s1 + $0xd84] ss:$8 sps:$4 sm:$0xff]   ;;  %v9887_v6 = vld [vmem:[%s14191_s1 + $0xe74] ss:$8 sps:$4 sm:$0xff]  }
 0x189   :  { %v6893_v42 = vpop.f32.mrf.mxu1  ;;  %7186 = vmatprep.subr.bf16.mxu1 %v9806_v47  ;;  %v12230_v41 = vrot.slane %v1220_v29, %v10936_v49  ;;  %v9890_v19 = vld [vmem:[%s14191_s1 + $0xf74] ss:$8 sps:$4 sm:$0xff]   ;;  %v9885_v52 = vld [vmem:[%s14191_s1 + $0xe70] ss:$8 sps:$4 sm:$0xff]  }
 0x18a   :  { %v9888_v54 = vld [vmem:[%s14191_s1 + $0xf70] ss:$8 sps:$4 sm:$0xff]  }
 0x18b   :  { %7146 = vmatpush1.bf16.msra.mxu0 %v9801_v25  ;;  %v1236_v47 = vcombine.high %v12230_v41, %v12230_v41  ;;  %v9879_v25 = vld [vmem:[%s14191_s1 + $0xc80] ss:$8 sps:$4 sm:$0xff]   ;;  %v9933_v29 = vld [vmem:[%s14191_s1 + $0xef0] ss:$8 sps:$4 sm:$0xff]  }
 0x18c   :  { %7187 = vmatpush1.bf16.msra.mxu1 %v9804_v51  ;;  %7147 = vmatprep.subr.bf16.mxu0 %v9809_v31  ;;  %v9882_v51 = vld [vmem:[%s14191_s1 + $0xd80] ss:$8 sps:$4 sm:$0xff]   ;;  %v1265_v31 = vcombine.high %v1243_v50, %v1243_v50 }
 0x18d   :  { %7188 = vmatprep.subr.bf16.mxu1 %v9812_v55  ;;  %v1264_v42 = vrot.slane %v1236_v47, %v10936_v49  ;;  %v9893_v55 = vld [vmem:[%s14191_s1 + $0xe64] ss:$8 sps:$4 sm:$0xff]   ;;  %v9948_v47 = vld [vmem:[%s14191_s1 + $0xfd0] ss:$8 sps:$4 sm:$0xff]  }
 0x18f   :  { %7148 = vmatpush1.bf16.msra.mxu0 %v9807_v56  ;;  %v9896_v56 = vld [vmem:[%s14191_s1 + $0xf64] ss:$8 sps:$4 sm:$0xff]  }
 0x190   :  { %7189 = vmatpush1.bf16.msra.mxu1 %v9810_v57  ;;  %7149 = vmatprep.subr.bf16.mxu0 %v9815_v58  ;;  %v9891_v57 = vld [vmem:[%s14191_s1 + $0xe60] ss:$8 sps:$4 sm:$0xff]  }
 0x191   :  { %7190 = vmatprep.subr.bf16.mxu1 %v9818_v59  ;;  %v9894_v58 = vld [vmem:[%s14191_s1 + $0xf60] ss:$8 sps:$4 sm:$0xff]   ;;  %v1268_v59 = vcombine.high %v1264_v42, %v1264_v42 }
 0x193   :  { %7150 = vmatpush1.bf16.msra.mxu0 %v9813_v32 }
 0x194   :  { %7191 = vmatpush1.bf16.msra.mxu1 %v9816_v61  ;;  %7151 = vmatprep.subr.bf16.mxu0 %v9821_v62 }
 0x195   :  { %7192 = vmatprep.subr.bf16.mxu1 %v9824_v63 }
 0x197   :  { %7152 = vmatpush1.bf16.msra.mxu0 %v9819_v0 }
 0x198   :  { %7193 = vmatpush1.bf16.msra.mxu1 %v9822_v1  ;;  %7153 = vmatprep.subr.bf16.mxu0 %v9827_v3  ;;  %v9899_v1 = vld [vmem:[%s14191_s1 + $0xe54] ss:$8 sps:$4 sm:$0xff]  }
 0x199   :  { %7194 = vmatprep.subr.bf16.mxu1 %v9830_v4  ;;  %v9902_v3 = vld [vmem:[%s14191_s1 + $0xf54] ss:$8 sps:$4 sm:$0xff]  }
 0x19b   :  { %7154 = vmatpush1.bf16.msra.mxu0 %v9825_v5 }
 0x19c   :  { %7195 = vmatpush1.bf16.msra.mxu1 %v9828_v7  ;;  %7155 = vmatprep.subr.bf16.mxu0 %v9833_v35  ;;  %v9900_v7 = vld [vmem:[%s14191_s1 + $0xf50] ss:$8 sps:$4 sm:$0xff]  }
 0x19d   :  { %7196 = vmatprep.subr.bf16.mxu1 %v9836_v8 }
 0x19f   :  { %7156 = vmatpush1.bf16.msra.mxu0 %v9831_v10 }
 0x1a0   :  { %7197 = vmatpush1.bf16.msra.mxu1 %v9834_v11  ;;  %7157 = vmatprep.subr.bf16.mxu0 %v9839_v12 }
 0x1a1   :  { %7198 = vmatprep.subr.bf16.mxu1 %v9842_v13  ;;  %v9908_v13 = vld [vmem:[%s14191_s1 + $0xf44] ss:$8 sps:$4 sm:$0xff]  }
 0x1a3   :  { %7158 = vmatpush2.bf16.msra.mxu0 %v9837_v15  ;;  %v9903_v15 = vld [vmem:[%s14191_s1 + $0xe40] ss:$8 sps:$4 sm:$0xff]  }
 0x1a4   :  { %7199 = vmatpush2.bf16.msra.mxu1 %v9840_v16  ;;  %7159 = vmatprep.subr.bf16.mxu0 %v9845_v17  ;;  %v9906_v16 = vld [vmem:[%s14191_s1 + $0xf40] ss:$8 sps:$4 sm:$0xff]   ;;  %v9911_v17 = vld [vmem:[%s14191_s1 + $0xe34] ss:$8 sps:$4 sm:$0xff]  }
 0x1a5   :  { %7200 = vmatprep.subr.bf16.mxu1 %v9848_v18  ;;  %v9914_v18 = vld [vmem:[%s14191_s1 + $0xf34] ss:$8 sps:$4 sm:$0xff]  }
 0x1a7   :  { %7160 = vmatpush2.bf16.msra.mxu0 %v9843_v20  ;;  %v9909_v20 = vld [vmem:[%s14191_s1 + $0xe30] ss:$8 sps:$4 sm:$0xff]  }
 0x1a8   :  { %7201 = vmatpush2.bf16.msra.mxu1 %v9846_v21  ;;  %7161 = vmatprep.subr.bf16.mxu0 %v9851_v22  ;;  %v9912_v21 = vld [vmem:[%s14191_s1 + $0xf30] ss:$8 sps:$4 sm:$0xff]   ;;  %v9917_v22 = vld [vmem:[%s14191_s1 + $0xe24] ss:$8 sps:$4 sm:$0xff]  }
 0x1a9   :  { %7202 = vmatprep.subr.bf16.mxu1 %v9854_v23  ;;  %v9920_v23 = vld [vmem:[%s14191_s1 + $0xf24] ss:$8 sps:$4 sm:$0xff]  }
 0x1ab   :  { %7162 = vmatpush2.bf16.msra.mxu0 %v9849_v24  ;;  %v9915_v24 = vld [vmem:[%s14191_s1 + $0xe20] ss:$8 sps:$4 sm:$0xff]  }
 0x1ac   :  { %7203 = vmatpush2.bf16.msra.mxu1 %v9852_v26  ;;  %7163 = vmatprep.subr.bf16.mxu0 %v9857_v2  ;;  %v9918_v26 = vld [vmem:[%s14191_s1 + $0xf20] ss:$8 sps:$4 sm:$0xff]   ;;  %v9923_v2 = vld [vmem:[%s14191_s1 + $0xe14] ss:$8 sps:$4 sm:$0xff]  }
 0x1ad   :  { %7204 = vmatprep.subr.bf16.mxu1 %v9860_v27  ;;  %v9926_v27 = vld [vmem:[%s14191_s1 + $0xf14] ss:$8 sps:$4 sm:$0xff]  }
 0x1af   :  { %7164 = vmatpush2.bf16.msra.mxu0 %v9855_v28  ;;  %v9921_v28 = vld [vmem:[%s14191_s1 + $0xe10] ss:$8 sps:$4 sm:$0xff]  }
 0x1b0   :  { %7205 = vmatpush2.bf16.msra.mxu1 %v9858_v60  ;;  %7165 = vmatprep.subr.bf16.mxu0 %v9863_v30  ;;  %v9924_v60 = vld [vmem:[%s14191_s1 + $0xf10] ss:$8 sps:$4 sm:$0xff]   ;;  %v9929_v30 = vld [vmem:[%s14191_s1 + $0xe04] ss:$8 sps:$4 sm:$0xff]  }
 0x1b1   :  { %7206 = vmatprep.subr.bf16.mxu1 %v9866_v33  ;;  %v9932_v33 = vld [vmem:[%s14191_s1 + $0xf04] ss:$8 sps:$4 sm:$0xff]  }
 0x1b3   :  { %7166 = vmatpush2.bf16.msra.mxu0 %v9861_v34  ;;  %v9927_v34 = vld [vmem:[%s14191_s1 + $0xe00] ss:$8 sps:$4 sm:$0xff]  }
 0x1b4   :  { %7207 = vmatpush2.bf16.msra.mxu1 %v9864_v9  ;;  %7167 = vmatprep.subr.bf16.mxu0 %v9869_v36  ;;  %v9930_v9 = vld [vmem:[%s14191_s1 + $0xf00] ss:$8 sps:$4 sm:$0xff]   ;;  %v9935_v36 = vld [vmem:[%s14191_s1 + $0xef4] ss:$8 sps:$4 sm:$0xff]  }
 0x1b5   :  { %7208 = vmatprep.subr.bf16.mxu1 %v9872_v37  ;;  %v9938_v37 = vld [vmem:[%s14191_s1 + $0xff4] ss:$8 sps:$4 sm:$0xff]  }
 0x1b7   :  { %7168 = vmatpush2.bf16.msra.mxu0 %v9867_v38  ;;  %v9936_v38 = vld [vmem:[%s14191_s1 + $0xff0] ss:$8 sps:$4 sm:$0xff]  }
 0x1b8   :  { %7209 = vmatpush2.bf16.msra.mxu1 %v9870_v39  ;;  %7169 = vmatprep.subr.bf16.mxu0 %v9875_v40  ;;  %v9941_v39 = vld [vmem:[%s14191_s1 + $0xee4] ss:$8 sps:$4 sm:$0xff]  }
 0x1b9   :  { %7210 = vmatprep.subr.bf16.mxu1 %v9878_v14  ;;  %v9944_v40 = vld [vmem:[%s14191_s1 + $0xfe4] ss:$8 sps:$4 sm:$0xff]   ;;  %v9939_v14 = vld [vmem:[%s14191_s1 + $0xee0] ss:$8 sps:$4 sm:$0xff]  }
 0x1bb   :  { %7170 = vmatpush2.bf16.msra.mxu0 %v9873_v43  ;;  %v9942_v43 = vld [vmem:[%s14191_s1 + $0xfe0] ss:$8 sps:$4 sm:$0xff]  }
 0x1bc   :  { %7211 = vmatpush2.bf16.msra.mxu1 %v9876_v44  ;;  %7171 = vmatprep.subr.bf16.mxu0 %v9881_v45  ;;  %v9947_v44 = vld [vmem:[%s14191_s1 + $0xed4] ss:$8 sps:$4 sm:$0xff]  }
 0x1bd   :  { %7212 = vmatprep.subr.bf16.mxu1 %v9884_v46  ;;  %v9950_v45 = vld [vmem:[%s14191_s1 + $0xfd4] ss:$8 sps:$4 sm:$0xff]   ;;  %v9945_v46 = vld [vmem:[%s14191_s1 + $0xed0] ss:$8 sps:$4 sm:$0xff]  }
 0x1bf   :  { %7172 = vmatpush2.bf16.msra.mxu0 %v9879_v25  ;;  %v9956_v25 = vld [vmem:[%s14191_s1 + $0xfc4] ss:$8 sps:$4 sm:$0xff]  }
 0x1c0   :  { %7213 = vmatpush2.bf16.msra.mxu1 %v9882_v51  ;;  %7223 = vmatprep.subr.bf16.mxu0 %v9887_v6  ;;  %v9951_v51 = vld [vmem:[%s14191_s1 + $0xec0] ss:$8 sps:$4 sm:$0xff]  }
 0x1c1   :  { %7264 = vmatprep.subr.bf16.mxu1 %v9890_v19  ;;  %v9954_v6 = vld [vmem:[%s14191_s1 + $0xfc0] ss:$8 sps:$4 sm:$0xff]   ;;  %v9959_v19 = vld [vmem:[%s14191_s1 + $0xeb4] ss:$8 sps:$4 sm:$0xff]  }
 0x1c2   :  { %v6929_v32 = vpop.f32.mrf.mxu0  ;;  %7174 = vmatmul.mubr.bf16.vlgmr.msra.gmra.mxu0 %v1243_v50  ;;  %v9953_v50 = vld [vmem:[%s14191_s1 + $0xec4] ss:$8 sps:$4 sm:$0xff]  }
 0x1c3   :  { %v6970_v61 = vpop.f32.mrf.mxu1  ;;  %7215 = vmatmul.mubr.bf16.vlgmr.msra.gmra.mxu1 %v1265_v31  ;;  %v6930_v62 = vadd.f32 %v6929_v32, %v12078_v48  ;;  %7224 = vmatpush1.bf16.msra.mxu0 %v9885_v52  ;;  %v9897_v48 = vld [vmem:[%s14191_s1 + $0xe50] ss:$8 sps:$4 sm:$0xff]   ;;  %v9962_v52 = vld [vmem:[%s14191_s1 + $0xfb4] ss:$8 sps:$4 sm:$0xff]   ;;  %v9965_v31 = vld [vmem:[%s14191_s1 + $0xea4] ss:$8 sps:$4 sm:$0xff]  }
 0x1c4   :  { %7265 = vmatpush1.bf16.msra.mxu1 %v9888_v54  ;;  %v6931_v63 = vpop.f32.mrf.mxu0  ;;  %7225 = vmatprep.subr.bf16.mxu0 %v9893_v55  ;;  %v9957_v54 = vld [vmem:[%s14191_s1 + $0xeb0] ss:$8 sps:$4 sm:$0xff]   ;;  %v9968_v55 = vld [vmem:[%s14191_s1 + $0xfa4] ss:$8 sps:$4 sm:$0xff]   ;;  %v9974_v32 = vld [vmem:[%s14191_s1 + $0xf94] ss:$8 sps:$4 sm:$0xff]  }
 0x1c5   :  { %v6972_v0 = vpop.f32.mrf.mxu1  ;;  %7266 = vmatprep.subr.bf16.mxu1 %v9896_v56  ;;  %v12286_v4 = vadd.f32 %v6970_v61, %v6930_v62  ;;  %v6932_v5 = vadd.f32 %v6931_v63, %v12087_v53  ;;  %7255 = vmatprep.mubr.bf16.mxu0 %v1264_v42  ;;  %v9905_v53 = vld [vmem:[%s14191_s1 + $0xe44] ss:$8 sps:$4 sm:$0xff]   ;;  %v9960_v42 = vld [vmem:[%s14191_s1 + $0xfb0] ss:$8 sps:$4 sm:$0xff]  }
 0x1c6   :  { %7296 = vmatprep.mubr.bf16.mxu1 %v1268_v59  ;;  %v6933_v35 = vpop.f32.mrf.mxu0  ;;  %v12426_v56 = vld [vmem:[%s14192_s0 + $0x20] sm:$0xff]  ;;  %v9971_v59 = vld [vmem:[%s14191_s1 + $0xe94] ss:$8 sps:$4 sm:$0xff]   ;;  %v9969_v62 = vld [vmem:[%s14191_s1 + $0xe90] ss:$8 sps:$4 sm:$0xff]  }
 0x1c7   :  { %v6974_v8 = vpop.f32.mrf.mxu1  ;;  %v12295_v10 = vadd.f32 %v6972_v0, %v6932_v5  ;;  %7226 = vmatpush1.bf16.msra.mxu0 %v9891_v57  ;;  %v9963_v57 = vld [vmem:[%s14191_s1 + $0xea0] ss:$8 sps:$4 sm:$0xff]   ;;  %v12442_v61 = vrot.slane %v12426_v56, %v10936_v49  ;;  %v9972_v63 = vld [vmem:[%s14191_s1 + $0xf90] ss:$8 sps:$4 sm:$0xff]   ;;  %v9977_v0 = vld [vmem:[%s14191_s1 + $0xe84] ss:$8 sps:$4 sm:$0xff]   ;;  %v1250_v5 = vrot.slane %v12230_v41, %v10936_v49 }
 0x1c8   :  { %7267 = vmatpush1.bf16.msra.mxu1 %v9894_v58  ;;  %v6934_v11 = vpop.f32.mrf.mxu0  ;;  %7227 = vmatprep.subr.bf16.mxu0 %v9899_v1  ;;  %v9966_v58 = vld [vmem:[%s14191_s1 + $0xfa0] ss:$8 sps:$4 sm:$0xff]   ;;  %v9980_v1 = vld [vmem:[%s14191_s1 + $0xf84] ss:$8 sps:$4 sm:$0xff]   ;;  %v9984_v35 = vld [vmem:[%s14191_s1 + $0x1074] ss:$8 sps:$4 sm:$0xff]  }
 0x1c9   :  { %v6975_v12 = vpop.f32.mrf.mxu1  ;;  %7268 = vmatprep.subr.bf16.mxu1 %v9902_v3  ;;  %v1284_v3 = vcombine.high %v12442_v61, %v12442_v61  ;;  %v9987_v41 = vld [vmem:[%s14191_s1 + $0x1174] ss:$8 sps:$4 sm:$0xff]   ;;  %v9982_v8 = vld [vmem:[%s14191_s1 + $0x1070] ss:$8 sps:$4 sm:$0xff]  }
 0x1ca   :  { %v9985_v11 = vld [vmem:[%s14191_s1 + $0x1170] ss:$8 sps:$4 sm:$0xff]  }
 0x1cb   :  { %7228 = vmatpush1.bf16.msra.mxu0 %v9897_v48  ;;  %v9975_v48 = vld [vmem:[%s14191_s1 + $0xe80] ss:$8 sps:$4 sm:$0xff]   ;;  %v1306_v12 = vrot.slane %v1284_v3, %v10936_v49  ;;  %v10042_v3 = vld [vmem:[%s14191_s1 + $0x10d0] ss:$8 sps:$4 sm:$0xff]  }
 0x1cc   :  { %7269 = vmatpush1.bf16.msra.mxu1 %v9900_v7  ;;  %7229 = vmatprep.subr.bf16.mxu0 %v9905_v53  ;;  %v9978_v7 = vld [vmem:[%s14191_s1 + $0xf80] ss:$8 sps:$4 sm:$0xff]   ;;  %v1266_v53 = vcombine.high %v1250_v5, %v1250_v5 }
 0x1cd   :  { %7270 = vmatprep.subr.bf16.mxu1 %v9908_v13  ;;  %v9990_v13 = vld [vmem:[%s14191_s1 + $0x1064] ss:$8 sps:$4 sm:$0xff]  }
 0x1cf   :  { %7230 = vmatpush1.bf16.msra.mxu0 %v9903_v15  ;;  %v9993_v15 = vld [vmem:[%s14191_s1 + $0x1164] ss:$8 sps:$4 sm:$0xff]  }
 0x1d0   :  { %7271 = vmatpush1.bf16.msra.mxu1 %v9906_v16  ;;  %7231 = vmatprep.subr.bf16.mxu0 %v9911_v17  ;;  %v9988_v16 = vld [vmem:[%s14191_s1 + $0x1060] ss:$8 sps:$4 sm:$0xff]  }
 0x1d1   :  { %7272 = vmatprep.subr.bf16.mxu1 %v9914_v18  ;;  %v9991_v17 = vld [vmem:[%s14191_s1 + $0x1160] ss:$8 sps:$4 sm:$0xff]   ;;  %v1316_v18 = vcombine.high %v1306_v12, %v1306_v12 }
 0x1d3   :  { %7232 = vmatpush1.bf16.msra.mxu0 %v9909_v20 }
 0x1d4   :  { %7273 = vmatpush1.bf16.msra.mxu1 %v9912_v21  ;;  %7233 = vmatprep.subr.bf16.mxu0 %v9917_v22 }
 0x1d5   :  { %7274 = vmatprep.subr.bf16.mxu1 %v9920_v23 }
 0x1d7   :  { %7234 = vmatpush1.bf16.msra.mxu0 %v9915_v24 }
 0x1d8   :  { %7275 = vmatpush1.bf16.msra.mxu1 %v9918_v26  ;;  %7235 = vmatprep.subr.bf16.mxu0 %v9923_v2  ;;  %v9996_v26 = vld [vmem:[%s14191_s1 + $0x1054] ss:$8 sps:$4 sm:$0xff]  }
 0x1d9   :  { %7276 = vmatprep.subr.bf16.mxu1 %v9926_v27  ;;  %v9999_v2 = vld [vmem:[%s14191_s1 + $0x1154] ss:$8 sps:$4 sm:$0xff]  }
 0x1db   :  { %7236 = vmatpush1.bf16.msra.mxu0 %v9921_v28 }
 0x1dc   :  { %7277 = vmatpush1.bf16.msra.mxu1 %v9924_v60  ;;  %7237 = vmatprep.subr.bf16.mxu0 %v9929_v30  ;;  %v9997_v60 = vld [vmem:[%s14191_s1 + $0x1150] ss:$8 sps:$4 sm:$0xff]  }
 0x1dd   :  { %7278 = vmatprep.subr.bf16.mxu1 %v9932_v33 }
 0x1df   :  { %7238 = vmatpush1.bf16.msra.mxu0 %v9927_v34 }
 0x1e0   :  { %7279 = vmatpush1.bf16.msra.mxu1 %v9930_v9  ;;  %7239 = vmatprep.subr.bf16.mxu0 %v9935_v36 }
 0x1e1   :  { %7280 = vmatprep.subr.bf16.mxu1 %v9938_v37  ;;  %v10005_v37 = vld [vmem:[%s14191_s1 + $0x1144] ss:$8 sps:$4 sm:$0xff]  }
 0x1e3   :  { %7240 = vmatpush2.bf16.msra.mxu0 %v9933_v29  ;;  %v10000_v29 = vld [vmem:[%s14191_s1 + $0x1040] ss:$8 sps:$4 sm:$0xff]  }
 0x1e4   :  { %7281 = vmatpush2.bf16.msra.mxu1 %v9936_v38  ;;  %7241 = vmatprep.subr.bf16.mxu0 %v9941_v39  ;;  %v10003_v38 = vld [vmem:[%s14191_s1 + $0x1140] ss:$8 sps:$4 sm:$0xff]   ;;  %v10008_v39 = vld [vmem:[%s14191_s1 + $0x1034] ss:$8 sps:$4 sm:$0xff]  }
 0x1e5   :  { %7282 = vmatprep.subr.bf16.mxu1 %v9944_v40  ;;  %v10011_v40 = vld [vmem:[%s14191_s1 + $0x1134] ss:$8 sps:$4 sm:$0xff]  }
 0x1e7   :  { %7242 = vmatpush2.bf16.msra.mxu0 %v9939_v14  ;;  %v10006_v14 = vld [vmem:[%s14191_s1 + $0x1030] ss:$8 sps:$4 sm:$0xff]  }
 0x1e8   :  { %7283 = vmatpush2.bf16.msra.mxu1 %v9942_v43  ;;  %7243 = vmatprep.subr.bf16.mxu0 %v9947_v44  ;;  %v10009_v43 = vld [vmem:[%s14191_s1 + $0x1130] ss:$8 sps:$4 sm:$0xff]   ;;  %v10014_v44 = vld [vmem:[%s14191_s1 + $0x1024] ss:$8 sps:$4 sm:$0xff]  }
 0x1e9   :  { %7284 = vmatprep.subr.bf16.mxu1 %v9950_v45  ;;  %v10017_v45 = vld [vmem:[%s14191_s1 + $0x1124] ss:$8 sps:$4 sm:$0xff]  }
 0x1eb   :  { %7244 = vmatpush2.bf16.msra.mxu0 %v9945_v46  ;;  %v10012_v46 = vld [vmem:[%s14191_s1 + $0x1020] ss:$8 sps:$4 sm:$0xff]  }
 0x1ec   :  { %7285 = vmatpush2.bf16.msra.mxu1 %v9948_v47  ;;  %7245 = vmatprep.subr.bf16.mxu0 %v9953_v50  ;;  %v10015_v47 = vld [vmem:[%s14191_s1 + $0x1120] ss:$8 sps:$4 sm:$0xff]   ;;  %v10020_v50 = vld [vmem:[%s14191_s1 + $0x1014] ss:$8 sps:$4 sm:$0xff]  }
 0x1ed   :  { %7286 = vmatprep.subr.bf16.mxu1 %v9956_v25  ;;  %v10023_v25 = vld [vmem:[%s14191_s1 + $0x1114] ss:$8 sps:$4 sm:$0xff]  }
 0x1ef   :  { %7246 = vmatpush2.bf16.msra.mxu0 %v9951_v51  ;;  %v10018_v51 = vld [vmem:[%s14191_s1 + $0x1010] ss:$8 sps:$4 sm:$0xff]  }
 0x1f0   :  { %7287 = vmatpush2.bf16.msra.mxu1 %v9954_v6  ;;  %7247 = vmatprep.subr.bf16.mxu0 %v9959_v19  ;;  %v10021_v6 = vld [vmem:[%s14191_s1 + $0x1110] ss:$8 sps:$4 sm:$0xff]   ;;  %v10026_v19 = vld [vmem:[%s14191_s1 + $0x1004] ss:$8 sps:$4 sm:$0xff]  }
 0x1f1   :  { %7288 = vmatprep.subr.bf16.mxu1 %v9962_v52  ;;  %v10029_v52 = vld [vmem:[%s14191_s1 + $0x1104] ss:$8 sps:$4 sm:$0xff]  }
 0x1f3   :  { %7248 = vmatpush2.bf16.msra.mxu0 %v9957_v54  ;;  %v10024_v54 = vld [vmem:[%s14191_s1 + $0x1000] ss:$8 sps:$4 sm:$0xff]  }
 0x1f4   :  { %7289 = vmatpush2.bf16.msra.mxu1 %v9960_v42  ;;  %7249 = vmatprep.subr.bf16.mxu0 %v9965_v31  ;;  %v10027_v42 = vld [vmem:[%s14191_s1 + $0x1100] ss:$8 sps:$4 sm:$0xff]   ;;  %v10032_v31 = vld [vmem:[%s14191_s1 + $0x10f4] ss:$8 sps:$4 sm:$0xff]  }
 0x1f5   :  { %7290 = vmatprep.subr.bf16.mxu1 %v9968_v55  ;;  %v10035_v55 = vld [vmem:[%s14191_s1 + $0x11f4] ss:$8 sps:$4 sm:$0xff]  }
 0x1f7   :  { %7250 = vmatpush2.bf16.msra.mxu0 %v9963_v57  ;;  %v10030_v57 = vld [vmem:[%s14191_s1 + $0x10f0] ss:$8 sps:$4 sm:$0xff]  }
 0x1f8   :  { %7291 = vmatpush2.bf16.msra.mxu1 %v9966_v58  ;;  %7251 = vmatprep.subr.bf16.mxu0 %v9971_v59  ;;  %v10033_v58 = vld [vmem:[%s14191_s1 + $0x11f0] ss:$8 sps:$4 sm:$0xff]   ;;  %v10038_v59 = vld [vmem:[%s14191_s1 + $0x10e4] ss:$8 sps:$4 sm:$0xff]  }
 0x1f9   :  { %7292 = vmatprep.subr.bf16.mxu1 %v9974_v32  ;;  %v10041_v32 = vld [vmem:[%s14191_s1 + $0x11e4] ss:$8 sps:$4 sm:$0xff]  }
 0x1fb   :  { %7252 = vmatpush2.bf16.msra.mxu0 %v9969_v62  ;;  %v10036_v62 = vld [vmem:[%s14191_s1 + $0x10e0] ss:$8 sps:$4 sm:$0xff]  }
 0x1fc   :  { %7293 = vmatpush2.bf16.msra.mxu1 %v9972_v63  ;;  %7253 = vmatprep.subr.bf16.mxu0 %v9977_v0  ;;  %v10039_v63 = vld [vmem:[%s14191_s1 + $0x11e0] ss:$8 sps:$4 sm:$0xff]   ;;  %v10044_v0 = vld [vmem:[%s14191_s1 + $0x10d4] ss:$8 sps:$4 sm:$0xff]  }
 0x1fd   :  { %7294 = vmatprep.subr.bf16.mxu1 %v9980_v1  ;;  %v10047_v1 = vld [vmem:[%s14191_s1 + $0x11d4] ss:$8 sps:$4 sm:$0xff]  }
 0x1ff   :  { %7254 = vmatpush2.bf16.msra.mxu0 %v9975_v48  ;;  %v10050_v48 = vld [vmem:[%s14191_s1 + $0x10c4] ss:$8 sps:$4 sm:$0xff]  }
 0x200   :  { %7295 = vmatpush2.bf16.msra.mxu1 %v9978_v7  ;;  %7305 = vmatprep.subr.bf16.mxu0 %v9984_v35  ;;  %v10053_v7 = vld [vmem:[%s14191_s1 + $0x11c4] ss:$8 sps:$4 sm:$0xff]   ;;  %v10048_v35 = vld [vmem:[%s14191_s1 + $0x10c0] ss:$8 sps:$4 sm:$0xff]  }
 0x201   :  { %7346 = vmatprep.subr.bf16.mxu1 %v9987_v41  ;;  %v10051_v41 = vld [vmem:[%s14191_s1 + $0x11c0] ss:$8 sps:$4 sm:$0xff]  }
 0x202   :  { %v7011_v20 = vpop.f32.mrf.mxu0  ;;  %7256 = vmatmul.mubr.bf16.vlgmr.msra.gmra.mxu0 %v1250_v5  ;;  %v10045_v5 = vld [vmem:[%s14191_s1 + $0x11d0] ss:$8 sps:$4 sm:$0xff]  }
 0x203   :  { %v7052_v21 = vpop.f32.mrf.mxu1  ;;  %7297 = vmatmul.mubr.bf16.vlgmr.msra.gmra.mxu1 %v1266_v53  ;;  %v7012_v22 = vadd.f32 %v7011_v20, %v12286_v4  ;;  %7306 = vmatpush1.bf16.msra.mxu0 %v9982_v8  ;;  %v9994_v4 = vld [vmem:[%s14191_s1 + $0x1050] ss:$8 sps:$4 sm:$0xff]   ;;  %v10056_v8 = vld [vmem:[%s14191_s1 + $0x10b4] ss:$8 sps:$4 sm:$0xff]  }
 0x204   :  { %7347 = vmatpush1.bf16.msra.mxu1 %v9985_v11  ;;  %v7013_v23 = vpop.f32.mrf.mxu0  ;;  %7307 = vmatprep.subr.bf16.mxu0 %v9990_v13  ;;  %v10059_v11 = vld [vmem:[%s14191_s1 + $0x11b4] ss:$8 sps:$4 sm:$0xff]   ;;  %v10057_v53 = vld [vmem:[%s14191_s1 + $0x11b0] ss:$8 sps:$4 sm:$0xff]   ;;  %v10062_v13 = vld [vmem:[%s14191_s1 + $0x10a4] ss:$8 sps:$4 sm:$0xff]  }
 0x205   :  { %v7054_v24 = vpop.f32.mrf.mxu1  ;;  %7348 = vmatprep.subr.bf16.mxu1 %v9993_v15  ;;  %v12498_v27 = vadd.f32 %v7052_v21, %v7012_v22  ;;  %v7014_v28 = vadd.f32 %v7013_v23, %v12295_v10  ;;  %7337 = vmatprep.mubr.bf16.mxu0 %v1306_v12  ;;  %v10002_v10 = vld [vmem:[%s14191_s1 + $0x1044] ss:$8 sps:$4 sm:$0xff]   ;;  %v10054_v12 = vld [vmem:[%s14191_s1 + $0x10b0] ss:$8 sps:$4 sm:$0xff]   ;;  %v10068_v20 = vld [vmem:[%s14191_s1 + $0x1094] ss:$8 sps:$4 sm:$0xff]  }
 0x206   :  { %7378 = vmatprep.mubr.bf16.mxu1 %v1316_v18  ;;  %v7015_v30 = vpop.f32.mrf.mxu0  ;;  %v10065_v15 = vld [vmem:[%s14191_s1 + $0x11a4] ss:$8 sps:$4 sm:$0xff]   ;;  %v10063_v18 = vld [vmem:[%s14191_s1 + $0x11a0] ss:$8 sps:$4 sm:$0xff]   ;;  %v10066_v22 = vld [vmem:[%s14191_s1 + $0x1090] ss:$8 sps:$4 sm:$0xff]  }
 0x207   :  { %v7056_v33 = vpop.f32.mrf.mxu1  ;;  %v12507_v34 = vadd.f32 %v7054_v24, %v7014_v28  ;;  %7308 = vmatpush1.bf16.msra.mxu0 %v9988_v16  ;;  %v1269_v16 = vcombine.high %v12426_v56, %v12426_v56  ;;  %v10071_v56 = vld [vmem:[%s14191_s1 + $0x1194] ss:$8 sps:$4 sm:$0xff]   ;;  %v10069_v23 = vld [vmem:[%s14191_s1 + $0x1190] ss:$8 sps:$4 sm:$0xff]   ;;  %v10074_v24 = vld [vmem:[%s14191_s1 + $0x1084] ss:$8 sps:$4 sm:$0xff]   ;;  %v1292_v28 = vrot.slane %v12442_v61, %v10936_v49 }
 0x208   :  { %7349 = vmatpush1.bf16.msra.mxu1 %v9991_v17  ;;  %v7016_v9 = vpop.f32.mrf.mxu0  ;;  %7309 = vmatprep.subr.bf16.mxu0 %v9996_v26  ;;  %v10060_v17 = vld [vmem:[%s14191_s1 + $0x10a0] ss:$8 sps:$4 sm:$0xff]   ;;  %v10077_v26 = vld [vmem:[%s14191_s1 + $0x1184] ss:$8 sps:$4 sm:$0xff]   ;;  %v10080_v30 = vld [vmem:[%s14191_s1 + $0x1274] ss:$8 sps:$4 sm:$0xff]  }
 0x209   :  { %v7057_v36 = vpop.f32.mrf.mxu1  ;;  %7350 = vmatprep.subr.bf16.mxu1 %v9999_v2  ;;  %v12650_v21 = vrot.slane %v1269_v16, %v10936_v49  ;;  %v10083_v61 = vld [vmem:[%s14191_s1 + $0x1374] ss:$8 sps:$4 sm:$0xff]   ;;  %v10078_v33 = vld [vmem:[%s14191_s1 + $0x1270] ss:$8 sps:$4 sm:$0xff]  }
 0x20a   :  { %v10081_v9 = vld [vmem:[%s14191_s1 + $0x1370] ss:$8 sps:$4 sm:$0xff]  }
 0x20b   :  { %7310 = vmatpush1.bf16.msra.mxu0 %v9994_v4  ;;  %v1285_v2 = vcombine.high %v12650_v21, %v12650_v21  ;;  %v10072_v4 = vld [vmem:[%s14191_s1 + $0x1080] ss:$8 sps:$4 sm:$0xff]   ;;  %v10126_v16 = vld [vmem:[%s14191_s1 + $0x12f0] ss:$8 sps:$4 sm:$0xff]  }
 0x20c   :  { %7351 = vmatpush1.bf16.msra.mxu1 %v9997_v60  ;;  %7311 = vmatprep.subr.bf16.mxu0 %v10002_v10  ;;  %v10075_v60 = vld [vmem:[%s14191_s1 + $0x1180] ss:$8 sps:$4 sm:$0xff]   ;;  %v1314_v10 = vcombine.high %v1292_v28, %v1292_v28 }
 0x20d   :  { %7352 = vmatprep.subr.bf16.mxu1 %v10005_v37  ;;  %v1313_v36 = vrot.slane %v1285_v2, %v10936_v49  ;;  %v10086_v37 = vld [vmem:[%s14191_s1 + $0x1264] ss:$8 sps:$4 sm:$0xff]   ;;  %v10141_v2 = vld [vmem:[%s14191_s1 + $0x13d0] ss:$8 sps:$4 sm:$0xff]  }
 0x20f   :  { %7312 = vmatpush1.bf16.msra.mxu0 %v10000_v29  ;;  %v10089_v29 = vld [vmem:[%s14191_s1 + $0x1364] ss:$8 sps:$4 sm:$0xff]  }
 0x210   :  { %7353 = vmatpush1.bf16.msra.mxu1 %v10003_v38  ;;  %7313 = vmatprep.subr.bf16.mxu0 %v10008_v39  ;;  %v1317_v38 = vcombine.high %v1313_v36, %v1313_v36 }
 0x211   :  { %7354 = vmatprep.subr.bf16.mxu1 %v10011_v40 }
 0x213   :  { %7314 = vmatpush1.bf16.msra.mxu0 %v10006_v14 }
 0x214   :  { %7355 = vmatpush1.bf16.msra.mxu1 %v10009_v43  ;;  %7315 = vmatprep.subr.bf16.mxu0 %v10014_v44  ;;  %v10084_v43 = vld [vmem:[%s14191_s1 + $0x1260] ss:$8 sps:$4 sm:$0xff]  }
 0x215   :  { %7356 = vmatprep.subr.bf16.mxu1 %v10017_v45  ;;  %v10087_v44 = vld [vmem:[%s14191_s1 + $0x1360] ss:$8 sps:$4 sm:$0xff]  }
 0x217   :  { %7316 = vmatpush1.bf16.msra.mxu0 %v10012_v46 }
 0x218   :  { %7357 = vmatpush1.bf16.msra.mxu1 %v10015_v47  ;;  %7317 = vmatprep.subr.bf16.mxu0 %v10020_v50  ;;  %v10092_v47 = vld [vmem:[%s14191_s1 + $0x1254] ss:$8 sps:$4 sm:$0xff]  }
 0x219   :  { %7358 = vmatprep.subr.bf16.mxu1 %v10023_v25 }
 0x21b   :  { %7318 = vmatpush1.bf16.msra.mxu0 %v10018_v51 }
 0x21c   :  { %7359 = vmatpush1.bf16.msra.mxu1 %v10021_v6  ;;  %7319 = vmatprep.subr.bf16.mxu0 %v10026_v19 }
 0x21d   :  { %7360 = vmatprep.subr.bf16.mxu1 %v10029_v52  ;;  %v10090_v52 = vld [vmem:[%s14191_s1 + $0x1250] ss:$8 sps:$4 sm:$0xff]  }
 0x21f   :  { %7320 = vmatpush1.bf16.msra.mxu0 %v10024_v54  ;;  %v10093_v54 = vld [vmem:[%s14191_s1 + $0x1350] ss:$8 sps:$4 sm:$0xff]  }
 0x220   :  { %7361 = vmatpush1.bf16.msra.mxu1 %v10027_v42  ;;  %7321 = vmatprep.subr.bf16.mxu0 %v10032_v31 }
 0x221   :  { %7362 = vmatprep.subr.bf16.mxu1 %v10035_v55  ;;  %v10101_v55 = vld [vmem:[%s14191_s1 + $0x1344] ss:$8 sps:$4 sm:$0xff]  }
 0x223   :  { %7322 = vmatpush2.bf16.msra.mxu0 %v10030_v57  ;;  %v10096_v57 = vld [vmem:[%s14191_s1 + $0x1240] ss:$8 sps:$4 sm:$0xff]  }
 0x224   :  { %7363 = vmatpush2.bf16.msra.mxu1 %v10033_v58  ;;  %7323 = vmatprep.subr.bf16.mxu0 %v10038_v59  ;;  %v10099_v58 = vld [vmem:[%s14191_s1 + $0x1340] ss:$8 sps:$4 sm:$0xff]   ;;  %v10104_v59 = vld [vmem:[%s14191_s1 + $0x1234] ss:$8 sps:$4 sm:$0xff]  }
 0x225   :  { %7364 = vmatprep.subr.bf16.mxu1 %v10041_v32  ;;  %v10107_v32 = vld [vmem:[%s14191_s1 + $0x1334] ss:$8 sps:$4 sm:$0xff]  }
 0x227   :  { %7324 = vmatpush2.bf16.msra.mxu0 %v10036_v62  ;;  %v10102_v62 = vld [vmem:[%s14191_s1 + $0x1230] ss:$8 sps:$4 sm:$0xff]  }
 0x228   :  { %7365 = vmatpush2.bf16.msra.mxu1 %v10039_v63  ;;  %7325 = vmatprep.subr.bf16.mxu0 %v10044_v0  ;;  %v10105_v63 = vld [vmem:[%s14191_s1 + $0x1330] ss:$8 sps:$4 sm:$0xff]   ;;  %v10110_v0 = vld [vmem:[%s14191_s1 + $0x1224] ss:$8 sps:$4 sm:$0xff]  }
 0x229   :  { %7366 = vmatprep.subr.bf16.mxu1 %v10047_v1  ;;  %v10113_v1 = vld [vmem:[%s14191_s1 + $0x1324] ss:$8 sps:$4 sm:$0xff]  }
 0x22b   :  { %7326 = vmatpush2.bf16.msra.mxu0 %v10042_v3  ;;  %v10108_v3 = vld [vmem:[%s14191_s1 + $0x1220] ss:$8 sps:$4 sm:$0xff]  }
 0x22c   :  { %7367 = vmatpush2.bf16.msra.mxu1 %v10045_v5  ;;  %7327 = vmatprep.subr.bf16.mxu0 %v10050_v48  ;;  %v10111_v5 = vld [vmem:[%s14191_s1 + $0x1320] ss:$8 sps:$4 sm:$0xff]   ;;  %v10116_v48 = vld [vmem:[%s14191_s1 + $0x1214] ss:$8 sps:$4 sm:$0xff]  }
 0x22d   :  { %7368 = vmatprep.subr.bf16.mxu1 %v10053_v7  ;;  %v10119_v7 = vld [vmem:[%s14191_s1 + $0x1314] ss:$8 sps:$4 sm:$0xff]  }
 0x22f   :  { %7328 = vmatpush2.bf16.msra.mxu0 %v10048_v35  ;;  %v10114_v35 = vld [vmem:[%s14191_s1 + $0x1210] ss:$8 sps:$4 sm:$0xff]  }
 0x230   :  { %7369 = vmatpush2.bf16.msra.mxu1 %v10051_v41  ;;  %7329 = vmatprep.subr.bf16.mxu0 %v10056_v8  ;;  %v10117_v41 = vld [vmem:[%s14191_s1 + $0x1310] ss:$8 sps:$4 sm:$0xff]   ;;  %v10122_v8 = vld [vmem:[%s14191_s1 + $0x1204] ss:$8 sps:$4 sm:$0xff]  }
 0x231   :  { %7370 = vmatprep.subr.bf16.mxu1 %v10059_v11  ;;  %v10125_v11 = vld [vmem:[%s14191_s1 + $0x1304] ss:$8 sps:$4 sm:$0xff]  }
 0x233   :  { %7330 = vmatpush2.bf16.msra.mxu0 %v10054_v12  ;;  %v10120_v12 = vld [vmem:[%s14191_s1 + $0x1200] ss:$8 sps:$4 sm:$0xff]  }
 0x234   :  { %7371 = vmatpush2.bf16.msra.mxu1 %v10057_v53  ;;  %7331 = vmatprep.subr.bf16.mxu0 %v10062_v13  ;;  %v10123_v53 = vld [vmem:[%s14191_s1 + $0x1300] ss:$8 sps:$4 sm:$0xff]   ;;  %v10128_v13 = vld [vmem:[%s14191_s1 + $0x12f4] ss:$8 sps:$4 sm:$0xff]  }
 0x235   :  { %7372 = vmatprep.subr.bf16.mxu1 %v10065_v15  ;;  %v10131_v15 = vld [vmem:[%s14191_s1 + $0x13f4] ss:$8 sps:$4 sm:$0xff]  }
 0x237   :  { %7332 = vmatpush2.bf16.msra.mxu0 %v10060_v17  ;;  %v10129_v17 = vld [vmem:[%s14191_s1 + $0x13f0] ss:$8 sps:$4 sm:$0xff]  }
 0x238   :  { %7373 = vmatpush2.bf16.msra.mxu1 %v10063_v18  ;;  %7333 = vmatprep.subr.bf16.mxu0 %v10068_v20  ;;  %v10134_v18 = vld [vmem:[%s14191_s1 + $0x12e4] ss:$8 sps:$4 sm:$0xff]  }
 0x239   :  { %7374 = vmatprep.subr.bf16.mxu1 %v10071_v56  ;;  %v10137_v20 = vld [vmem:[%s14191_s1 + $0x13e4] ss:$8 sps:$4 sm:$0xff]   ;;  %v10132_v56 = vld [vmem:[%s14191_s1 + $0x12e0] ss:$8 sps:$4 sm:$0xff]  }
 0x23b   :  { %7334 = vmatpush2.bf16.msra.mxu0 %v10066_v22  ;;  %v10135_v22 = vld [vmem:[%s14191_s1 + $0x13e0] ss:$8 sps:$4 sm:$0xff]  }
 0x23c   :  { %7375 = vmatpush2.bf16.msra.mxu1 %v10069_v23  ;;  %7335 = vmatprep.subr.bf16.mxu0 %v10074_v24  ;;  %v10140_v23 = vld [vmem:[%s14191_s1 + $0x12d4] ss:$8 sps:$4 sm:$0xff]  }
 0x23d   :  { %7376 = vmatprep.subr.bf16.mxu1 %v10077_v26  ;;  %v10143_v24 = vld [vmem:[%s14191_s1 + $0x13d4] ss:$8 sps:$4 sm:$0xff]   ;;  %v10138_v26 = vld [vmem:[%s14191_s1 + $0x12d0] ss:$8 sps:$4 sm:$0xff]  }
 0x23f   :  { %7336 = vmatpush2.bf16.msra.mxu0 %v10072_v4  ;;  %v10149_v4 = vld [vmem:[%s14191_s1 + $0x13c4] ss:$8 sps:$4 sm:$0xff]  }
 0x240   :  { %7377 = vmatpush2.bf16.msra.mxu1 %v10075_v60  ;;  %7387 = vmatprep.subr.bf16.mxu0 %v10080_v30  ;;  %v10144_v60 = vld [vmem:[%s14191_s1 + $0x12c0] ss:$8 sps:$4 sm:$0xff]  }
 0x241   :  { %7428 = vmatprep.subr.bf16.mxu1 %v10083_v61  ;;  %v10147_v30 = vld [vmem:[%s14191_s1 + $0x13c0] ss:$8 sps:$4 sm:$0xff]   ;;  %v10152_v61 = vld [vmem:[%s14191_s1 + $0x12b4] ss:$8 sps:$4 sm:$0xff]  }
 0x242   :  { %v7093_v39 = vpop.f32.mrf.mxu0  ;;  %7338 = vmatmul.mubr.bf16.vlgmr.msra.gmra.mxu0 %v1292_v28  ;;  %v10146_v28 = vld [vmem:[%s14191_s1 + $0x12c4] ss:$8 sps:$4 sm:$0xff]  }
 0x243   :  { %v7134_v40 = vpop.f32.mrf.mxu1  ;;  %7379 = vmatmul.mubr.bf16.vlgmr.msra.gmra.mxu1 %v1314_v10  ;;  %v7094_v14 = vadd.f32 %v7093_v39, %v12498_v27  ;;  %7388 = vmatpush1.bf16.msra.mxu0 %v10078_v33  ;;  %v10095_v27 = vld [vmem:[%s14191_s1 + $0x1354] ss:$8 sps:$4 sm:$0xff]   ;;  %v10158_v10 = vld [vmem:[%s14191_s1 + $0x12a4] ss:$8 sps:$4 sm:$0xff]   ;;  %v10159_v39 = vld [vmem:[%s14191_s1 + $0x13a0] ss:$8 sps:$4 sm:$0xff]  }
 0x244   :  { %7429 = vmatpush1.bf16.msra.mxu1 %v10081_v9  ;;  %v7095_v45 = vpop.f32.mrf.mxu0  ;;  %7389 = vmatprep.subr.bf16.mxu0 %v10086_v37  ;;  %v10155_v33 = vld [vmem:[%s14191_s1 + $0x13b4] ss:$8 sps:$4 sm:$0xff]   ;;  %v10150_v9 = vld [vmem:[%s14191_s1 + $0x12b0] ss:$8 sps:$4 sm:$0xff]   ;;  %v10161_v37 = vld [vmem:[%s14191_s1 + $0x13a4] ss:$8 sps:$4 sm:$0xff]  }
 0x245   :  { %v7136_v46 = vpop.f32.mrf.mxu1  ;;  %7430 = vmatprep.subr.bf16.mxu1 %v10089_v29  ;;  %v12706_v50 = vadd.f32 %v7134_v40, %v7094_v14  ;;  %v7096_v25 = vadd.f32 %v7095_v45, %v12507_v34  ;;  %7419 = vmatprep.mubr.bf16.mxu0 %v1313_v36  ;;  %v10098_v34 = vld [vmem:[%s14191_s1 + $0x1244] ss:$8 sps:$4 sm:$0xff]   ;;  %v10153_v36 = vld [vmem:[%s14191_s1 + $0x13b0] ss:$8 sps:$4 sm:$0xff]   ;;  %v10164_v40 = vld [vmem:[%s14191_s1 + $0x1294] ss:$8 sps:$4 sm:$0xff]  }
 0x246   :  { %7460 = vmatprep.mubr.bf16.mxu1 %v1317_v38  ;;  %v7097_v51 = vpop.f32.mrf.mxu0  ;;  %v12846_v29 = vld [vmem:[%s14192_s0 + $0x28] sm:$0xff]  ;;  %v10167_v14 = vld [vmem:[%s14191_s1 + $0x1394] ss:$8 sps:$4 sm:$0xff]   ;;  %v10165_v45 = vld [vmem:[%s14191_s1 + $0x1390] ss:$8 sps:$4 sm:$0xff]  }
 0x247   :  { %v7138_v6 = vpop.f32.mrf.mxu1  ;;  %v12709_v19 = vadd.f32 %v7136_v46, %v7096_v25  ;;  %7390 = vmatpush1.bf16.msra.mxu0 %v10084_v43  ;;  %v10156_v38 = vld [vmem:[%s14191_s1 + $0x12a0] ss:$8 sps:$4 sm:$0xff]   ;;  %v12862_v43 = vrot.slane %v12846_v29, %v10936_v49  ;;  %v10170_v46 = vld [vmem:[%s14191_s1 + $0x1284] ss:$8 sps:$4 sm:$0xff]   ;;  %v1299_v25 = vrot.slane %v12650_v21, %v10936_v49  ;;  %v10180_v21 = vld [vmem:[%s14191_s1 + $0x1574] ss:$8 sps:$4 sm:$0xff]  }
 0x248   :  { %7431 = vmatpush1.bf16.msra.mxu1 %v10087_v44  ;;  %v7098_v42 = vpop.f32.mrf.mxu0  ;;  %7391 = vmatprep.subr.bf16.mxu0 %v10092_v47  ;;  %v10162_v44 = vld [vmem:[%s14191_s1 + $0x1290] ss:$8 sps:$4 sm:$0xff]   ;;  %v10173_v47 = vld [vmem:[%s14191_s1 + $0x1384] ss:$8 sps:$4 sm:$0xff]   ;;  %v10168_v51 = vld [vmem:[%s14191_s1 + $0x1280] ss:$8 sps:$4 sm:$0xff]  }
 0x249   :  { %v7139_v31 = vpop.f32.mrf.mxu1  ;;  %7432 = vmatprep.subr.bf16.mxu1 %v10095_v27  ;;  %v1333_v27 = vcombine.high %v12862_v43, %v12862_v43  ;;  %v10171_v6 = vld [vmem:[%s14191_s1 + $0x1380] ss:$8 sps:$4 sm:$0xff]   ;;  %v1315_v42 = vcombine.high %v1299_v25, %v1299_v25 }
 0x24a   :  { %v10175_v31 = vld [vmem:[%s14191_s1 + $0x1470] ss:$8 sps:$4 sm:$0xff]  }
 0x24b   :  { %7392 = vmatpush1.bf16.msra.mxu0 %v10090_v52  ;;  %v10177_v52 = vld [vmem:[%s14191_s1 + $0x1474] ss:$8 sps:$4 sm:$0xff]  }
 0x24c   :  { %7433 = vmatpush1.bf16.msra.mxu1 %v10093_v54  ;;  %7393 = vmatprep.subr.bf16.mxu0 %v10098_v34  ;;  %v1355_v54 = vrot.slane %v1333_v27, %v10936_v49  ;;  %v10178_v34 = vld [vmem:[%s14191_s1 + $0x1570] ss:$8 sps:$4 sm:$0xff]  }
 0x24d   :  { %7434 = vmatprep.subr.bf16.mxu1 %v10101_v55  ;;  %v10183_v55 = vld [vmem:[%s14191_s1 + $0x1464] ss:$8 sps:$4 sm:$0xff]   ;;  %v10235_v27 = vld [vmem:[%s14191_s1 + $0x14d0] ss:$8 sps:$4 sm:$0xff]  }
 0x24f   :  { %7394 = vmatpush1.bf16.msra.mxu0 %v10096_v57  ;;  %v10186_v57 = vld [vmem:[%s14191_s1 + $0x1564] ss:$8 sps:$4 sm:$0xff]  }
 0x250   :  { %7435 = vmatpush1.bf16.msra.mxu1 %v10099_v58  ;;  %7395 = vmatprep.subr.bf16.mxu0 %v10104_v59  ;;  %v1365_v58 = vcombine.high %v1355_v54, %v1355_v54 }
 0x251   :  { %7436 = vmatprep.subr.bf16.mxu1 %v10107_v32 }
 0x253   :  { %7396 = vmatpush1.bf16.msra.mxu0 %v10102_v62 }
 0x254   :  { %7437 = vmatpush1.bf16.msra.mxu1 %v10105_v63  ;;  %7397 = vmatprep.subr.bf16.mxu0 %v10110_v0  ;;  %v10181_v63 = vld [vmem:[%s14191_s1 + $0x1460] ss:$8 sps:$4 sm:$0xff]  }
 0x255   :  { %7438 = vmatprep.subr.bf16.mxu1 %v10113_v1  ;;  %v10184_v0 = vld [vmem:[%s14191_s1 + $0x1560] ss:$8 sps:$4 sm:$0xff]  }
 0x257   :  { %7398 = vmatpush1.bf16.msra.mxu0 %v10108_v3 }
 0x258   :  { %7439 = vmatpush1.bf16.msra.mxu1 %v10111_v5  ;;  %7399 = vmatprep.subr.bf16.mxu0 %v10116_v48  ;;  %v10189_v5 = vld [vmem:[%s14191_s1 + $0x1454] ss:$8 sps:$4 sm:$0xff]  }
 0x259   :  { %7440 = vmatprep.subr.bf16.mxu1 %v10119_v7 }
 0x25b   :  { %7400 = vmatpush1.bf16.msra.mxu0 %v10114_v35 }
 0x25c   :  { %7441 = vmatpush1.bf16.msra.mxu1 %v10117_v41  ;;  %7401 = vmatprep.subr.bf16.mxu0 %v10122_v8 }
 0x25d   :  { %7442 = vmatprep.subr.bf16.mxu1 %v10125_v11  ;;  %v10187_v11 = vld [vmem:[%s14191_s1 + $0x1450] ss:$8 sps:$4 sm:$0xff]  }
 0x25f   :  { %7402 = vmatpush1.bf16.msra.mxu0 %v10120_v12  ;;  %v10190_v12 = vld [vmem:[%s14191_s1 + $0x1550] ss:$8 sps:$4 sm:$0xff]  }
 0x260   :  { %7443 = vmatpush1.bf16.msra.mxu1 %v10123_v53  ;;  %7403 = vmatprep.subr.bf16.mxu0 %v10128_v13 }
 0x261   :  { %7444 = vmatprep.subr.bf16.mxu1 %v10131_v15  ;;  %v10198_v15 = vld [vmem:[%s14191_s1 + $0x1544] ss:$8 sps:$4 sm:$0xff]  }
 0x263   :  { %7404 = vmatpush2.bf16.msra.mxu0 %v10126_v16  ;;  %v10193_v16 = vld [vmem:[%s14191_s1 + $0x1440] ss:$8 sps:$4 sm:$0xff]  }
 0x264   :  { %7445 = vmatpush2.bf16.msra.mxu1 %v10129_v17  ;;  %7405 = vmatprep.subr.bf16.mxu0 %v10134_v18  ;;  %v10196_v17 = vld [vmem:[%s14191_s1 + $0x1540] ss:$8 sps:$4 sm:$0xff]   ;;  %v10201_v18 = vld [vmem:[%s14191_s1 + $0x1434] ss:$8 sps:$4 sm:$0xff]  }
 0x265   :  { %7446 = vmatprep.subr.bf16.mxu1 %v10137_v20  ;;  %v10204_v20 = vld [vmem:[%s14191_s1 + $0x1534] ss:$8 sps:$4 sm:$0xff]  }
 0x267   :  { %7406 = vmatpush2.bf16.msra.mxu0 %v10132_v56  ;;  %v10199_v56 = vld [vmem:[%s14191_s1 + $0x1430] ss:$8 sps:$4 sm:$0xff]  }
 0x268   :  { %7447 = vmatpush2.bf16.msra.mxu1 %v10135_v22  ;;  %7407 = vmatprep.subr.bf16.mxu0 %v10140_v23  ;;  %v10202_v22 = vld [vmem:[%s14191_s1 + $0x1530] ss:$8 sps:$4 sm:$0xff]   ;;  %v10207_v23 = vld [vmem:[%s14191_s1 + $0x1424] ss:$8 sps:$4 sm:$0xff]  }
 0x269   :  { %7448 = vmatprep.subr.bf16.mxu1 %v10143_v24  ;;  %v10210_v24 = vld [vmem:[%s14191_s1 + $0x1524] ss:$8 sps:$4 sm:$0xff]  }
 0x26b   :  { %7408 = vmatpush2.bf16.msra.mxu0 %v10138_v26  ;;  %v10205_v26 = vld [vmem:[%s14191_s1 + $0x1420] ss:$8 sps:$4 sm:$0xff]  }
 0x26c   :  { %7449 = vmatpush2.bf16.msra.mxu1 %v10141_v2  ;;  %7409 = vmatprep.subr.bf16.mxu0 %v10146_v28  ;;  %v10208_v2 = vld [vmem:[%s14191_s1 + $0x1520] ss:$8 sps:$4 sm:$0xff]   ;;  %v10213_v28 = vld [vmem:[%s14191_s1 + $0x1414] ss:$8 sps:$4 sm:$0xff]  }
 0x26d   :  { %7450 = vmatprep.subr.bf16.mxu1 %v10149_v4  ;;  %v10216_v4 = vld [vmem:[%s14191_s1 + $0x1514] ss:$8 sps:$4 sm:$0xff]  }
 0x26f   :  { %7410 = vmatpush2.bf16.msra.mxu0 %v10144_v60  ;;  %v10211_v60 = vld [vmem:[%s14191_s1 + $0x1410] ss:$8 sps:$4 sm:$0xff]  }
 0x270   :  { %7451 = vmatpush2.bf16.msra.mxu1 %v10147_v30  ;;  %7411 = vmatprep.subr.bf16.mxu0 %v10152_v61  ;;  %v10214_v30 = vld [vmem:[%s14191_s1 + $0x1510] ss:$8 sps:$4 sm:$0xff]   ;;  %v10219_v61 = vld [vmem:[%s14191_s1 + $0x1404] ss:$8 sps:$4 sm:$0xff]  }
 0x271   :  { %7452 = vmatprep.subr.bf16.mxu1 %v10155_v33  ;;  %v10222_v33 = vld [vmem:[%s14191_s1 + $0x1504] ss:$8 sps:$4 sm:$0xff]  }
 0x273   :  { %7412 = vmatpush2.bf16.msra.mxu0 %v10150_v9  ;;  %v10217_v9 = vld [vmem:[%s14191_s1 + $0x1400] ss:$8 sps:$4 sm:$0xff]  }
 0x274   :  { %7453 = vmatpush2.bf16.msra.mxu1 %v10153_v36  ;;  %7413 = vmatprep.subr.bf16.mxu0 %v10158_v10  ;;  %v10220_v36 = vld [vmem:[%s14191_s1 + $0x1500] ss:$8 sps:$4 sm:$0xff]   ;;  %v10225_v10 = vld [vmem:[%s14191_s1 + $0x14f4] ss:$8 sps:$4 sm:$0xff]  }
 0x275   :  { %7454 = vmatprep.subr.bf16.mxu1 %v10161_v37  ;;  %v10228_v37 = vld [vmem:[%s14191_s1 + $0x15f4] ss:$8 sps:$4 sm:$0xff]  }
 0x277   :  { %7414 = vmatpush2.bf16.msra.mxu0 %v10156_v38  ;;  %v10223_v38 = vld [vmem:[%s14191_s1 + $0x14f0] ss:$8 sps:$4 sm:$0xff]  }
 0x278   :  { %7455 = vmatpush2.bf16.msra.mxu1 %v10159_v39  ;;  %7415 = vmatprep.subr.bf16.mxu0 %v10164_v40  ;;  %v10226_v39 = vld [vmem:[%s14191_s1 + $0x15f0] ss:$8 sps:$4 sm:$0xff]   ;;  %v10231_v40 = vld [vmem:[%s14191_s1 + $0x14e4] ss:$8 sps:$4 sm:$0xff]  }
 0x279   :  { %7456 = vmatprep.subr.bf16.mxu1 %v10167_v14  ;;  %v10234_v14 = vld [vmem:[%s14191_s1 + $0x15e4] ss:$8 sps:$4 sm:$0xff]  }
 0x27b   :  { %7416 = vmatpush2.bf16.msra.mxu0 %v10162_v44  ;;  %v10229_v44 = vld [vmem:[%s14191_s1 + $0x14e0] ss:$8 sps:$4 sm:$0xff]  }
 0x27c   :  { %7457 = vmatpush2.bf16.msra.mxu1 %v10165_v45  ;;  %7417 = vmatprep.subr.bf16.mxu0 %v10170_v46  ;;  %v10232_v45 = vld [vmem:[%s14191_s1 + $0x15e0] ss:$8 sps:$4 sm:$0xff]   ;;  %v10237_v46 = vld [vmem:[%s14191_s1 + $0x14d4] ss:$8 sps:$4 sm:$0xff]  }
 0x27d   :  { %7458 = vmatprep.subr.bf16.mxu1 %v10173_v47  ;;  %v10240_v47 = vld [vmem:[%s14191_s1 + $0x15d4] ss:$8 sps:$4 sm:$0xff]  }
 0x27f   :  { %7418 = vmatpush2.bf16.msra.mxu0 %v10168_v51  ;;  %v10243_v51 = vld [vmem:[%s14191_s1 + $0x14c4] ss:$8 sps:$4 sm:$0xff]  }
 0x280   :  { %7459 = vmatpush2.bf16.msra.mxu1 %v10171_v6  ;;  %7469 = vmatprep.subr.bf16.mxu0 %v10177_v52  ;;  %v10246_v6 = vld [vmem:[%s14191_s1 + $0x15c4] ss:$8 sps:$4 sm:$0xff]   ;;  %v10241_v52 = vld [vmem:[%s14191_s1 + $0x14c0] ss:$8 sps:$4 sm:$0xff]  }
 0x281   :  { %7510 = vmatprep.subr.bf16.mxu1 %v10180_v21  ;;  %v10244_v21 = vld [vmem:[%s14191_s1 + $0x15c0] ss:$8 sps:$4 sm:$0xff]  }
 0x282   :  { %v7175_v59 = vpop.f32.mrf.mxu0  ;;  %7420 = vmatmul.mubr.bf16.vlgmr.msra.gmra.mxu0 %v1299_v25  ;;  %v10238_v25 = vld [vmem:[%s14191_s1 + $0x15d0] ss:$8 sps:$4 sm:$0xff]  }
 0x283   :  { %v7216_v32 = vpop.f32.mrf.mxu1  ;;  %7461 = vmatmul.mubr.bf16.vlgmr.msra.gmra.mxu1 %v1315_v42  ;;  %v7176_v62 = vadd.f32 %v7175_v59, %v12706_v50  ;;  %7470 = vmatpush1.bf16.msra.mxu0 %v10175_v31  ;;  %v10192_v50 = vld [vmem:[%s14191_s1 + $0x1554] ss:$8 sps:$4 sm:$0xff]   ;;  %v10247_v31 = vld [vmem:[%s14191_s1 + $0x14b0] ss:$8 sps:$4 sm:$0xff]   ;;  %v10253_v59 = vld [vmem:[%s14191_s1 + $0x14a0] ss:$8 sps:$4 sm:$0xff]  }
 0x284   :  { %7511 = vmatpush1.bf16.msra.mxu1 %v10178_v34  ;;  %v7177_v1 = vpop.f32.mrf.mxu0  ;;  %7471 = vmatprep.subr.bf16.mxu0 %v10183_v55  ;;  %v10252_v42 = vld [vmem:[%s14191_s1 + $0x15b4] ss:$8 sps:$4 sm:$0xff]   ;;  %v10250_v34 = vld [vmem:[%s14191_s1 + $0x15b0] ss:$8 sps:$4 sm:$0xff]   ;;  %v10255_v55 = vld [vmem:[%s14191_s1 + $0x14a4] ss:$8 sps:$4 sm:$0xff]  }
 0x285   :  { %v7218_v3 = vpop.f32.mrf.mxu1  ;;  %7512 = vmatprep.subr.bf16.mxu1 %v10186_v57  ;;  %v12918_v48 = vadd.f32 %v7216_v32, %v7176_v62  ;;  %v7178_v7 = vadd.f32 %v7177_v1, %v12709_v19  ;;  %7501 = vmatprep.mubr.bf16.mxu0 %v1355_v54  ;;  %v10195_v19 = vld [vmem:[%s14191_s1 + $0x1444] ss:$8 sps:$4 sm:$0xff]   ;;  %v10249_v54 = vld [vmem:[%s14191_s1 + $0x14b4] ss:$8 sps:$4 sm:$0xff]   ;;  %v10256_v32 = vld [vmem:[%s14191_s1 + $0x15a0] ss:$8 sps:$4 sm:$0xff]  }
 0x286   :  { %7542 = vmatprep.mubr.bf16.mxu1 %v1365_v58  ;;  %v7179_v35 = vpop.f32.mrf.mxu0  ;;  %v10258_v57 = vld [vmem:[%s14191_s1 + $0x15a4] ss:$8 sps:$4 sm:$0xff]   ;;  %v1318_v58 = vcombine.high %v12846_v29, %v12846_v29  ;;  %v10261_v62 = vld [vmem:[%s14191_s1 + $0x1494] ss:$8 sps:$4 sm:$0xff]   ;;  %v10262_v1 = vld [vmem:[%s14191_s1 + $0x1590] ss:$8 sps:$4 sm:$0xff]  }
 0x287   :  { %v7220_v41 = vpop.f32.mrf.mxu1  ;;  %v12921_v8 = vadd.f32 %v7218_v3, %v7178_v7  ;;  %7472 = vmatpush1.bf16.msra.mxu0 %v10181_v63  ;;  %v10264_v29 = vld [vmem:[%s14191_s1 + $0x1594] ss:$8 sps:$4 sm:$0xff]   ;;  %v10267_v3 = vld [vmem:[%s14191_s1 + $0x1484] ss:$8 sps:$4 sm:$0xff]   ;;  %v1341_v7 = vrot.slane %v12862_v43, %v10936_v49  ;;  %v10265_v35 = vld [vmem:[%s14191_s1 + $0x1480] ss:$8 sps:$4 sm:$0xff]  }
 0x288   :  { %7513 = vmatpush1.bf16.msra.mxu1 %v10184_v0  ;;  %v7180_v53 = vpop.f32.mrf.mxu0  ;;  %7473 = vmatprep.subr.bf16.mxu0 %v10189_v5  ;;  %v13070_v63 = vrot.slane %v1318_v58, %v10936_v49  ;;  %v10259_v0 = vld [vmem:[%s14191_s1 + $0x1490] ss:$8 sps:$4 sm:$0xff]   ;;  %v10270_v5 = vld [vmem:[%s14191_s1 + $0x1584] ss:$8 sps:$4 sm:$0xff]   ;;  %v10268_v41 = vld [vmem:[%s14191_s1 + $0x1580] ss:$8 sps:$4 sm:$0xff]  }
 0x289   :  { %v7221_v13 = vpop.f32.mrf.mxu1  ;;  %7514 = vmatprep.subr.bf16.mxu1 %v10192_v50  ;;  %v10276_v43 = vld [vmem:[%s14191_s1 + $0x1774] ss:$8 sps:$4 sm:$0xff]   ;;  %v1363_v53 = vcombine.high %v1341_v7, %v1341_v7  ;;  %v10319_v58 = vld [vmem:[%s14191_s1 + $0x16f0] ss:$8 sps:$4 sm:$0xff]  }
 0x28a   :  { %v1334_v50 = vcombine.high %v13070_v63, %v13070_v63  ;;  %v10271_v13 = vld [vmem:[%s14191_s1 + $0x1670] ss:$8 sps:$4 sm:$0xff]  }
 0x28b   :  { %7474 = vmatpush1.bf16.msra.mxu0 %v10187_v11  ;;  %v10273_v11 = vld [vmem:[%s14191_s1 + $0x1674] ss:$8 sps:$4 sm:$0xff]  }
 0x28c   :  { %7515 = vmatpush1.bf16.msra.mxu1 %v10190_v12  ;;  %7475 = vmatprep.subr.bf16.mxu0 %v10195_v19  ;;  %v1362_v12 = vrot.slane %v1334_v50, %v10936_v49  ;;  %v10274_v19 = vld [vmem:[%s14191_s1 + $0x1770] ss:$8 sps:$4 sm:$0xff]  }
 0x28d   :  { %7516 = vmatprep.subr.bf16.mxu1 %v10198_v15  ;;  %v10279_v15 = vld [vmem:[%s14191_s1 + $0x1664] ss:$8 sps:$4 sm:$0xff]   ;;  %v10334_v50 = vld [vmem:[%s14191_s1 + $0x17d0] ss:$8 sps:$4 sm:$0xff]  }
 0x28f   :  { %7476 = vmatpush1.bf16.msra.mxu0 %v10193_v16  ;;  %v10282_v16 = vld [vmem:[%s14191_s1 + $0x1764] ss:$8 sps:$4 sm:$0xff]  }
 0x290   :  { %7517 = vmatpush1.bf16.msra.mxu1 %v10196_v17  ;;  %7477 = vmatprep.subr.bf16.mxu0 %v10201_v18  ;;  %v1366_v17 = vcombine.high %v1362_v12, %v1362_v12 }
 0x291   :  { %7518 = vmatprep.subr.bf16.mxu1 %v10204_v20 }
 0x293   :  { %7478 = vmatpush1.bf16.msra.mxu0 %v10199_v56 }
 0x294   :  { %7519 = vmatpush1.bf16.msra.mxu1 %v10202_v22  ;;  %7479 = vmatprep.subr.bf16.mxu0 %v10207_v23  ;;  %v10277_v22 = vld [vmem:[%s14191_s1 + $0x1660] ss:$8 sps:$4 sm:$0xff]  }
 0x295   :  { %7520 = vmatprep.subr.bf16.mxu1 %v10210_v24  ;;  %v10280_v23 = vld [vmem:[%s14191_s1 + $0x1760] ss:$8 sps:$4 sm:$0xff]  }
 0x297   :  { %7480 = vmatpush1.bf16.msra.mxu0 %v10205_v26 }
 0x298   :  { %7521 = vmatpush1.bf16.msra.mxu1 %v10208_v2  ;;  %7481 = vmatprep.subr.bf16.mxu0 %v10213_v28  ;;  %v10285_v2 = vld [vmem:[%s14191_s1 + $0x1654] ss:$8 sps:$4 sm:$0xff]  }
 0x299   :  { %7522 = vmatprep.subr.bf16.mxu1 %v10216_v4 }
 0x29b   :  { %7482 = vmatpush1.bf16.msra.mxu0 %v10211_v60 }
 0x29c   :  { %7523 = vmatpush1.bf16.msra.mxu1 %v10214_v30  ;;  %7483 = vmatprep.subr.bf16.mxu0 %v10219_v61 }
 0x29d   :  { %7524 = vmatprep.subr.bf16.mxu1 %v10222_v33  ;;  %v10283_v33 = vld [vmem:[%s14191_s1 + $0x1650] ss:$8 sps:$4 sm:$0xff]  }
 0x29f   :  { %7484 = vmatpush1.bf16.msra.mxu0 %v10217_v9  ;;  %v10286_v9 = vld [vmem:[%s14191_s1 + $0x1750] ss:$8 sps:$4 sm:$0xff]  }
 0x2a0   :  { %7525 = vmatpush1.bf16.msra.mxu1 %v10220_v36  ;;  %7485 = vmatprep.subr.bf16.mxu0 %v10225_v10 }
 0x2a1   :  { %7526 = vmatprep.subr.bf16.mxu1 %v10228_v37  ;;  %v10294_v37 = vld [vmem:[%s14191_s1 + $0x1744] ss:$8 sps:$4 sm:$0xff]  }
 0x2a3   :  { %7486 = vmatpush2.bf16.msra.mxu0 %v10223_v38  ;;  %v10289_v38 = vld [vmem:[%s14191_s1 + $0x1640] ss:$8 sps:$4 sm:$0xff]  }
 0x2a4   :  { %7527 = vmatpush2.bf16.msra.mxu1 %v10226_v39  ;;  %7487 = vmatprep.subr.bf16.mxu0 %v10231_v40  ;;  %v10292_v39 = vld [vmem:[%s14191_s1 + $0x1740] ss:$8 sps:$4 sm:$0xff]   ;;  %v10297_v40 = vld [vmem:[%s14191_s1 + $0x1634] ss:$8 sps:$4 sm:$0xff]  }
 0x2a5   :  { %7528 = vmatprep.subr.bf16.mxu1 %v10234_v14  ;;  %v10300_v14 = vld [vmem:[%s14191_s1 + $0x1734] ss:$8 sps:$4 sm:$0xff]  }
 0x2a7   :  { %7488 = vmatpush2.bf16.msra.mxu0 %v10229_v44  ;;  %v10295_v44 = vld [vmem:[%s14191_s1 + $0x1630] ss:$8 sps:$4 sm:$0xff]  }
 0x2a8   :  { %7529 = vmatpush2.bf16.msra.mxu1 %v10232_v45  ;;  %7489 = vmatprep.subr.bf16.mxu0 %v10237_v46  ;;  %v10298_v45 = vld [vmem:[%s14191_s1 + $0x1730] ss:$8 sps:$4 sm:$0xff]   ;;  %v10303_v46 = vld [vmem:[%s14191_s1 + $0x1624] ss:$8 sps:$4 sm:$0xff]  }
 0x2a9   :  { %7530 = vmatprep.subr.bf16.mxu1 %v10240_v47  ;;  %v10306_v47 = vld [vmem:[%s14191_s1 + $0x1724] ss:$8 sps:$4 sm:$0xff]  }
 0x2ab   :  { %7490 = vmatpush2.bf16.msra.mxu0 %v10235_v27  ;;  %v10301_v27 = vld [vmem:[%s14191_s1 + $0x1620] ss:$8 sps:$4 sm:$0xff]  }
 0x2ac   :  { %7531 = vmatpush2.bf16.msra.mxu1 %v10238_v25  ;;  %7491 = vmatprep.subr.bf16.mxu0 %v10243_v51  ;;  %v10304_v25 = vld [vmem:[%s14191_s1 + $0x1720] ss:$8 sps:$4 sm:$0xff]   ;;  %v10309_v51 = vld [vmem:[%s14191_s1 + $0x1614] ss:$8 sps:$4 sm:$0xff]  }
 0x2ad   :  { %7532 = vmatprep.subr.bf16.mxu1 %v10246_v6  ;;  %v10312_v6 = vld [vmem:[%s14191_s1 + $0x1714] ss:$8 sps:$4 sm:$0xff]  }
 0x2af   :  { %7492 = vmatpush2.bf16.msra.mxu0 %v10241_v52  ;;  %v10307_v52 = vld [vmem:[%s14191_s1 + $0x1610] ss:$8 sps:$4 sm:$0xff]  }
 0x2b0   :  { %7533 = vmatpush2.bf16.msra.mxu1 %v10244_v21  ;;  %7493 = vmatprep.subr.bf16.mxu0 %v10249_v54  ;;  %v10310_v21 = vld [vmem:[%s14191_s1 + $0x1710] ss:$8 sps:$4 sm:$0xff]   ;;  %v10315_v54 = vld [vmem:[%s14191_s1 + $0x1604] ss:$8 sps:$4 sm:$0xff]  }
 0x2b1   :  { %7534 = vmatprep.subr.bf16.mxu1 %v10252_v42  ;;  %v10318_v42 = vld [vmem:[%s14191_s1 + $0x1704] ss:$8 sps:$4 sm:$0xff]  }
 0x2b3   :  { %7494 = vmatpush2.bf16.msra.mxu0 %v10247_v31  ;;  %v10313_v31 = vld [vmem:[%s14191_s1 + $0x1600] ss:$8 sps:$4 sm:$0xff]  }
 0x2b4   :  { %7535 = vmatpush2.bf16.msra.mxu1 %v10250_v34  ;;  %7495 = vmatprep.subr.bf16.mxu0 %v10255_v55  ;;  %v10316_v34 = vld [vmem:[%s14191_s1 + $0x1700] ss:$8 sps:$4 sm:$0xff]   ;;  %v10321_v55 = vld [vmem:[%s14191_s1 + $0x16f4] ss:$8 sps:$4 sm:$0xff]  }
 0x2b5   :  { %7536 = vmatprep.subr.bf16.mxu1 %v10258_v57  ;;  %v10324_v57 = vld [vmem:[%s14191_s1 + $0x17f4] ss:$8 sps:$4 sm:$0xff]  }
 0x2b7   :  { %7496 = vmatpush2.bf16.msra.mxu0 %v10253_v59  ;;  %v10322_v59 = vld [vmem:[%s14191_s1 + $0x17f0] ss:$8 sps:$4 sm:$0xff]  }
 0x2b8   :  { %7537 = vmatpush2.bf16.msra.mxu1 %v10256_v32  ;;  %7497 = vmatprep.subr.bf16.mxu0 %v10261_v62  ;;  %v10327_v32 = vld [vmem:[%s14191_s1 + $0x16e4] ss:$8 sps:$4 sm:$0xff]  }
 0x2b9   :  { %7538 = vmatprep.subr.bf16.mxu1 %v10264_v29  ;;  %v10330_v62 = vld [vmem:[%s14191_s1 + $0x17e4] ss:$8 sps:$4 sm:$0xff]   ;;  %v10325_v29 = vld [vmem:[%s14191_s1 + $0x16e0] ss:$8 sps:$4 sm:$0xff]  }
 0x2bb   :  { %7498 = vmatpush2.bf16.msra.mxu0 %v10259_v0  ;;  %v10328_v0 = vld [vmem:[%s14191_s1 + $0x17e0] ss:$8 sps:$4 sm:$0xff]  }
 0x2bc   :  { %7539 = vmatpush2.bf16.msra.mxu1 %v10262_v1  ;;  %7499 = vmatprep.subr.bf16.mxu0 %v10267_v3  ;;  %v10333_v1 = vld [vmem:[%s14191_s1 + $0x16d4] ss:$8 sps:$4 sm:$0xff]  }
 0x2bd   :  { %7540 = vmatprep.subr.bf16.mxu1 %v10270_v5  ;;  %v10336_v3 = vld [vmem:[%s14191_s1 + $0x17d4] ss:$8 sps:$4 sm:$0xff]   ;;  %v10331_v5 = vld [vmem:[%s14191_s1 + $0x16d0] ss:$8 sps:$4 sm:$0xff]  }
 0x2bf   :  { %7500 = vmatpush2.bf16.msra.mxu0 %v10265_v35  ;;  %v10342_v35 = vld [vmem:[%s14191_s1 + $0x17c4] ss:$8 sps:$4 sm:$0xff]  }
 0x2c0   :  { %7541 = vmatpush2.bf16.msra.mxu1 %v10268_v41  ;;  %7551 = vmatprep.subr.bf16.mxu0 %v10273_v11  ;;  %v10337_v41 = vld [vmem:[%s14191_s1 + $0x16c0] ss:$8 sps:$4 sm:$0xff]  }
 0x2c1   :  { %7592 = vmatprep.subr.bf16.mxu1 %v10276_v43  ;;  %v10340_v11 = vld [vmem:[%s14191_s1 + $0x17c0] ss:$8 sps:$4 sm:$0xff]   ;;  %v10345_v43 = vld [vmem:[%s14191_s1 + $0x16b4] ss:$8 sps:$4 sm:$0xff]  }
 0x2c2   :  { %v7257_v18 = vpop.f32.mrf.mxu0  ;;  %7502 = vmatmul.mubr.bf16.vlgmr.msra.gmra.mxu0 %v1341_v7  ;;  %v10339_v7 = vld [vmem:[%s14191_s1 + $0x16c4] ss:$8 sps:$4 sm:$0xff]  }
 0x2c3   :  { %v7298_v20 = vpop.f32.mrf.mxu1  ;;  %7543 = vmatmul.mubr.bf16.vlgmr.msra.gmra.mxu1 %v1363_v53  ;;  %v7258_v56 = vadd.f32 %v7257_v18, %v12918_v48  ;;  %7552 = vmatpush1.bf16.msra.mxu0 %v10271_v13  ;;  %v10288_v48 = vld [vmem:[%s14191_s1 + $0x1754] ss:$8 sps:$4 sm:$0xff]   ;;  %v10343_v53 = vld [vmem:[%s14191_s1 + $0x16b0] ss:$8 sps:$4 sm:$0xff]   ;;  %v10352_v18 = vld [vmem:[%s14191_s1 + $0x17a0] ss:$8 sps:$4 sm:$0xff]  }
 0x2c4   :  { %7593 = vmatpush1.bf16.msra.mxu1 %v10274_v19  ;;  %v7259_v24 = vpop.f32.mrf.mxu0  ;;  %7553 = vmatprep.subr.bf16.mxu0 %v10279_v15  ;;  %v10346_v13 = vld [vmem:[%s14191_s1 + $0x17b0] ss:$8 sps:$4 sm:$0xff]   ;;  %v10351_v19 = vld [vmem:[%s14191_s1 + $0x16a4] ss:$8 sps:$4 sm:$0xff]  }
 0x2c5   :  { %v7300_v26 = vpop.f32.mrf.mxu1  ;;  %7594 = vmatprep.subr.bf16.mxu1 %v10282_v16  ;;  %v13126_v28 = vadd.f32 %v7298_v20, %v7258_v56  ;;  %v7260_v4 = vadd.f32 %v7259_v24, %v12921_v8  ;;  %7583 = vmatprep.mubr.bf16.mxu0 %v1362_v12  ;;  %v10291_v8 = vld [vmem:[%s14191_s1 + $0x1644] ss:$8 sps:$4 sm:$0xff]   ;;  %v10348_v12 = vld [vmem:[%s14191_s1 + $0x17b4] ss:$8 sps:$4 sm:$0xff]   ;;  %v10358_v24 = vld [vmem:[%s14191_s1 + $0x1790] ss:$8 sps:$4 sm:$0xff]  }
 0x2c6   :  { %7624 = vmatprep.mubr.bf16.mxu1 %v1366_v17  ;;  %v7261_v60 = vpop.f32.mrf.mxu0  ;;  %v10354_v15 = vld [vmem:[%s14191_s1 + $0x17a4] ss:$8 sps:$4 sm:$0xff]   ;;  %v13266_v16 = vld [vmem:[%s14192_s0 + $0x30] sm:$0xff]  ;;  %v10349_v17 = vld [vmem:[%s14191_s1 + $0x16a0] ss:$8 sps:$4 sm:$0xff]  }
 0x2c7   :  { %v7302_v30 = vpop.f32.mrf.mxu1  ;;  %v13129_v61 = vadd.f32 %v7300_v26, %v7260_v4  ;;  %7554 = vmatpush1.bf16.msra.mxu0 %v10277_v22  ;;  %v10357_v20 = vld [vmem:[%s14191_s1 + $0x1694] ss:$8 sps:$4 sm:$0xff]   ;;  %v13282_v22 = vrot.slane %v13266_v16, %v10936_v49  ;;  %v10363_v26 = vld [vmem:[%s14191_s1 + $0x1684] ss:$8 sps:$4 sm:$0xff]   ;;  %v1348_v4 = vrot.slane %v13070_v63, %v10936_v49  ;;  %v10361_v60 = vld [vmem:[%s14191_s1 + $0x1680] ss:$8 sps:$4 sm:$0xff]  }
 0x2c8   :  { %7595 = vmatpush1.bf16.msra.mxu1 %v10280_v23  ;;  %v7262_v36 = vpop.f32.mrf.mxu0  ;;  %7555 = vmatprep.subr.bf16.mxu0 %v10285_v2  ;;  %v10360_v56 = vld [vmem:[%s14191_s1 + $0x1794] ss:$8 sps:$4 sm:$0xff]   ;;  %v10355_v23 = vld [vmem:[%s14191_s1 + $0x1690] ss:$8 sps:$4 sm:$0xff]   ;;  %v10366_v2 = vld [vmem:[%s14191_s1 + $0x1784] ss:$8 sps:$4 sm:$0xff]  }
 0x2c9   :  { %v7303_v10 = vpop.f32.mrf.mxu1  ;;  %7596 = vmatprep.subr.bf16.mxu1 %v10288_v48  ;;  %v1382_v48 = vcombine.high %v13282_v22, %v13282_v22  ;;  %v10364_v30 = vld [vmem:[%s14191_s1 + $0x1780] ss:$8 sps:$4 sm:$0xff]   ;;  %v10373_v63 = vld [vmem:[%s14191_s1 + $0x1974] ss:$8 sps:$4 sm:$0xff]   ;;  %v1364_v36 = vcombine.high %v1348_v4, %v1348_v4 }
 0x2ca   :  { %v10368_v10 = vld [vmem:[%s14191_s1 + $0x1870] ss:$8 sps:$4 sm:$0xff]  }
 0x2cb   :  { %7556 = vmatpush1.bf16.msra.mxu0 %v10283_v33  ;;  %v10370_v33 = vld [vmem:[%s14191_s1 + $0x1874] ss:$8 sps:$4 sm:$0xff]  }
 0x2cc   :  { %7597 = vmatpush1.bf16.msra.mxu1 %v10286_v9  ;;  %7557 = vmatprep.subr.bf16.mxu0 %v10291_v8  ;;  %v1404_v9 = vrot.slane %v1382_v48, %v10936_v49  ;;  %v10371_v8 = vld [vmem:[%s14191_s1 + $0x1970] ss:$8 sps:$4 sm:$0xff]  }
 0x2cd   :  { %7598 = vmatprep.subr.bf16.mxu1 %v10294_v37  ;;  %v10376_v37 = vld [vmem:[%s14191_s1 + $0x1864] ss:$8 sps:$4 sm:$0xff]   ;;  %v10428_v48 = vld [vmem:[%s14191_s1 + $0x18d0] ss:$8 sps:$4 sm:$0xff]  }
 0x2cf   :  { %7558 = vmatpush1.bf16.msra.mxu0 %v10289_v38  ;;  %v10379_v38 = vld [vmem:[%s14191_s1 + $0x1964] ss:$8 sps:$4 sm:$0xff]  }
 0x2d0   :  { %7599 = vmatpush1.bf16.msra.mxu1 %v10292_v39  ;;  %7559 = vmatprep.subr.bf16.mxu0 %v10297_v40  ;;  %v1414_v39 = vcombine.high %v1404_v9, %v1404_v9 }
 0x2d1   :  { %7600 = vmatprep.subr.bf16.mxu1 %v10300_v14 }
 0x2d3   :  { %7560 = vmatpush1.bf16.msra.mxu0 %v10295_v44 }
 0x2d4   :  { %7601 = vmatpush1.bf16.msra.mxu1 %v10298_v45  ;;  %7561 = vmatprep.subr.bf16.mxu0 %v10303_v46  ;;  %v10374_v45 = vld [vmem:[%s14191_s1 + $0x1860] ss:$8 sps:$4 sm:$0xff]  }
 0x2d5   :  { %7602 = vmatprep.subr.bf16.mxu1 %v10306_v47  ;;  %v10377_v46 = vld [vmem:[%s14191_s1 + $0x1960] ss:$8 sps:$4 sm:$0xff]  }
 0x2d7   :  { %7562 = vmatpush1.bf16.msra.mxu0 %v10301_v27 }
 0x2d8   :  { %7603 = vmatpush1.bf16.msra.mxu1 %v10304_v25  ;;  %7563 = vmatprep.subr.bf16.mxu0 %v10309_v51  ;;  %v10382_v25 = vld [vmem:[%s14191_s1 + $0x1854] ss:$8 sps:$4 sm:$0xff]  }
 0x2d9   :  { %7604 = vmatprep.subr.bf16.mxu1 %v10312_v6 }
 0x2db   :  { %7564 = vmatpush1.bf16.msra.mxu0 %v10307_v52 }
 0x2dc   :  { %7605 = vmatpush1.bf16.msra.mxu1 %v10310_v21  ;;  %7565 = vmatprep.subr.bf16.mxu0 %v10315_v54 }
 0x2dd   :  { %7606 = vmatprep.subr.bf16.mxu1 %v10318_v42  ;;  %v10380_v42 = vld [vmem:[%s14191_s1 + $0x1850] ss:$8 sps:$4 sm:$0xff]  }
 0x2df   :  { %7566 = vmatpush1.bf16.msra.mxu0 %v10313_v31  ;;  %v10383_v31 = vld [vmem:[%s14191_s1 + $0x1950] ss:$8 sps:$4 sm:$0xff]  }
 0x2e0   :  { %7607 = vmatpush1.bf16.msra.mxu1 %v10316_v34  ;;  %7567 = vmatprep.subr.bf16.mxu0 %v10321_v55 }
 0x2e1   :  { %7608 = vmatprep.subr.bf16.mxu1 %v10324_v57  ;;  %v10391_v57 = vld [vmem:[%s14191_s1 + $0x1944] ss:$8 sps:$4 sm:$0xff]  }
 0x2e3   :  { %7568 = vmatpush2.bf16.msra.mxu0 %v10319_v58  ;;  %v10386_v58 = vld [vmem:[%s14191_s1 + $0x1840] ss:$8 sps:$4 sm:$0xff]  }
 0x2e4   :  { %7609 = vmatpush2.bf16.msra.mxu1 %v10322_v59  ;;  %7569 = vmatprep.subr.bf16.mxu0 %v10327_v32  ;;  %v10389_v59 = vld [vmem:[%s14191_s1 + $0x1940] ss:$8 sps:$4 sm:$0xff]   ;;  %v10394_v32 = vld [vmem:[%s14191_s1 + $0x1834] ss:$8 sps:$4 sm:$0xff]  }
 0x2e5   :  { %7610 = vmatprep.subr.bf16.mxu1 %v10330_v62  ;;  %v10397_v62 = vld [vmem:[%s14191_s1 + $0x1934] ss:$8 sps:$4 sm:$0xff]  }
 0x2e7   :  { %7570 = vmatpush2.bf16.msra.mxu0 %v10325_v29  ;;  %v10392_v29 = vld [vmem:[%s14191_s1 + $0x1830] ss:$8 sps:$4 sm:$0xff]  }
 0x2e8   :  { %7611 = vmatpush2.bf16.msra.mxu1 %v10328_v0  ;;  %7571 = vmatprep.subr.bf16.mxu0 %v10333_v1  ;;  %v10395_v0 = vld [vmem:[%s14191_s1 + $0x1930] ss:$8 sps:$4 sm:$0xff]   ;;  %v10400_v1 = vld [vmem:[%s14191_s1 + $0x1824] ss:$8 sps:$4 sm:$0xff]  }
 0x2e9   :  { %7612 = vmatprep.subr.bf16.mxu1 %v10336_v3  ;;  %v10403_v3 = vld [vmem:[%s14191_s1 + $0x1924] ss:$8 sps:$4 sm:$0xff]  }
 0x2eb   :  { %7572 = vmatpush2.bf16.msra.mxu0 %v10331_v5  ;;  %v10398_v5 = vld [vmem:[%s14191_s1 + $0x1820] ss:$8 sps:$4 sm:$0xff]  }
 0x2ec   :  { %7613 = vmatpush2.bf16.msra.mxu1 %v10334_v50  ;;  %7573 = vmatprep.subr.bf16.mxu0 %v10339_v7  ;;  %v10401_v50 = vld [vmem:[%s14191_s1 + $0x1920] ss:$8 sps:$4 sm:$0xff]   ;;  %v10406_v7 = vld [vmem:[%s14191_s1 + $0x1814] ss:$8 sps:$4 sm:$0xff]  }
 0x2ed   :  { %7614 = vmatprep.subr.bf16.mxu1 %v10342_v35  ;;  %v10409_v35 = vld [vmem:[%s14191_s1 + $0x1914] ss:$8 sps:$4 sm:$0xff]  }
 0x2ef   :  { %7574 = vmatpush2.bf16.msra.mxu0 %v10337_v41  ;;  %v10404_v41 = vld [vmem:[%s14191_s1 + $0x1810] ss:$8 sps:$4 sm:$0xff]  }
 0x2f0   :  { %7615 = vmatpush2.bf16.msra.mxu1 %v10340_v11  ;;  %7575 = vmatprep.subr.bf16.mxu0 %v10345_v43  ;;  %v10407_v11 = vld [vmem:[%s14191_s1 + $0x1910] ss:$8 sps:$4 sm:$0xff]   ;;  %v10412_v43 = vld [vmem:[%s14191_s1 + $0x1804] ss:$8 sps:$4 sm:$0xff]  }
 0x2f1   :  { %7616 = vmatprep.subr.bf16.mxu1 %v10348_v12  ;;  %v10415_v12 = vld [vmem:[%s14191_s1 + $0x1904] ss:$8 sps:$4 sm:$0xff]  }
 0x2f3   :  { %7576 = vmatpush2.bf16.msra.mxu0 %v10343_v53  ;;  %v10410_v53 = vld [vmem:[%s14191_s1 + $0x1800] ss:$8 sps:$4 sm:$0xff]  }
 0x2f4   :  { %7617 = vmatpush2.bf16.msra.mxu1 %v10346_v13  ;;  %7577 = vmatprep.subr.bf16.mxu0 %v10351_v19  ;;  %v10413_v13 = vld [vmem:[%s14191_s1 + $0x1900] ss:$8 sps:$4 sm:$0xff]   ;;  %v10418_v19 = vld [vmem:[%s14191_s1 + $0x18f4] ss:$8 sps:$4 sm:$0xff]  }
 0x2f5   :  { %7618 = vmatprep.subr.bf16.mxu1 %v10354_v15  ;;  %v10421_v15 = vld [vmem:[%s14191_s1 + $0x19f4] ss:$8 sps:$4 sm:$0xff]  }
 0x2f7   :  { %7578 = vmatpush2.bf16.msra.mxu0 %v10349_v17  ;;  %v10416_v17 = vld [vmem:[%s14191_s1 + $0x18f0] ss:$8 sps:$4 sm:$0xff]  }
 0x2f8   :  { %7619 = vmatpush2.bf16.msra.mxu1 %v10352_v18  ;;  %7579 = vmatprep.subr.bf16.mxu0 %v10357_v20  ;;  %v10419_v18 = vld [vmem:[%s14191_s1 + $0x19f0] ss:$8 sps:$4 sm:$0xff]   ;;  %v10424_v20 = vld [vmem:[%s14191_s1 + $0x18e4] ss:$8 sps:$4 sm:$0xff]  }
 0x2f9   :  { %7620 = vmatprep.subr.bf16.mxu1 %v10360_v56  ;;  %v10427_v56 = vld [vmem:[%s14191_s1 + $0x19e4] ss:$8 sps:$4 sm:$0xff]  }
 0x2fb   :  { %7580 = vmatpush2.bf16.msra.mxu0 %v10355_v23  ;;  %v10422_v23 = vld [vmem:[%s14191_s1 + $0x18e0] ss:$8 sps:$4 sm:$0xff]  }
 0x2fc   :  { %7621 = vmatpush2.bf16.msra.mxu1 %v10358_v24  ;;  %7581 = vmatprep.subr.bf16.mxu0 %v10363_v26  ;;  %v10425_v24 = vld [vmem:[%s14191_s1 + $0x19e0] ss:$8 sps:$4 sm:$0xff]   ;;  %v10430_v26 = vld [vmem:[%s14191_s1 + $0x18d4] ss:$8 sps:$4 sm:$0xff]  }
 0x2fd   :  { %7622 = vmatprep.subr.bf16.mxu1 %v10366_v2  ;;  %v10433_v2 = vld [vmem:[%s14191_s1 + $0x19d4] ss:$8 sps:$4 sm:$0xff]  }
 0x2ff   :  { %7582 = vmatpush2.bf16.msra.mxu0 %v10361_v60  ;;  %v10436_v60 = vld [vmem:[%s14191_s1 + $0x18c4] ss:$8 sps:$4 sm:$0xff]  }
 0x300   :  { %7623 = vmatpush2.bf16.msra.mxu1 %v10364_v30  ;;  %7633 = vmatprep.subr.bf16.mxu0 %v10370_v33  ;;  %v10439_v30 = vld [vmem:[%s14191_s1 + $0x19c4] ss:$8 sps:$4 sm:$0xff]   ;;  %v10434_v33 = vld [vmem:[%s14191_s1 + $0x18c0] ss:$8 sps:$4 sm:$0xff]  }
 0x301   :  { %7674 = vmatprep.subr.bf16.mxu1 %v10373_v63  ;;  %v10437_v63 = vld [vmem:[%s14191_s1 + $0x19c0] ss:$8 sps:$4 sm:$0xff]  }
 0x302   :  { %v7339_v40 = vpop.f32.mrf.mxu0  ;;  %7584 = vmatmul.mubr.bf16.vlgmr.msra.gmra.mxu0 %v1348_v4  ;;  %v10431_v4 = vld [vmem:[%s14191_s1 + $0x19d0] ss:$8 sps:$4 sm:$0xff]  }
 0x303   :  { %v7380_v14 = vpop.f32.mrf.mxu1  ;;  %7625 = vmatmul.mubr.bf16.vlgmr.msra.gmra.mxu1 %v1364_v36  ;;  %v7340_v44 = vadd.f32 %v7339_v40, %v13126_v28  ;;  %7634 = vmatpush1.bf16.msra.mxu0 %v10368_v10  ;;  %v10385_v28 = vld [vmem:[%s14191_s1 + $0x1954] ss:$8 sps:$4 sm:$0xff]   ;;  %v10440_v10 = vld [vmem:[%s14191_s1 + $0x18b0] ss:$8 sps:$4 sm:$0xff]   ;;  %v10446_v40 = vld [vmem:[%s14191_s1 + $0x18a0] ss:$8 sps:$4 sm:$0xff]  }
 0x304   :  { %7675 = vmatpush1.bf16.msra.mxu1 %v10371_v8  ;;  %v7341_v47 = vpop.f32.mrf.mxu0  ;;  %7635 = vmatprep.subr.bf16.mxu0 %v10376_v37  ;;  %v10445_v36 = vld [vmem:[%s14191_s1 + $0x19b4] ss:$8 sps:$4 sm:$0xff]   ;;  %v10443_v8 = vld [vmem:[%s14191_s1 + $0x19b0] ss:$8 sps:$4 sm:$0xff]   ;;  %v10448_v37 = vld [vmem:[%s14191_s1 + $0x18a4] ss:$8 sps:$4 sm:$0xff]  }
 0x305   :  { %v7382_v27 = vpop.f32.mrf.mxu1  ;;  %7676 = vmatprep.subr.bf16.mxu1 %v10379_v38  ;;  %v13338_v51 = vadd.f32 %v7380_v14, %v7340_v44  ;;  %v7342_v6 = vadd.f32 %v7341_v47, %v13129_v61  ;;  %7665 = vmatprep.mubr.bf16.mxu0 %v1404_v9  ;;  %v10388_v61 = vld [vmem:[%s14191_s1 + $0x1844] ss:$8 sps:$4 sm:$0xff]   ;;  %v10442_v9 = vld [vmem:[%s14191_s1 + $0x18b4] ss:$8 sps:$4 sm:$0xff]   ;;  %v10449_v14 = vld [vmem:[%s14191_s1 + $0x19a0] ss:$8 sps:$4 sm:$0xff]  }
 0x306   :  { %7706 = vmatprep.mubr.bf16.mxu1 %v1414_v39  ;;  %v7343_v52 = vpop.f32.mrf.mxu0  ;;  %v10451_v38 = vld [vmem:[%s14191_s1 + $0x19a4] ss:$8 sps:$4 sm:$0xff]   ;;  %v1367_v39 = vcombine.high %v13266_v16, %v13266_v16  ;;  %v10454_v44 = vld [vmem:[%s14191_s1 + $0x1894] ss:$8 sps:$4 sm:$0xff]   ;;  %v10455_v47 = vld [vmem:[%s14191_s1 + $0x1990] ss:$8 sps:$4 sm:$0xff]  }
 0x307   :  { %v7384_v21 = vpop.f32.mrf.mxu1  ;;  %v13341_v54 = vadd.f32 %v7382_v27, %v7342_v6  ;;  %7636 = vmatpush1.bf16.msra.mxu0 %v10374_v45  ;;  %v10457_v16 = vld [vmem:[%s14191_s1 + $0x1994] ss:$8 sps:$4 sm:$0xff]   ;;  %v10460_v27 = vld [vmem:[%s14191_s1 + $0x1884] ss:$8 sps:$4 sm:$0xff]   ;;  %v1390_v6 = vrot.slane %v13282_v22, %v10936_v49  ;;  %v10458_v52 = vld [vmem:[%s14191_s1 + $0x1880] ss:$8 sps:$4 sm:$0xff]  }
 0x308   :  { %7677 = vmatpush1.bf16.msra.mxu1 %v10377_v46  ;;  %v7344_v34 = vpop.f32.mrf.mxu0  ;;  %7637 = vmatprep.subr.bf16.mxu0 %v10382_v25  ;;  %v13490_v45 = vrot.slane %v1367_v39, %v10936_v49  ;;  %v10452_v46 = vld [vmem:[%s14191_s1 + $0x1890] ss:$8 sps:$4 sm:$0xff]   ;;  %v10463_v25 = vld [vmem:[%s14191_s1 + $0x1984] ss:$8 sps:$4 sm:$0xff]   ;;  %v10461_v21 = vld [vmem:[%s14191_s1 + $0x1980] ss:$8 sps:$4 sm:$0xff]  }
 0x309   :  { %v7385_v55 = vpop.f32.mrf.mxu1  ;;  %7678 = vmatprep.subr.bf16.mxu1 %v10385_v28  ;;  %v10469_v22 = vld [vmem:[%s14191_s1 + $0x1b74] ss:$8 sps:$4 sm:$0xff]   ;;  %v1412_v34 = vcombine.high %v1390_v6, %v1390_v6  ;;  %v10512_v39 = vld [vmem:[%s14191_s1 + $0x1af0] ss:$8 sps:$4 sm:$0xff]  }
 0x30a   :  { %v1383_v28 = vcombine.high %v13490_v45, %v13490_v45  ;;  %v10464_v55 = vld [vmem:[%s14191_s1 + $0x1a70] ss:$8 sps:$4 sm:$0xff]  }
 0x30b   :  { %7638 = vmatpush1.bf16.msra.mxu0 %v10380_v42  ;;  %v10466_v42 = vld [vmem:[%s14191_s1 + $0x1a74] ss:$8 sps:$4 sm:$0xff]  }
 0x30c   :  { %7679 = vmatpush1.bf16.msra.mxu1 %v10383_v31  ;;  %7639 = vmatprep.subr.bf16.mxu0 %v10388_v61  ;;  %v1411_v31 = vrot.slane %v1383_v28, %v10936_v49  ;;  %v10467_v61 = vld [vmem:[%s14191_s1 + $0x1b70] ss:$8 sps:$4 sm:$0xff]  }
 0x30d   :  { %7680 = vmatprep.subr.bf16.mxu1 %v10391_v57  ;;  %v10472_v57 = vld [vmem:[%s14191_s1 + $0x1a64] ss:$8 sps:$4 sm:$0xff]   ;;  %v10527_v28 = vld [vmem:[%s14191_s1 + $0x1bd0] ss:$8 sps:$4 sm:$0xff]  }
 0x30f   :  { %7640 = vmatpush1.bf16.msra.mxu0 %v10386_v58  ;;  %v10475_v58 = vld [vmem:[%s14191_s1 + $0x1b64] ss:$8 sps:$4 sm:$0xff]  }
 0x310   :  { %7681 = vmatpush1.bf16.msra.mxu1 %v10389_v59  ;;  %7641 = vmatprep.subr.bf16.mxu0 %v10394_v32  ;;  %v1415_v59 = vcombine.high %v1411_v31, %v1411_v31 }
 0x311   :  { %7682 = vmatprep.subr.bf16.mxu1 %v10397_v62 }
 0x313   :  { %7642 = vmatpush1.bf16.msra.mxu0 %v10392_v29 }
 0x314   :  { %7683 = vmatpush1.bf16.msra.mxu1 %v10395_v0  ;;  %7643 = vmatprep.subr.bf16.mxu0 %v10400_v1  ;;  %v10470_v0 = vld [vmem:[%s14191_s1 + $0x1a60] ss:$8 sps:$4 sm:$0xff]  }
 0x315   :  { %7684 = vmatprep.subr.bf16.mxu1 %v10403_v3  ;;  %v10473_v1 = vld [vmem:[%s14191_s1 + $0x1b60] ss:$8 sps:$4 sm:$0xff]  }
 0x317   :  { %7644 = vmatpush1.bf16.msra.mxu0 %v10398_v5 }
 0x318   :  { %7685 = vmatpush1.bf16.msra.mxu1 %v10401_v50  ;;  %7645 = vmatprep.subr.bf16.mxu0 %v10406_v7  ;;  %v10478_v50 = vld [vmem:[%s14191_s1 + $0x1a54] ss:$8 sps:$4 sm:$0xff]  }
 0x319   :  { %7686 = vmatprep.subr.bf16.mxu1 %v10409_v35 }
 0x31b   :  { %7646 = vmatpush1.bf16.msra.mxu0 %v10404_v41 }
 0x31c   :  { %7687 = vmatpush1.bf16.msra.mxu1 %v10407_v11  ;;  %7647 = vmatprep.subr.bf16.mxu0 %v10412_v43 }
 0x31d   :  { %7688 = vmatprep.subr.bf16.mxu1 %v10415_v12  ;;  %v10476_v12 = vld [vmem:[%s14191_s1 + $0x1a50] ss:$8 sps:$4 sm:$0xff]  }
 0x31f   :  { %7648 = vmatpush1.bf16.msra.mxu0 %v10410_v53  ;;  %v10479_v53 = vld [vmem:[%s14191_s1 + $0x1b50] ss:$8 sps:$4 sm:$0xff]  }
 0x320   :  { %7689 = vmatpush1.bf16.msra.mxu1 %v10413_v13  ;;  %7649 = vmatprep.subr.bf16.mxu0 %v10418_v19 }
 0x321   :  { %7690 = vmatprep.subr.bf16.mxu1 %v10421_v15  ;;  %v10487_v15 = vld [vmem:[%s14191_s1 + $0x1b44] ss:$8 sps:$4 sm:$0xff]  }
 0x323   :  { %7650 = vmatpush2.bf16.msra.mxu0 %v10416_v17  ;;  %v10482_v17 = vld [vmem:[%s14191_s1 + $0x1a40] ss:$8 sps:$4 sm:$0xff]  }
 0x324   :  { %7691 = vmatpush2.bf16.msra.mxu1 %v10419_v18  ;;  %7651 = vmatprep.subr.bf16.mxu0 %v10424_v20  ;;  %v10485_v18 = vld [vmem:[%s14191_s1 + $0x1b40] ss:$8 sps:$4 sm:$0xff]   ;;  %v10490_v20 = vld [vmem:[%s14191_s1 + $0x1a34] ss:$8 sps:$4 sm:$0xff]  }
 0x325   :  { %7692 = vmatprep.subr.bf16.mxu1 %v10427_v56  ;;  %v10493_v56 = vld [vmem:[%s14191_s1 + $0x1b34] ss:$8 sps:$4 sm:$0xff]  }
 0x327   :  { %7652 = vmatpush2.bf16.msra.mxu0 %v10422_v23  ;;  %v10488_v23 = vld [vmem:[%s14191_s1 + $0x1a30] ss:$8 sps:$4 sm:$0xff]  }
 0x328   :  { %7693 = vmatpush2.bf16.msra.mxu1 %v10425_v24  ;;  %7653 = vmatprep.subr.bf16.mxu0 %v10430_v26  ;;  %v10491_v24 = vld [vmem:[%s14191_s1 + $0x1b30] ss:$8 sps:$4 sm:$0xff]   ;;  %v10496_v26 = vld [vmem:[%s14191_s1 + $0x1a24] ss:$8 sps:$4 sm:$0xff]  }
 0x329   :  { %7694 = vmatprep.subr.bf16.mxu1 %v10433_v2  ;;  %v10499_v2 = vld [vmem:[%s14191_s1 + $0x1b24] ss:$8 sps:$4 sm:$0xff]  }
 0x32b   :  { %7654 = vmatpush2.bf16.msra.mxu0 %v10428_v48  ;;  %v10494_v48 = vld [vmem:[%s14191_s1 + $0x1a20] ss:$8 sps:$4 sm:$0xff]  }
 0x32c   :  { %7695 = vmatpush2.bf16.msra.mxu1 %v10431_v4  ;;  %7655 = vmatprep.subr.bf16.mxu0 %v10436_v60  ;;  %v10497_v4 = vld [vmem:[%s14191_s1 + $0x1b20] ss:$8 sps:$4 sm:$0xff]   ;;  %v10502_v60 = vld [vmem:[%s14191_s1 + $0x1a14] ss:$8 sps:$4 sm:$0xff]  }
 0x32d   :  { %7696 = vmatprep.subr.bf16.mxu1 %v10439_v30  ;;  %v10505_v30 = vld [vmem:[%s14191_s1 + $0x1b14] ss:$8 sps:$4 sm:$0xff]  }
 0x32f   :  { %7656 = vmatpush2.bf16.msra.mxu0 %v10434_v33  ;;  %v10500_v33 = vld [vmem:[%s14191_s1 + $0x1a10] ss:$8 sps:$4 sm:$0xff]  }
 0x330   :  { %7697 = vmatpush2.bf16.msra.mxu1 %v10437_v63  ;;  %7657 = vmatprep.subr.bf16.mxu0 %v10442_v9  ;;  %v10503_v63 = vld [vmem:[%s14191_s1 + $0x1b10] ss:$8 sps:$4 sm:$0xff]   ;;  %v10508_v9 = vld [vmem:[%s14191_s1 + $0x1a04] ss:$8 sps:$4 sm:$0xff]  }
 0x331   :  { %7698 = vmatprep.subr.bf16.mxu1 %v10445_v36  ;;  %v10511_v36 = vld [vmem:[%s14191_s1 + $0x1b04] ss:$8 sps:$4 sm:$0xff]  }
 0x333   :  { %7658 = vmatpush2.bf16.msra.mxu0 %v10440_v10  ;;  %v10506_v10 = vld [vmem:[%s14191_s1 + $0x1a00] ss:$8 sps:$4 sm:$0xff]  }
 0x334   :  { %7699 = vmatpush2.bf16.msra.mxu1 %v10443_v8  ;;  %7659 = vmatprep.subr.bf16.mxu0 %v10448_v37  ;;  %v10509_v8 = vld [vmem:[%s14191_s1 + $0x1b00] ss:$8 sps:$4 sm:$0xff]   ;;  %v10514_v37 = vld [vmem:[%s14191_s1 + $0x1af4] ss:$8 sps:$4 sm:$0xff]  }
 0x335   :  { %7700 = vmatprep.subr.bf16.mxu1 %v10451_v38  ;;  %v10517_v38 = vld [vmem:[%s14191_s1 + $0x1bf4] ss:$8 sps:$4 sm:$0xff]  }
 0x337   :  { %7660 = vmatpush2.bf16.msra.mxu0 %v10446_v40  ;;  %v10515_v40 = vld [vmem:[%s14191_s1 + $0x1bf0] ss:$8 sps:$4 sm:$0xff]  }
 0x338   :  { %7701 = vmatpush2.bf16.msra.mxu1 %v10449_v14  ;;  %7661 = vmatprep.subr.bf16.mxu0 %v10454_v44  ;;  %v10520_v14 = vld [vmem:[%s14191_s1 + $0x1ae4] ss:$8 sps:$4 sm:$0xff]  }
 0x339   :  { %7702 = vmatprep.subr.bf16.mxu1 %v10457_v16  ;;  %v10523_v44 = vld [vmem:[%s14191_s1 + $0x1be4] ss:$8 sps:$4 sm:$0xff]   ;;  %v10518_v16 = vld [vmem:[%s14191_s1 + $0x1ae0] ss:$8 sps:$4 sm:$0xff]  }
 0x33b   :  { %7662 = vmatpush2.bf16.msra.mxu0 %v10452_v46  ;;  %v10521_v46 = vld [vmem:[%s14191_s1 + $0x1be0] ss:$8 sps:$4 sm:$0xff]  }
 0x33c   :  { %7703 = vmatpush2.bf16.msra.mxu1 %v10455_v47  ;;  %7663 = vmatprep.subr.bf16.mxu0 %v10460_v27  ;;  %v10526_v47 = vld [vmem:[%s14191_s1 + $0x1ad4] ss:$8 sps:$4 sm:$0xff]  }
 0x33d   :  { %7704 = vmatprep.subr.bf16.mxu1 %v10463_v25  ;;  %v10529_v27 = vld [vmem:[%s14191_s1 + $0x1bd4] ss:$8 sps:$4 sm:$0xff]   ;;  %v10524_v25 = vld [vmem:[%s14191_s1 + $0x1ad0] ss:$8 sps:$4 sm:$0xff]  }
 0x33f   :  { %7664 = vmatpush2.bf16.msra.mxu0 %v10458_v52  ;;  %v10535_v52 = vld [vmem:[%s14191_s1 + $0x1bc4] ss:$8 sps:$4 sm:$0xff]  }
 0x340   :  { %7705 = vmatpush2.bf16.msra.mxu1 %v10461_v21  ;;  %7715 = vmatprep.subr.bf16.mxu0 %v10466_v42  ;;  %v10530_v21 = vld [vmem:[%s14191_s1 + $0x1ac0] ss:$8 sps:$4 sm:$0xff]  }
 0x341   :  { %7756 = vmatprep.subr.bf16.mxu1 %v10469_v22  ;;  %v10533_v42 = vld [vmem:[%s14191_s1 + $0x1bc0] ss:$8 sps:$4 sm:$0xff]   ;;  %v10538_v22 = vld [vmem:[%s14191_s1 + $0x1ab4] ss:$8 sps:$4 sm:$0xff]  }
 0x342   :  { %v7421_v32 = vpop.f32.mrf.mxu0  ;;  %7666 = vmatmul.mubr.bf16.vlgmr.msra.gmra.mxu0 %v1390_v6  ;;  %v10532_v6 = vld [vmem:[%s14191_s1 + $0x1ac4] ss:$8 sps:$4 sm:$0xff]  }
 0x343   :  { %v7462_v62 = vpop.f32.mrf.mxu1  ;;  %7707 = vmatmul.mubr.bf16.vlgmr.msra.gmra.mxu1 %v1412_v34  ;;  %v7422_v29 = vadd.f32 %v7421_v32, %v13338_v51  ;;  %7716 = vmatpush1.bf16.msra.mxu0 %v10464_v55  ;;  %v10481_v51 = vld [vmem:[%s14191_s1 + $0x1b54] ss:$8 sps:$4 sm:$0xff]   ;;  %v10536_v34 = vld [vmem:[%s14191_s1 + $0x1ab0] ss:$8 sps:$4 sm:$0xff]   ;;  %v10545_v32 = vld [vmem:[%s14191_s1 + $0x1ba0] ss:$8 sps:$4 sm:$0xff]  }
 0x344   :  { %7757 = vmatpush1.bf16.msra.mxu1 %v10467_v61  ;;  %v7423_v3 = vpop.f32.mrf.mxu0  ;;  %7717 = vmatprep.subr.bf16.mxu0 %v10472_v57  ;;  %v10539_v55 = vld [vmem:[%s14191_s1 + $0x1bb0] ss:$8 sps:$4 sm:$0xff]   ;;  %v10544_v61 = vld [vmem:[%s14191_s1 + $0x1aa4] ss:$8 sps:$4 sm:$0xff]  }
 0x345   :  { %v7464_v5 = vpop.f32.mrf.mxu1  ;;  %7758 = vmatprep.subr.bf16.mxu1 %v10475_v58  ;;  %v13546_v7 = vadd.f32 %v7462_v62, %v7422_v29  ;;  %v7424_v35 = vadd.f32 %v7423_v3, %v13341_v54  ;;  %7747 = vmatprep.mubr.bf16.mxu0 %v1411_v31  ;;  %v10484_v54 = vld [vmem:[%s14191_s1 + $0x1a44] ss:$8 sps:$4 sm:$0xff]   ;;  %v10541_v31 = vld [vmem:[%s14191_s1 + $0x1bb4] ss:$8 sps:$4 sm:$0xff]   ;;  %v10551_v3 = vld [vmem:[%s14191_s1 + $0x1b90] ss:$8 sps:$4 sm:$0xff]  }
 0x346   :  { %7788 = vmatprep.mubr.bf16.mxu1 %v1415_v59  ;;  %v7425_v41 = vpop.f32.mrf.mxu0  ;;  %v10547_v57 = vld [vmem:[%s14191_s1 + $0x1ba4] ss:$8 sps:$4 sm:$0xff]   ;;  %v13686_v58 = vld [vmem:[%s14192_s0 + $0x38] sm:$0xff]  ;;  %v10542_v59 = vld [vmem:[%s14191_s1 + $0x1aa0] ss:$8 sps:$4 sm:$0xff]  }
 0x347   :  { %v7466_v11 = vpop.f32.mrf.mxu1  ;;  %v13549_v43 = vadd.f32 %v7464_v5, %v7424_v35  ;;  %7718 = vmatpush1.bf16.msra.mxu0 %v10470_v0  ;;  %v10550_v62 = vld [vmem:[%s14191_s1 + $0x1a94] ss:$8 sps:$4 sm:$0xff]   ;;  %v13702_v0 = vrot.slane %v13686_v58, %v10936_v49  ;;  %v10556_v5 = vld [vmem:[%s14191_s1 + $0x1a84] ss:$8 sps:$4 sm:$0xff]   ;;  %v1397_v35 = vrot.slane %v13490_v45, %v10936_v49  ;;  %v10554_v41 = vld [vmem:[%s14191_s1 + $0x1a80] ss:$8 sps:$4 sm:$0xff]  }
 0x348   :  { %7759 = vmatpush1.bf16.msra.mxu1 %v10473_v1  ;;  %v7426_v13 = vpop.f32.mrf.mxu0  ;;  %7719 = vmatprep.subr.bf16.mxu0 %v10478_v50  ;;  %v10553_v29 = vld [vmem:[%s14191_s1 + $0x1b94] ss:$8 sps:$4 sm:$0xff]   ;;  %v10548_v1 = vld [vmem:[%s14191_s1 + $0x1a90] ss:$8 sps:$4 sm:$0xff]   ;;  %v10559_v50 = vld [vmem:[%s14191_s1 + $0x1b84] ss:$8 sps:$4 sm:$0xff]  }
 0x349   :  { %v7467_v19 = vpop.f32.mrf.mxu1  ;;  %7760 = vmatprep.subr.bf16.mxu1 %v10481_v51  ;;  %v1431_v51 = vcombine.high %v13702_v0, %v13702_v0  ;;  %v10557_v11 = vld [vmem:[%s14191_s1 + $0x1b80] ss:$8 sps:$4 sm:$0xff]   ;;  %v10566_v45 = vld [vmem:[%s14191_s1 + $0x1d74] ss:$8 sps:$4 sm:$0xff]   ;;  %v1413_v13 = vcombine.high %v1397_v35, %v1397_v35 }
 0x34a   :  { %v10561_v19 = vld [vmem:[%s14191_s1 + $0x1c70] ss:$8 sps:$4 sm:$0xff]  }
 0x34b   :  { %7720 = vmatpush1.bf16.msra.mxu0 %v10476_v12  ;;  %v10563_v12 = vld [vmem:[%s14191_s1 + $0x1c74] ss:$8 sps:$4 sm:$0xff]  }
 0x34c   :  { %7761 = vmatpush1.bf16.msra.mxu1 %v10479_v53  ;;  %7721 = vmatprep.subr.bf16.mxu0 %v10484_v54  ;;  %v1453_v53 = vrot.slane %v1431_v51, %v10936_v49  ;;  %v10564_v54 = vld [vmem:[%s14191_s1 + $0x1d70] ss:$8 sps:$4 sm:$0xff]  }
 0x34d   :  { %7762 = vmatprep.subr.bf16.mxu1 %v10487_v15  ;;  %v10569_v15 = vld [vmem:[%s14191_s1 + $0x1c64] ss:$8 sps:$4 sm:$0xff]   ;;  %v10621_v51 = vld [vmem:[%s14191_s1 + $0x1cd0] ss:$8 sps:$4 sm:$0xff]  }
 0x34f   :  { %7722 = vmatpush1.bf16.msra.mxu0 %v10482_v17  ;;  %v10572_v17 = vld [vmem:[%s14191_s1 + $0x1d64] ss:$8 sps:$4 sm:$0xff]  }
 0x350   :  { %7763 = vmatpush1.bf16.msra.mxu1 %v10485_v18  ;;  %7723 = vmatprep.subr.bf16.mxu0 %v10490_v20  ;;  %v1463_v18 = vcombine.high %v1453_v53, %v1453_v53 }
 0x351   :  { %7764 = vmatprep.subr.bf16.mxu1 %v10493_v56 }
 0x353   :  { %7724 = vmatpush1.bf16.msra.mxu0 %v10488_v23 }
 0x354   :  { %7765 = vmatpush1.bf16.msra.mxu1 %v10491_v24  ;;  %7725 = vmatprep.subr.bf16.mxu0 %v10496_v26  ;;  %v10567_v24 = vld [vmem:[%s14191_s1 + $0x1c60] ss:$8 sps:$4 sm:$0xff]  }
 0x355   :  { %7766 = vmatprep.subr.bf16.mxu1 %v10499_v2  ;;  %v10570_v26 = vld [vmem:[%s14191_s1 + $0x1d60] ss:$8 sps:$4 sm:$0xff]  }
 0x357   :  { %7726 = vmatpush1.bf16.msra.mxu0 %v10494_v48 }
 0x358   :  { %7767 = vmatpush1.bf16.msra.mxu1 %v10497_v4  ;;  %7727 = vmatprep.subr.bf16.mxu0 %v10502_v60  ;;  %v10575_v4 = vld [vmem:[%s14191_s1 + $0x1c54] ss:$8 sps:$4 sm:$0xff]  }
 0x359   :  { %7768 = vmatprep.subr.bf16.mxu1 %v10505_v30 }
 0x35b   :  { %7728 = vmatpush1.bf16.msra.mxu0 %v10500_v33 }
 0x35c   :  { %7769 = vmatpush1.bf16.msra.mxu1 %v10503_v63  ;;  %7729 = vmatprep.subr.bf16.mxu0 %v10508_v9 }
 0x35d   :  { %7770 = vmatprep.subr.bf16.mxu1 %v10511_v36  ;;  %v10573_v36 = vld [vmem:[%s14191_s1 + $0x1c50] ss:$8 sps:$4 sm:$0xff]  }
 0x35f   :  { %7730 = vmatpush1.bf16.msra.mxu0 %v10506_v10  ;;  %v10576_v10 = vld [vmem:[%s14191_s1 + $0x1d50] ss:$8 sps:$4 sm:$0xff]  }
 0x360   :  { %7771 = vmatpush1.bf16.msra.mxu1 %v10509_v8  ;;  %7731 = vmatprep.subr.bf16.mxu0 %v10514_v37 }
 0x361   :  { %7772 = vmatprep.subr.bf16.mxu1 %v10517_v38  ;;  %v10584_v38 = vld [vmem:[%s14191_s1 + $0x1d44] ss:$8 sps:$4 sm:$0xff]  }
 0x363   :  { %7732 = vmatpush2.bf16.msra.mxu0 %v10512_v39  ;;  %v10579_v39 = vld [vmem:[%s14191_s1 + $0x1c40] ss:$8 sps:$4 sm:$0xff]  }
 0x364   :  { %7773 = vmatpush2.bf16.msra.mxu1 %v10515_v40  ;;  %7733 = vmatprep.subr.bf16.mxu0 %v10520_v14  ;;  %v10582_v40 = vld [vmem:[%s14191_s1 + $0x1d40] ss:$8 sps:$4 sm:$0xff]   ;;  %v10587_v14 = vld [vmem:[%s14191_s1 + $0x1c34] ss:$8 sps:$4 sm:$0xff]  }
 0x365   :  { %7774 = vmatprep.subr.bf16.mxu1 %v10523_v44  ;;  %v10590_v44 = vld [vmem:[%s14191_s1 + $0x1d34] ss:$8 sps:$4 sm:$0xff]  }
 0x367   :  { %7734 = vmatpush2.bf16.msra.mxu0 %v10518_v16  ;;  %v10585_v16 = vld [vmem:[%s14191_s1 + $0x1c30] ss:$8 sps:$4 sm:$0xff]  }
 0x368   :  { %7775 = vmatpush2.bf16.msra.mxu1 %v10521_v46  ;;  %7735 = vmatprep.subr.bf16.mxu0 %v10526_v47  ;;  %v10588_v46 = vld [vmem:[%s14191_s1 + $0x1d30] ss:$8 sps:$4 sm:$0xff]   ;;  %v10593_v47 = vld [vmem:[%s14191_s1 + $0x1c24] ss:$8 sps:$4 sm:$0xff]  }
 0x369   :  { %7776 = vmatprep.subr.bf16.mxu1 %v10529_v27  ;;  %v10596_v27 = vld [vmem:[%s14191_s1 + $0x1d24] ss:$8 sps:$4 sm:$0xff]  }
 0x36b   :  { %7736 = vmatpush2.bf16.msra.mxu0 %v10524_v25  ;;  %v10591_v25 = vld [vmem:[%s14191_s1 + $0x1c20] ss:$8 sps:$4 sm:$0xff]  }
 0x36c   :  { %7777 = vmatpush2.bf16.msra.mxu1 %v10527_v28  ;;  %7737 = vmatprep.subr.bf16.mxu0 %v10532_v6  ;;  %v10594_v28 = vld [vmem:[%s14191_s1 + $0x1d20] ss:$8 sps:$4 sm:$0xff]   ;;  %v10599_v6 = vld [vmem:[%s14191_s1 + $0x1c14] ss:$8 sps:$4 sm:$0xff]  }
 0x36d   :  { %7778 = vmatprep.subr.bf16.mxu1 %v10535_v52  ;;  %v10602_v52 = vld [vmem:[%s14191_s1 + $0x1d14] ss:$8 sps:$4 sm:$0xff]  }
 0x36f   :  { %7738 = vmatpush2.bf16.msra.mxu0 %v10530_v21  ;;  %v10597_v21 = vld [vmem:[%s14191_s1 + $0x1c10] ss:$8 sps:$4 sm:$0xff]  }
 0x370   :  { %7779 = vmatpush2.bf16.msra.mxu1 %v10533_v42  ;;  %7739 = vmatprep.subr.bf16.mxu0 %v10538_v22  ;;  %v10600_v42 = vld [vmem:[%s14191_s1 + $0x1d10] ss:$8 sps:$4 sm:$0xff]   ;;  %v10605_v22 = vld [vmem:[%s14191_s1 + $0x1c04] ss:$8 sps:$4 sm:$0xff]  }
 0x371   :  { %7780 = vmatprep.subr.bf16.mxu1 %v10541_v31  ;;  %v10608_v31 = vld [vmem:[%s14191_s1 + $0x1d04] ss:$8 sps:$4 sm:$0xff]  }
 0x373   :  { %7740 = vmatpush2.bf16.msra.mxu0 %v10536_v34  ;;  %v10603_v34 = vld [vmem:[%s14191_s1 + $0x1c00] ss:$8 sps:$4 sm:$0xff]  }
 0x374   :  { %7781 = vmatpush2.bf16.msra.mxu1 %v10539_v55  ;;  %7741 = vmatprep.subr.bf16.mxu0 %v10544_v61  ;;  %v10606_v55 = vld [vmem:[%s14191_s1 + $0x1d00] ss:$8 sps:$4 sm:$0xff]   ;;  %v10611_v61 = vld [vmem:[%s14191_s1 + $0x1cf4] ss:$8 sps:$4 sm:$0xff]  }
 0x375   :  { %7782 = vmatprep.subr.bf16.mxu1 %v10547_v57  ;;  %v10614_v57 = vld [vmem:[%s14191_s1 + $0x1df4] ss:$8 sps:$4 sm:$0xff]  }
 0x377   :  { %7742 = vmatpush2.bf16.msra.mxu0 %v10542_v59  ;;  %v10609_v59 = vld [vmem:[%s14191_s1 + $0x1cf0] ss:$8 sps:$4 sm:$0xff]  }
 0x378   :  { %7783 = vmatpush2.bf16.msra.mxu1 %v10545_v32  ;;  %7743 = vmatprep.subr.bf16.mxu0 %v10550_v62  ;;  %v10612_v32 = vld [vmem:[%s14191_s1 + $0x1df0] ss:$8 sps:$4 sm:$0xff]   ;;  %v10617_v62 = vld [vmem:[%s14191_s1 + $0x1ce4] ss:$8 sps:$4 sm:$0xff]  }
 0x379   :  { %7784 = vmatprep.subr.bf16.mxu1 %v10553_v29  ;;  %v10620_v29 = vld [vmem:[%s14191_s1 + $0x1de4] ss:$8 sps:$4 sm:$0xff]  }
 0x37b   :  { %7744 = vmatpush2.bf16.msra.mxu0 %v10548_v1  ;;  %v10615_v1 = vld [vmem:[%s14191_s1 + $0x1ce0] ss:$8 sps:$4 sm:$0xff]  }
 0x37c   :  { %7785 = vmatpush2.bf16.msra.mxu1 %v10551_v3  ;;  %7745 = vmatprep.subr.bf16.mxu0 %v10556_v5  ;;  %v10618_v3 = vld [vmem:[%s14191_s1 + $0x1de0] ss:$8 sps:$4 sm:$0xff]   ;;  %v10623_v5 = vld [vmem:[%s14191_s1 + $0x1cd4] ss:$8 sps:$4 sm:$0xff]  }
 0x37d   :  { %7786 = vmatprep.subr.bf16.mxu1 %v10559_v50  ;;  %v10626_v50 = vld [vmem:[%s14191_s1 + $0x1dd4] ss:$8 sps:$4 sm:$0xff]  }
 0x37f   :  { %7746 = vmatpush2.bf16.msra.mxu0 %v10554_v41  ;;  %v10629_v41 = vld [vmem:[%s14191_s1 + $0x1cc4] ss:$8 sps:$4 sm:$0xff]  }
 0x380   :  { %7787 = vmatpush2.bf16.msra.mxu1 %v10557_v11  ;;  %7797 = vmatprep.subr.bf16.mxu0 %v10563_v12  ;;  %v10632_v11 = vld [vmem:[%s14191_s1 + $0x1dc4] ss:$8 sps:$4 sm:$0xff]   ;;  %v10627_v12 = vld [vmem:[%s14191_s1 + $0x1cc0] ss:$8 sps:$4 sm:$0xff]  }
 0x381   :  { %7838 = vmatprep.subr.bf16.mxu1 %v10566_v45  ;;  %v10630_v45 = vld [vmem:[%s14191_s1 + $0x1dc0] ss:$8 sps:$4 sm:$0xff]  }
 0x382   :  { %v7503_v20 = vpop.f32.mrf.mxu0  ;;  %7748 = vmatmul.mubr.bf16.vlgmr.msra.gmra.mxu0 %v1397_v35  ;;  %v10624_v35 = vld [vmem:[%s14191_s1 + $0x1dd0] ss:$8 sps:$4 sm:$0xff]  }
 0x383   :  { %v7544_v56 = vpop.f32.mrf.mxu1  ;;  %7789 = vmatmul.mubr.bf16.vlgmr.msra.gmra.mxu1 %v1413_v13  ;;  %v7504_v23 = vadd.f32 %v7503_v20, %v13546_v7  ;;  %7798 = vmatpush1.bf16.msra.mxu0 %v10561_v19  ;;  %v10578_v7 = vld [vmem:[%s14191_s1 + $0x1d54] ss:$8 sps:$4 sm:$0xff]   ;;  %v10633_v19 = vld [vmem:[%s14191_s1 + $0x1cb0] ss:$8 sps:$4 sm:$0xff]   ;;  %v10639_v20 = vld [vmem:[%s14191_s1 + $0x1ca0] ss:$8 sps:$4 sm:$0xff]  }
 0x384   :  { %7839 = vmatpush1.bf16.msra.mxu1 %v10564_v54  ;;  %v7505_v2 = vpop.f32.mrf.mxu0  ;;  %7799 = vmatprep.subr.bf16.mxu0 %v10569_v15  ;;  %v10638_v13 = vld [vmem:[%s14191_s1 + $0x1db4] ss:$8 sps:$4 sm:$0xff]   ;;  %v10636_v54 = vld [vmem:[%s14191_s1 + $0x1db0] ss:$8 sps:$4 sm:$0xff]   ;;  %v10641_v15 = vld [vmem:[%s14191_s1 + $0x1ca4] ss:$8 sps:$4 sm:$0xff]  }
 0x385   :  { %v7546_v48 = vpop.f32.mrf.mxu1  ;;  %7840 = vmatprep.subr.bf16.mxu1 %v10572_v17  ;;  %v13758_v60 = vadd.f32 %v7544_v56, %v7504_v23  ;;  %v7506_v30 = vadd.f32 %v7505_v2, %v13549_v43  ;;  %7829 = vmatprep.mubr.bf16.mxu0 %v1453_v53  ;;  %v10581_v43 = vld [vmem:[%s14191_s1 + $0x1c44] ss:$8 sps:$4 sm:$0xff]   ;;  %v10635_v53 = vld [vmem:[%s14191_s1 + $0x1cb4] ss:$8 sps:$4 sm:$0xff]   ;;  %v10642_v56 = vld [vmem:[%s14191_s1 + $0x1da0] ss:$8 sps:$4 sm:$0xff]  }
 0x386   :  { %7870 = vmatprep.mubr.bf16.mxu1 %v1463_v18  ;;  %v7507_v33 = vpop.f32.mrf.mxu0  ;;  %v10644_v17 = vld [vmem:[%s14191_s1 + $0x1da4] ss:$8 sps:$4 sm:$0xff]   ;;  %v1416_v18 = vcombine.high %v13686_v58, %v13686_v58  ;;  %v10647_v23 = vld [vmem:[%s14191_s1 + $0x1c94] ss:$8 sps:$4 sm:$0xff]   ;;  %v10648_v2 = vld [vmem:[%s14191_s1 + $0x1d90] ss:$8 sps:$4 sm:$0xff]  }
 0x387   :  { %v7548_v63 = vpop.f32.mrf.mxu1  ;;  %v13761_v9 = vadd.f32 %v7546_v48, %v7506_v30  ;;  %7800 = vmatpush1.bf16.msra.mxu0 %v10567_v24  ;;  %v10650_v58 = vld [vmem:[%s14191_s1 + $0x1d94] ss:$8 sps:$4 sm:$0xff]   ;;  %v10653_v48 = vld [vmem:[%s14191_s1 + $0x1c84] ss:$8 sps:$4 sm:$0xff]   ;;  %v1439_v30 = vrot.slane %v13702_v0, %v10936_v49  ;;  %v10651_v33 = vld [vmem:[%s14191_s1 + $0x1c80] ss:$8 sps:$4 sm:$0xff]  }
 0x388   :  { %7841 = vmatpush1.bf16.msra.mxu1 %v10570_v26  ;;  %v7508_v8 = vpop.f32.mrf.mxu0  ;;  %7801 = vmatprep.subr.bf16.mxu0 %v10575_v4  ;;  %v13910_v24 = vrot.slane %v1416_v18, %v10936_v49  ;;  %v10645_v26 = vld [vmem:[%s14191_s1 + $0x1c90] ss:$8 sps:$4 sm:$0xff]   ;;  %v10656_v4 = vld [vmem:[%s14191_s1 + $0x1d84] ss:$8 sps:$4 sm:$0xff]   ;;  %v10654_v63 = vld [vmem:[%s14191_s1 + $0x1d80] ss:$8 sps:$4 sm:$0xff]  }
 0x389   :  { %v7549_v37 = vpop.f32.mrf.mxu1  ;;  %7842 = vmatprep.subr.bf16.mxu1 %v10578_v7  ;;  %v10662_v0 = vld [vmem:[%s14191_s1 + $0x1f74] ss:$8 sps:$4 sm:$0xff]   ;;  %v1461_v8 = vcombine.high %v1439_v30, %v1439_v30  ;;  %v10705_v18 = vld [vmem:[%s14191_s1 + $0x1ef0] ss:$8 sps:$4 sm:$0xff]  }
 0x38a   :  { %v1432_v7 = vcombine.high %v13910_v24, %v13910_v24  ;;  %v10657_v37 = vld [vmem:[%s14191_s1 + $0x1e70] ss:$8 sps:$4 sm:$0xff]  }
 0x38b   :  { %7802 = vmatpush1.bf16.msra.mxu0 %v10573_v36  ;;  %v10659_v36 = vld [vmem:[%s14191_s1 + $0x1e74] ss:$8 sps:$4 sm:$0xff]  }
 0x38c   :  { %7843 = vmatpush1.bf16.msra.mxu1 %v10576_v10  ;;  %7803 = vmatprep.subr.bf16.mxu0 %v10581_v43  ;;  %v1460_v10 = vrot.slane %v1432_v7, %v10936_v49  ;;  %v10660_v43 = vld [vmem:[%s14191_s1 + $0x1f70] ss:$8 sps:$4 sm:$0xff]  }
 0x38d   :  { %7844 = vmatprep.subr.bf16.mxu1 %v10584_v38  ;;  %v10665_v38 = vld [vmem:[%s14191_s1 + $0x1e64] ss:$8 sps:$4 sm:$0xff]   ;;  %v10720_v7 = vld [vmem:[%s14191_s1 + $0x1fd0] ss:$8 sps:$4 sm:$0xff]  }
 0x38f   :  { %7804 = vmatpush1.bf16.msra.mxu0 %v10579_v39  ;;  %v10668_v39 = vld [vmem:[%s14191_s1 + $0x1f64] ss:$8 sps:$4 sm:$0xff]  }
 0x390   :  { %7845 = vmatpush1.bf16.msra.mxu1 %v10582_v40  ;;  %7805 = vmatprep.subr.bf16.mxu0 %v10587_v14  ;;  %v1464_v40 = vcombine.high %v1460_v10, %v1460_v10 }
 0x391   :  { %7846 = vmatprep.subr.bf16.mxu1 %v10590_v44 }
 0x393   :  { %7806 = vmatpush1.bf16.msra.mxu0 %v10585_v16 }
 0x394   :  { %7847 = vmatpush1.bf16.msra.mxu1 %v10588_v46  ;;  %7807 = vmatprep.subr.bf16.mxu0 %v10593_v47  ;;  %v10663_v46 = vld [vmem:[%s14191_s1 + $0x1e60] ss:$8 sps:$4 sm:$0xff]  }
 0x395   :  { %7848 = vmatprep.subr.bf16.mxu1 %v10596_v27  ;;  %v10666_v47 = vld [vmem:[%s14191_s1 + $0x1f60] ss:$8 sps:$4 sm:$0xff]  }
 0x397   :  { %7808 = vmatpush1.bf16.msra.mxu0 %v10591_v25 }
 0x398   :  { %7849 = vmatpush1.bf16.msra.mxu1 %v10594_v28  ;;  %7809 = vmatprep.subr.bf16.mxu0 %v10599_v6  ;;  %v10671_v28 = vld [vmem:[%s14191_s1 + $0x1e54] ss:$8 sps:$4 sm:$0xff]  }
 0x399   :  { %7850 = vmatprep.subr.bf16.mxu1 %v10602_v52 }
 0x39b   :  { %7810 = vmatpush1.bf16.msra.mxu0 %v10597_v21 }
 0x39c   :  { %7851 = vmatpush1.bf16.msra.mxu1 %v10600_v42  ;;  %7811 = vmatprep.subr.bf16.mxu0 %v10605_v22 }
 0x39d   :  { %7852 = vmatprep.subr.bf16.mxu1 %v10608_v31  ;;  %v10669_v31 = vld [vmem:[%s14191_s1 + $0x1e50] ss:$8 sps:$4 sm:$0xff]  }
 0x39f   :  { %7812 = vmatpush1.bf16.msra.mxu0 %v10603_v34  ;;  %v10672_v34 = vld [vmem:[%s14191_s1 + $0x1f50] ss:$8 sps:$4 sm:$0xff]  }
 0x3a0   :  { %7853 = vmatpush1.bf16.msra.mxu1 %v10606_v55  ;;  %7813 = vmatprep.subr.bf16.mxu0 %v10611_v61 }
 0x3a1   :  { %7854 = vmatprep.subr.bf16.mxu1 %v10614_v57  ;;  %v10680_v57 = vld [vmem:[%s14191_s1 + $0x1f44] ss:$8 sps:$4 sm:$0xff]  }
 0x3a3   :  { %7814 = vmatpush2.bf16.msra.mxu0 %v10609_v59  ;;  %v10675_v59 = vld [vmem:[%s14191_s1 + $0x1e40] ss:$8 sps:$4 sm:$0xff]  }
 0x3a4   :  { %7855 = vmatpush2.bf16.msra.mxu1 %v10612_v32  ;;  %7815 = vmatprep.subr.bf16.mxu0 %v10617_v62  ;;  %v10678_v32 = vld [vmem:[%s14191_s1 + $0x1f40] ss:$8 sps:$4 sm:$0xff]   ;;  %v10683_v62 = vld [vmem:[%s14191_s1 + $0x1e34] ss:$8 sps:$4 sm:$0xff]  }
 0x3a5   :  { %7856 = vmatprep.subr.bf16.mxu1 %v10620_v29  ;;  %v10686_v29 = vld [vmem:[%s14191_s1 + $0x1f34] ss:$8 sps:$4 sm:$0xff]  }
 0x3a7   :  { %7816 = vmatpush2.bf16.msra.mxu0 %v10615_v1  ;;  %v10681_v1 = vld [vmem:[%s14191_s1 + $0x1e30] ss:$8 sps:$4 sm:$0xff]  }
 0x3a8   :  { %7857 = vmatpush2.bf16.msra.mxu1 %v10618_v3  ;;  %7817 = vmatprep.subr.bf16.mxu0 %v10623_v5  ;;  %v10684_v3 = vld [vmem:[%s14191_s1 + $0x1f30] ss:$8 sps:$4 sm:$0xff]   ;;  %v10689_v5 = vld [vmem:[%s14191_s1 + $0x1e24] ss:$8 sps:$4 sm:$0xff]  }
 0x3a9   :  { %7858 = vmatprep.subr.bf16.mxu1 %v10626_v50  ;;  %v10692_v50 = vld [vmem:[%s14191_s1 + $0x1f24] ss:$8 sps:$4 sm:$0xff]  }
 0x3ab   :  { %7818 = vmatpush2.bf16.msra.mxu0 %v10621_v51  ;;  %v10687_v51 = vld [vmem:[%s14191_s1 + $0x1e20] ss:$8 sps:$4 sm:$0xff]  }
 0x3ac   :  { %7859 = vmatpush2.bf16.msra.mxu1 %v10624_v35  ;;  %7819 = vmatprep.subr.bf16.mxu0 %v10629_v41  ;;  %v10690_v35 = vld [vmem:[%s14191_s1 + $0x1f20] ss:$8 sps:$4 sm:$0xff]   ;;  %v10695_v41 = vld [vmem:[%s14191_s1 + $0x1e14] ss:$8 sps:$4 sm:$0xff]  }
 0x3ad   :  { %7860 = vmatprep.subr.bf16.mxu1 %v10632_v11  ;;  %v10698_v11 = vld [vmem:[%s14191_s1 + $0x1f14] ss:$8 sps:$4 sm:$0xff]  }
 0x3af   :  { %7820 = vmatpush2.bf16.msra.mxu0 %v10627_v12  ;;  %v10693_v12 = vld [vmem:[%s14191_s1 + $0x1e10] ss:$8 sps:$4 sm:$0xff]  }
 0x3b0   :  { %7861 = vmatpush2.bf16.msra.mxu1 %v10630_v45  ;;  %7821 = vmatprep.subr.bf16.mxu0 %v10635_v53  ;;  %v10696_v45 = vld [vmem:[%s14191_s1 + $0x1f10] ss:$8 sps:$4 sm:$0xff]   ;;  %v10701_v53 = vld [vmem:[%s14191_s1 + $0x1e04] ss:$8 sps:$4 sm:$0xff]  }
 0x3b1   :  { %7862 = vmatprep.subr.bf16.mxu1 %v10638_v13  ;;  %v10704_v13 = vld [vmem:[%s14191_s1 + $0x1f04] ss:$8 sps:$4 sm:$0xff]  }
 0x3b3   :  { %7822 = vmatpush2.bf16.msra.mxu0 %v10633_v19  ;;  %v10699_v19 = vld [vmem:[%s14191_s1 + $0x1e00] ss:$8 sps:$4 sm:$0xff]  }
 0x3b4   :  { %7863 = vmatpush2.bf16.msra.mxu1 %v10636_v54  ;;  %7823 = vmatprep.subr.bf16.mxu0 %v10641_v15  ;;  %v10702_v54 = vld [vmem:[%s14191_s1 + $0x1f00] ss:$8 sps:$4 sm:$0xff]   ;;  %v10707_v15 = vld [vmem:[%s14191_s1 + $0x1ef4] ss:$8 sps:$4 sm:$0xff]  }
 0x3b5   :  { %7864 = vmatprep.subr.bf16.mxu1 %v10644_v17  ;;  %v10710_v17 = vld [vmem:[%s14191_s1 + $0x1ff4] ss:$8 sps:$4 sm:$0xff]  }
 0x3b7   :  { %7824 = vmatpush2.bf16.msra.mxu0 %v10639_v20  ;;  %v10708_v20 = vld [vmem:[%s14191_s1 + $0x1ff0] ss:$8 sps:$4 sm:$0xff]  }
 0x3b8   :  { %7865 = vmatpush2.bf16.msra.mxu1 %v10642_v56  ;;  %7825 = vmatprep.subr.bf16.mxu0 %v10647_v23  ;;  %v10713_v56 = vld [vmem:[%s14191_s1 + $0x1ee4] ss:$8 sps:$4 sm:$0xff]  }
 0x3b9   :  { %7866 = vmatprep.subr.bf16.mxu1 %v10650_v58  ;;  %v10716_v23 = vld [vmem:[%s14191_s1 + $0x1fe4] ss:$8 sps:$4 sm:$0xff]   ;;  %v10711_v58 = vld [vmem:[%s14191_s1 + $0x1ee0] ss:$8 sps:$4 sm:$0xff]  }
 0x3bb   :  { %7826 = vmatpush2.bf16.msra.mxu0 %v10645_v26  ;;  %v10714_v26 = vld [vmem:[%s14191_s1 + $0x1fe0] ss:$8 sps:$4 sm:$0xff]  }
 0x3bc   :  { %7867 = vmatpush2.bf16.msra.mxu1 %v10648_v2  ;;  %7827 = vmatprep.subr.bf16.mxu0 %v10653_v48  ;;  %v10719_v2 = vld [vmem:[%s14191_s1 + $0x1ed4] ss:$8 sps:$4 sm:$0xff]  }
 0x3bd   :  { %7868 = vmatprep.subr.bf16.mxu1 %v10656_v4  ;;  %v10722_v48 = vld [vmem:[%s14191_s1 + $0x1fd4] ss:$8 sps:$4 sm:$0xff]   ;;  %v10717_v4 = vld [vmem:[%s14191_s1 + $0x1ed0] ss:$8 sps:$4 sm:$0xff]  }
 0x3bf   :  { %7828 = vmatpush2.bf16.msra.mxu0 %v10651_v33  ;;  %v10728_v33 = vld [vmem:[%s14191_s1 + $0x1fc4] ss:$8 sps:$4 sm:$0xff]  }
 0x3c0   :  { %7869 = vmatpush2.bf16.msra.mxu1 %v10654_v63  ;;  %7879 = vmatprep.subr.bf16.mxu0 %v10659_v36  ;;  %v10723_v63 = vld [vmem:[%s14191_s1 + $0x1ec0] ss:$8 sps:$4 sm:$0xff]  }
 0x3c1   :  { %7920 = vmatprep.subr.bf16.mxu1 %v10662_v0  ;;  %v10726_v36 = vld [vmem:[%s14191_s1 + $0x1fc0] ss:$8 sps:$4 sm:$0xff]   ;;  %v10731_v0 = vld [vmem:[%s14191_s1 + $0x1eb4] ss:$8 sps:$4 sm:$0xff]  }
 0x3c2   :  { %v7585_v14 = vpop.f32.mrf.mxu0  ;;  %7830 = vmatmul.mubr.bf16.vlgmr.msra.gmra.mxu0 %v1439_v30  ;;  %v10725_v30 = vld [vmem:[%s14191_s1 + $0x1ec4] ss:$8 sps:$4 sm:$0xff]  }
 0x3c3   :  { %v7626_v44 = vpop.f32.mrf.mxu1  ;;  %7871 = vmatmul.mubr.bf16.vlgmr.msra.gmra.mxu1 %v1461_v8  ;;  %v7586_v16 = vadd.f32 %v7585_v14, %v13758_v60  ;;  %7880 = vmatpush1.bf16.msra.mxu0 %v10657_v37  ;;  %v10674_v60 = vld [vmem:[%s14191_s1 + $0x1f54] ss:$8 sps:$4 sm:$0xff]   ;;  %v10729_v8 = vld [vmem:[%s14191_s1 + $0x1eb0] ss:$8 sps:$4 sm:$0xff]  }
 0x3c4   :  { %7921 = vmatpush1.bf16.msra.mxu1 %v10660_v43  ;;  %v7587_v27 = vpop.f32.mrf.mxu0  ;;  %7881 = vmatprep.subr.bf16.mxu0 %v10665_v38  ;;  %v10732_v37 = vld [vmem:[%s14191_s1 + $0x1fb0] ss:$8 sps:$4 sm:$0xff]   ;;  %v10737_v43 = vld [vmem:[%s14191_s1 + $0x1ea4] ss:$8 sps:$4 sm:$0xff]   ;;  %v10743_v14 = vld [vmem:[%s14191_s1 + $0x1e94] ss:$8 sps:$4 sm:$0xff]  }
 0x3c5   :  { %v7628_v25 = vpop.f32.mrf.mxu1  ;;  %7922 = vmatprep.subr.bf16.mxu1 %v10668_v39  ;;  %v13966_v6 = vadd.f32 %v7626_v44, %v7586_v16  ;;  %v7588_v52 = vadd.f32 %v7587_v27, %v13761_v9  ;;  %7911 = vmatprep.mubr.bf16.mxu0 %v1460_v10  ;;  %v10677_v9 = vld [vmem:[%s14191_s1 + $0x1e44] ss:$8 sps:$4 sm:$0xff]   ;;  %v10734_v10 = vld [vmem:[%s14191_s1 + $0x1fb4] ss:$8 sps:$4 sm:$0xff]   ;;  %v10735_v39 = vld [vmem:[%s14191_s1 + $0x1ea0] ss:$8 sps:$4 sm:$0xff]  }
 0x3c6   :  { %7952 = vmatprep.mubr.bf16.mxu1 %v1464_v40  ;;  %v7589_v21 = vpop.f32.mrf.mxu0  ;;  %v10740_v38 = vld [vmem:[%s14191_s1 + $0x1fa4] ss:$8 sps:$4 sm:$0xff]   ;;  %v10738_v40 = vld [vmem:[%s14191_s1 + $0x1fa0] ss:$8 sps:$4 sm:$0xff]   ;;  %v10746_v44 = vld [vmem:[%s14191_s1 + $0x1f94] ss:$8 sps:$4 sm:$0xff]  }
 0x3c7   :  { %v7630_v42 = vpop.f32.mrf.mxu1  ;;  %v13969_v22 = vadd.f32 %v7628_v25, %v7588_v52  ;;  %7882 = vmatpush1.bf16.msra.mxu0 %v10663_v46  ;;  %v10741_v16 = vld [vmem:[%s14191_s1 + $0x1e90] ss:$8 sps:$4 sm:$0xff]   ;;  %v10752_v27 = vld [vmem:[%s14191_s1 + $0x1f84] ss:$8 sps:$4 sm:$0xff]   ;;  %v1446_v25 = vrot.slane %v13910_v24, %v10936_v49 }
 0x3c8   :  { %7923 = vmatpush1.bf16.msra.mxu1 %v10666_v47  ;;  %v7590_v55 = vpop.f32.mrf.mxu0  ;;  %7883 = vmatprep.subr.bf16.mxu0 %v10671_v28  ;;  %v10744_v46 = vld [vmem:[%s14191_s1 + $0x1f90] ss:$8 sps:$4 sm:$0xff]   ;;  %v10749_v47 = vld [vmem:[%s14191_s1 + $0x1e84] ss:$8 sps:$4 sm:$0xff]   ;;  %v10747_v28 = vld [vmem:[%s14191_s1 + $0x1e80] ss:$8 sps:$4 sm:$0xff]  }
 0x3c9   :  { %v7631_v61 = vpop.f32.mrf.mxu1  ;;  %7924 = vmatprep.subr.bf16.mxu1 %v10674_v60  ;;  %v10750_v60 = vld [vmem:[%s14191_s1 + $0x1f80] ss:$8 sps:$4 sm:$0xff]   ;;  %v1462_v52 = vcombine.high %v1446_v25, %v1446_v25 }
 0x3cb   :  { %7884 = vmatpush1.bf16.msra.mxu0 %v10669_v31 }
 0x3cc   :  { %7925 = vmatpush1.bf16.msra.mxu1 %v10672_v34  ;;  %7885 = vmatprep.subr.bf16.mxu0 %v10677_v9 }
 0x3cd   :  { %7926 = vmatprep.subr.bf16.mxu1 %v10680_v57 }
 0x3cf   :  { %7886 = vmatpush1.bf16.msra.mxu0 %v10675_v59 }
 0x3d0   :  { %7927 = vmatpush1.bf16.msra.mxu1 %v10678_v32  ;;  %7887 = vmatprep.subr.bf16.mxu0 %v10683_v62  ;;  %v10754_v62 = vld [vmem:[%s14194_s3 + $0x78] sm:$0xff]  }
 0x3d1   :  { %7928 = vmatprep.subr.bf16.mxu1 %v10686_v29  ;;  %v10755_v29 = vld [vmem:[%s14194_s3 + $0x38] sm:$0xff]  }
 0x3d3   :  { %7888 = vmatpush1.bf16.msra.mxu0 %v10681_v1  ;;  %v10758_v1 = vld [vmem:[%s14194_s3 + $0x68] sm:$0xff]  }
 0x3d4   :  { %7929 = vmatpush1.bf16.msra.mxu1 %v10684_v3  ;;  %7889 = vmatprep.subr.bf16.mxu0 %v10689_v5  ;;  %v10759_v3 = vld [vmem:[%s14194_s3 + $0x28] sm:$0xff]   ;;  %v10760_v5 = vld [vmem:[%s14194_s3 + $0x60] sm:$0xff]  }
 0x3d5   :  { %7930 = vmatprep.subr.bf16.mxu1 %v10692_v50  ;;  %v10761_v50 = vld [vmem:[%s14194_s3 + $0x20] sm:$0xff]  }
 0x3d7   :  { %7890 = vmatpush1.bf16.msra.mxu0 %v10687_v51  ;;  %v10762_v51 = vld [vmem:[%s14194_s3 + $0x58] sm:$0xff]  }
 0x3d8   :  { %7931 = vmatpush1.bf16.msra.mxu1 %v10690_v35  ;;  %7891 = vmatprep.subr.bf16.mxu0 %v10695_v41  ;;  %v10763_v35 = vld [vmem:[%s14194_s3 + $0x18] sm:$0xff]   ;;  %v10764_v41 = vld [vmem:[%s14194_s3 + $0x50] sm:$0xff]  }
 0x3d9   :  { %7932 = vmatprep.subr.bf16.mxu1 %v10698_v11  ;;  %v10765_v11 = vld [vmem:[%s14194_s3 + $0x10] sm:$0xff]  }
 0x3db   :  { %7892 = vmatpush1.bf16.msra.mxu0 %v10693_v12 }
 0x3dc   :  { %7933 = vmatpush1.bf16.msra.mxu1 %v10696_v45  ;;  %7893 = vmatprep.subr.bf16.mxu0 %v10701_v53 }
 0x3dd   :  { %7934 = vmatprep.subr.bf16.mxu1 %v10704_v13 }
 0x3df   :  { %7894 = vmatpush1.bf16.msra.mxu0 %v10699_v19 }
 0x3e0   :  { %7935 = vmatpush1.bf16.msra.mxu1 %v10702_v54  ;;  %7895 = vmatprep.subr.bf16.mxu0 %v10707_v15  ;;  %v10766_v54 = vld [vmem:[%s14194_s3 + $0x48] sm:$0xff]  }
 0x3e1   :  { %7936 = vmatprep.subr.bf16.mxu1 %v10710_v17 }
 0x3e3   :  { %7896 = vmatpush2.bf16.msra.mxu0 %v10705_v18  ;;  %v10767_v18 = vld [vmem:[%s14194_s3 + $0x8] sm:$0xff]  }
 0x3e4   :  { %7937 = vmatpush2.bf16.msra.mxu1 %v10708_v20  ;;  %7897 = vmatprep.subr.bf16.mxu0 %v10713_v56 }
 0x3e5   :  { %7938 = vmatprep.subr.bf16.mxu1 %v10716_v23 }
 0x3e7   :  { %7898 = vmatpush2.bf16.msra.mxu0 %v10711_v58 }
 0x3e8   :  { %7939 = vmatpush2.bf16.msra.mxu1 %v10714_v26  ;;  %7899 = vmatprep.subr.bf16.mxu0 %v10719_v2  ;;  %v10768_v2 = vld [vmem:[%s14194_s3 + $0x40] sm:$0xff]  }
 0x3e9   :  { %7940 = vmatprep.subr.bf16.mxu1 %v10722_v48  ;;  %v10769_v48 = vld [vmem:[%s14194_s3] sm:$0xff]  }
 0x3eb   :  { %7900 = vmatpush2.bf16.msra.mxu0 %v10717_v4 }
 0x3ec   :  { %7941 = vmatpush2.bf16.msra.mxu1 %v10720_v7  ;;  %7901 = vmatprep.subr.bf16.mxu0 %v10725_v30 }
 0x3ed   :  { %7942 = vmatprep.subr.bf16.mxu1 %v10728_v33 }
 0x3ef   :  { %7902 = vmatpush2.bf16.msra.mxu0 %v10723_v63 }
 0x3f0   :  { %7943 = vmatpush2.bf16.msra.mxu1 %v10726_v36  ;;  %7903 = vmatprep.subr.bf16.mxu0 %v10731_v0 }
 0x3f1   :  { %7944 = vmatprep.subr.bf16.mxu1 %v10734_v10 }
 0x3f3   :  { %7904 = vmatpush2.bf16.msra.mxu0 %v10729_v8 }
 0x3f4   :  { %7945 = vmatpush2.bf16.msra.mxu1 %v10732_v37  ;;  %7905 = vmatprep.subr.bf16.mxu0 %v10737_v43 }
 0x3f5   :  { %7946 = vmatprep.subr.bf16.mxu1 %v10740_v38 }
 0x3f7   :  { %7906 = vmatpush2.bf16.msra.mxu0 %v10735_v39 }
 0x3f8   :  { %7947 = vmatpush2.bf16.msra.mxu1 %v10738_v40  ;;  %7907 = vmatprep.subr.bf16.mxu0 %v10743_v14 }
 0x3f9   :  { %7948 = vmatprep.subr.bf16.mxu1 %v10746_v44 }
 0x3fb   :  { %7908 = vmatpush2.bf16.msra.mxu0 %v10741_v16 }
 0x3fc   :  { %7949 = vmatpush2.bf16.msra.mxu1 %v10744_v46  ;;  %7909 = vmatprep.subr.bf16.mxu0 %v10749_v47 }
 0x3fd   :  { %7950 = vmatprep.subr.bf16.mxu1 %v10752_v27 }
 0x3ff   :  { %7910 = vmatpush2.bf16.msra.mxu0 %v10747_v28 }
 0x400   :  { %7951 = vmatpush2.bf16.msra.mxu1 %v10750_v60  ;;  %9187 = vmatprep.subr.bf16.mxu0 %v10754_v62 }
 0x402   :  { %v7667_v21 = vpop.f32.mrf.mxu0  ;;  %7912 = vmatmul.mubr.bf16.vlgmr.msra.gmra.mxu0 %v1446_v25 }
 0x403   :  { %v7708_v42 = vpop.f32.mrf.mxu1  ;;  %7953 = vmatmul.mubr.bf16.vlgmr.msra.gmra.mxu1 %v1462_v52  ;;  %v7668_v49 = vadd.f32 %v7667_v21, %v13966_v6  ;;  %v10756_v6 = vld [vmem:[%s14194_s3 + $0x70] sm:$0xff]   ;;  %9188 = vmatpush3.bf16.msra.mxu0 %v10755_v29 }
 0x404   :  { %v7669_v24 = vpop.f32.mrf.mxu0  ;;  %9189 = vmatprep.subr.bf16.mxu0 %v10756_v6 }
 0x405   :  { %v7710_v31 = vpop.f32.mrf.mxu1  ;;  %v7709_v34 = vadd.f32 %v7708_v42, %v7668_v49  ;;  %v7670_v55 = vadd.f32 %v7669_v24, %v13969_v22  ;;  %v10757_v22 = vld [vmem:[%s14194_s3 + $0x30] sm:$0xff]  }
 0x406   :  { %v7671_v61 = vpop.f32.mrf.mxu0 }
 0x407   :  { %v7712_v9 = vpop.f32.mrf.mxu1  ;;  %v7711_v57 = vadd.f32 %v7710_v31, %v7670_v55  ;;  %9190 = vmatpush3.bf16.msra.mxu0 %v10757_v22 }
 0x408   :  { %v7672_v59 = vpop.f32.mrf.mxu0  ;;  %9191 = vmatprep.subr.bf16.mxu0 %v10758_v1 }
 0x409   :  { %v7713_v32 = vpop.f32.mrf.mxu1 }
 0x40b   :  { %9192 = vmatpush3.bf16.msra.mxu0 %v10759_v3 }
 0x40c   :  { %9193 = vmatprep.subr.bf16.mxu0 %v10760_v5 }
 0x40f   :  { %9194 = vmatpush3.bf16.msra.mxu0 %v10761_v50 }
 0x410   :  { %9195 = vmatprep.subr.bf16.mxu0 %v10762_v51 }
 0x413   :  { %9196 = vmatpush3.bf16.msra.mxu0 %v10763_v35 }
 0x414   :  { %9197 = vmatprep.subr.bf16.mxu0 %v10764_v41 }
 0x417   :  { %9198 = vmatpush3.bf16.msra.mxu0 %v10765_v11 }
 0x418   :  { %9199 = vmatprep.subr.bf16.mxu0 %v10766_v54 }
 0x41b   :  { %9200 = vmatpush3.bf16.msra.mxu0 %v10767_v18 }
 0x41c   :  { %9201 = vmatprep.subr.bf16.mxu0 %v10768_v2 }
 0x41f   :  { %9202 = vmatpush3.bf16.msra.mxu0 %v10769_v48 }
 0x442   :  { %v7749_v12 = vpop.f32.mrf.mxu0 }
 0x443   :  { %v7790_v45 = vpop.f32.mrf.mxu1  ;;  %v7750_v53 = vadd.f32 %v7749_v12, %v7709_v34  ;;  %v9170_v34 = vld [vmem:[%s14195_s4] ss:$0 sm:$0xff] }
 0x444   :  { %v7751_v13 = vpop.f32.mrf.mxu0 }
 0x445   :  { %v7792_v19 = vpop.f32.mrf.mxu1  ;;  %v7791_v15 = vadd.f32 %v7790_v45, %v7750_v53  ;;  %v7752_v17 = vadd.f32 %v7751_v13, %v7711_v57 }
 0x446   :  { %v7753_v20 = vpop.f32.mrf.mxu0 }
 0x447   :  { %v7794_v56 = vpop.f32.mrf.mxu1  ;;  %v7793_v23 = vadd.f32 %v7792_v19, %v7752_v17 }
 0x448   :  { %v7754_v58 = vpop.f32.mrf.mxu0 }
 0x449   :  { %v7795_v26 = vpop.f32.mrf.mxu1 }
 0x482   :  { %v7831_v4 = vpop.f32.mrf.mxu0 }
 0x483   :  { %v7872_v7 = vpop.f32.mrf.mxu1  ;;  %v7832_v30 = vadd.f32 %v7831_v4, %v7791_v15 }
 0x484   :  { %v7833_v33 = vpop.f32.mrf.mxu0 }
 0x485   :  { %v7874_v63 = vpop.f32.mrf.mxu1  ;;  %v7873_v36 = vadd.f32 %v7872_v7, %v7832_v30  ;;  %v7834_v43 = vadd.f32 %v7833_v33, %v7793_v23 }
 0x486   :  { %v7835_v0 = vpop.f32.mrf.mxu0 }
 0x487   :  { %v7876_v10 = vpop.f32.mrf.mxu1  ;;  %v7875_v40 = vadd.f32 %v7874_v63, %v7834_v43 }
 0x488   :  { %v7836_v8 = vpop.f32.mrf.mxu0 }
 0x489   :  { %v7877_v37 = vpop.f32.mrf.mxu1 }
 0x4c2   :  { %v7913_v38 = vpop.f32.mrf.mxu0 }
 0x4c3   :  { %v7954_v39 = vpop.f32.mrf.mxu1  ;;  %v7914_v14 = vadd.f32 %v7913_v38, %v7873_v36 }
 0x4c4   :  { %v7915_v44 = vpop.f32.mrf.mxu0 }
 0x4c5   :  { %v7956_v16 = vpop.f32.mrf.mxu1  ;;  %v7955_v46 = vadd.f32 %v7954_v39, %v7914_v14  ;;  %v7916_v47 = vadd.f32 %v7915_v44, %v7875_v40 }
 0x4c6   :  { %v7917_v27 = vpop.f32.mrf.mxu0 }
 0x4c7   :  { %v7958_v25 = vpop.f32.mrf.mxu1  ;;  %v7957_v28 = vadd.f32 %v7956_v16, %v7916_v47  ;;  %v7961_v60 = vmax.f32 %v7955_v46, 0.0 }
 0x4c8   :  { %v7918_v52 = vpop.f32.mrf.mxu0 }
 0x4c9   :  { %v7959_v21 = vpop.f32.mrf.mxu1  ;;  %v7962_v42 = vmax.f32 %v7957_v28, 0.0  ;;  %v7963_v24 = vpack.c.bf16 %v7961_v60, %v7961_v60 }
 0x4cb   :  { %v7964_v49 = vpack.c.bf16 %v7962_v42, %v7962_v42 }
 0x4cd   :  { %8132 = vmatprep.mubr.bf16.mxu0 %v7964_v49 }
 0x4ce   :  { %8133 = vmatmul.mubr.bf16.vlgmr.msra.gmra.mxu0 %v7963_v24 }
 0x58e   :  { %v9203_v31 = vpop.f32.mrf.mxu0 }
 0x590   :  { %v9204_v55 = vpop.f32.mrf.mxu0 }
 0x591   :  { %v9205_v61 = vadd.f32 %v9204_v55, %v9203_v31 }
 0x592   :  { %v9206_v9 = vpop.f32.mrf.mxu0 }
 0x593   :  { %v8135_v57 = vadd.f32 %v9205_v61, %v9170_v34 }
 0x594   :  { %v9207_v59 = vpop.f32.mrf.mxu0 }
 0x595   :  { %v8140_v32 = vmax.f32 %v8135_v57, 0.0 }
 0x597   :  { %8141 = vst [vmem:[%s14196_s5] sm:$0x3] %v8140_v32 }

</bundles_post_ra>
